<compile_context>
chip_gen: v7x
topology: tpu7x:2x2x1
jax: 0.10.0
libtpu: 0.0.40
codegen_flags: <defaults>
</compile_context>

<pallas_src>
import functools

import jax
import jax.numpy as jnp
from jax.experimental import pallas as pl
from jax.experimental.pallas import tpu as pltpu


def _ce_mask_kernel(x_ref, packed_ref, loss_acc_ref, mask_acc_ref,
                    m_scr, l_scr, xt_scr, *,
                    n_rows, n_classes, tile_n, tile_c, tiles_per_split,
                    need_row_mask, need_cls_mask):
    p = pl.program_id(0)          # megacore split
    i = pl.program_id(1)          # row tile within split
    j = pl.program_id(2)          # class tile
    n_c_steps = pl.num_programs(2)

    # Zero this split's resident accumulators at the start of the split.
    @pl.when((i == 0) & (j == 0))
    def _():
        loss_acc_ref[...] = jnp.zeros_like(loss_acc_ref)
        mask_acc_ref[...] = jnp.zeros_like(mask_acc_ref)

    # Reset the per-row online-logsumexp state at the start of every row tile.
    @pl.when(j == 0)
    def _():
        m_scr[...] = jnp.full_like(m_scr, -jnp.inf)
        l_scr[...] = jnp.zeros_like(l_scr)
        xt_scr[...] = jnp.zeros_like(xt_scr)

    x = x_ref[...].astype(jnp.float32)                      # (tile_n, tile_c)
    packed = packed_ref[...]                                # (tile_n, 1) int32
    tgt = packed & ((1 << 30) - 1)                          # target class id
    msk = (packed >> 30).astype(jnp.float32)                # {0., 1.}

    # Local class ids within this C tile (compare against shifted scalars so
    # no full-width global-id add is needed).
    cls_local = jax.lax.broadcasted_iota(jnp.int32, (tile_n, tile_c), 1)

    # -inf out the overhang columns of a partial last class tile.
    if need_cls_mask:
        x_eff = jnp.where(cls_local < (n_classes - j * tile_c), x, -jnp.inf)
    else:
        x_eff = x

    # Online (streaming) logsumexp over the class axis.
    m_old = m_scr[...]
    m_new = jnp.maximum(m_old, jnp.max(x_eff, axis=-1, keepdims=True))
    l_scr[...] = (l_scr[...] * jnp.exp(m_old - m_new)
                  + jnp.sum(jnp.exp(x_eff - m_new), axis=-1, keepdims=True))
    m_scr[...] = m_new

    # Target logit via select + reduce (no one-hot cast/multiply).
    xt_scr[...] = xt_scr[...] + jnp.sum(
        jnp.where(cls_local == (tgt - j * tile_c), x, 0.0),
        axis=-1, keepdims=True)

    # Finalize this row tile on the last class step.
    @pl.when(j == n_c_steps - 1)
    def _():
        lse = m_scr[...] + jnp.log(l_scr[...])
        per_row = lse - xt_scr[...]
        if need_row_mask:
            row = jax.lax.broadcasted_iota(jnp.int32, (tile_n, 1), 0)
            global_row = (p * tiles_per_split + i) * tile_n + row
            valid = global_row < n_rows
            m_eff = jnp.where(valid, msk, 0.0)
            loss_rows = jnp.where(valid, per_row * m_eff, 0.0)
        else:
            m_eff = msk
            loss_rows = per_row * m_eff
        loss_acc_ref[...] += jnp.full(loss_acc_ref.shape, jnp.sum(loss_rows),
                                      dtype=loss_acc_ref.dtype)
        mask_acc_ref[...] += jnp.full(mask_acc_ref.shape, jnp.sum(m_eff),
                                      dtype=mask_acc_ref.dtype)


def _pick_tiles(n_rows, n_classes, itemsize):
    """Pick (tile_n, tile_c) against a ~16 MiB double-buffered VMEM budget."""
    sub = 16 if itemsize < 4 else 8          # sublane granularity (bf16 vs f32)
    tile_c = n_classes if n_classes <= 4096 else 2048   # stream big vocabs
    budget = 16 * 1024 * 1024
    tile_n = sub
    for cand in (1024, 512, 256, 128, 64, 32, 16):
        if cand % sub:
            continue
        vmem = (2 * cand * tile_c * itemsize      # x, double buffered
                + 2 * cand * 128 * 4              # packed tgt/mask (lane pad)
                + 3 * cand * 128 * 4)             # m/l/xt scratch (lane pad)
        if vmem <= budget:
            tile_n = cand
            break
    if n_rows < sub:
        tile_n = n_rows                            # full-dim block
    else:
        tile_n = min(tile_n, (n_rows // sub) * sub)
    return tile_n, tile_c


def cross_entropy_loss_with_mask(x, target, mask, *, tile_n=None, tile_c=None):
    """x: (N, C) f32/bf16 logits; target: (N,) int; mask: (N,) bool/0-1."""
    N, C = x.shape
    assert C < (1 << 30)

    auto_n, auto_c = _pick_tiles(N, C, jnp.dtype(x.dtype).itemsize)
    tile_n = auto_n if tile_n is None else tile_n
    tile_c = auto_c if tile_c is None else tile_c

    # Pack target (low 30 bits) + boolean mask (bit 30) into one int32 column.
    packed = (target.astype(jnp.int32)
              | ((mask != 0).astype(jnp.int32) << 30)).reshape(N, 1)

    n_row_tiles = pl.cdiv(N, tile_n)
    n_c_steps = pl.cdiv(C, tile_c)
    num_splits = 2 if n_row_tiles >= 2 else 1          # v7x megacore split
    tiles_per_split = pl.cdiv(n_row_tiles, num_splits)

    rows_exact = (N % tile_n == 0) and (tiles_per_split * num_splits == n_row_tiles)

    def row_block(p, i):
        # Clamp out-of-range (fully masked) tiles of the last split to a valid
        # block index; their rows are discarded by the in-kernel validity mask.
        return jnp.minimum(p * tiles_per_split + i, n_row_tiles - 1)

    kernel = functools.partial(
        _ce_mask_kernel,
        n_rows=N, n_classes=C, tile_n=tile_n, tile_c=tile_c,
        tiles_per_split=tiles_per_split,
        need_row_mask=not rows_exact,
        need_cls_mask=(C % tile_c != 0))

    loss_parts, mask_parts = pl.pallas_call(
        kernel,
        out_shape=(jax.ShapeDtypeStruct((num_splits, 8, 128), jnp.float32),
                   jax.ShapeDtypeStruct((num_splits, 8, 128), jnp.float32)),
        grid_spec=pltpu.PrefetchScalarGridSpec(
            num_scalar_prefetch=0,
            grid=(num_splits, tiles_per_split, n_c_steps),
            in_specs=[
                pl.BlockSpec((tile_n, tile_c),
                             lambda p, i, j: (row_block(p, i), j)),
                pl.BlockSpec((tile_n, 1),
                             lambda p, i, j: (row_block(p, i), 0)),
            ],
            out_specs=[
                pl.BlockSpec((1, 8, 128), lambda p, i, j: (p, 0, 0)),
                pl.BlockSpec((1, 8, 128), lambda p, i, j: (p, 0, 0)),
            ],
            scratch_shapes=[
                pltpu.VMEM((tile_n, 1), jnp.float32),   # running row max
                pltpu.VMEM((tile_n, 1), jnp.float32),   # running sum of exp
                pltpu.VMEM((tile_n, 1), jnp.float32),   # selected target logit
            ],
        ),
        compiler_params=pltpu.CompilerParams(
            dimension_semantics=("parallel", "arbitrary", "arbitrary"),
            vmem_limit_bytes=32 * 1024 * 1024),
    )(x, packed)

    loss_sum = jnp.sum(loss_parts[:, 0, 0])
    mask_sum = jnp.sum(mask_parts[:, 0, 0])
    # Matches the PyTorch module: divide by mask.sum() (NaN/Inf if all-zero mask).
    return loss_sum / mask_sum


def _reference(x, target, mask):
    # Pure-JAX reference mirroring the PyTorch module (weight=None).
    x = x.astype(jnp.float32)
    lse = jax.scipy.special.logsumexp(x, axis=-1)
    x_t = jnp.take_along_axis(x, target[:, None].astype(jnp.int32), axis=-1)[:, 0]
    unreduced = lse - x_t
    m = mask.astype(jnp.float32)
    return jnp.sum(unreduced * m) / jnp.sum(m)


if __name__ == "__main__":
    key = jax.random.PRNGKey(0)
    k1, k2, k3 = jax.random.split(key, 3)

    # e.g. batch=2 of 8x16 spatial positions, flattened to (N, C) logits.
    N, C = 256, 128
    x = jax.random.normal(k1, (N, C), dtype=jnp.float32)
    target = jax.random.randint(k2, (N,), 0, C, dtype=jnp.int32)
    mask = jax.random.uniform(k3, (N,)) > 0.5

    loss = jax.block_until_ready(cross_entropy_loss_with_mask(x, target, mask))
    ref = _reference(x, target, mask)
    assert jnp.allclose(loss, ref, rtol=1e-5, atol=1e-5), (loss, ref)

    # bf16 logits path (halves HBM traffic; kernel upcasts to f32 internally).
    x_bf16 = x.astype(jnp.bfloat16)
    loss_bf = jax.block_until_ready(
        cross_entropy_loss_with_mask(x_bf16, target, mask))
    ref_bf = _reference(x_bf16.astype(jnp.float32), target, mask)
    assert jnp.allclose(loss_bf, ref_bf, rtol=1e-4, atol=1e-4), (loss_bf, ref_bf)

    # Ragged / streamed path: N not a multiple of tile_n, C streamed in
    # 128-wide chunks, two-way row split (exercises validity masks + online LSE).
    k4, k5, k6 = jax.random.split(jax.random.PRNGKey(1), 3)
    N2, C2 = 300, 320
    x2 = jax.random.normal(k4, (N2, C2), dtype=jnp.float32)
    t2 = jax.random.randint(k5, (N2,), 0, C2, dtype=jnp.int32)
    m2 = jax.random.uniform(k6, (N2,)) > 0.3
    loss2 = jax.block_until_ready(
        cross_entropy_loss_with_mask(x2, t2, m2, tile_n=128, tile_c=128))
    ref2 = _reference(x2, t2, m2)
    assert jnp.allclose(loss2, ref2, rtol=1e-4, atol=1e-4), (loss2, ref2)

    print("KERNEL_OK")
</pallas_src>

<mosaic_0001>
module attributes {stable_mosaic.version = 11 : i64} {
  func.func @_ce_mask_kernel(%arg0: i32, %arg1: i32, %arg2: i32, %arg3: memref<256x128xf32, #tpu.memory_space<vmem>>, %arg4: memref<256x1xi32, #tpu.memory_space<vmem>>, %arg5: memref<1x8x128xf32, #tpu.memory_space<vmem>>, %arg6: memref<1x8x128xf32, #tpu.memory_space<vmem>>, %arg7: memref<256x1xf32, #tpu.memory_space<vmem>>, %arg8: memref<256x1xf32, #tpu.memory_space<vmem>>, %arg9: memref<256x1xf32, #tpu.memory_space<vmem>>) attributes {dimension_semantics = [#tpu.dimension_semantics<parallel>, #tpu.dimension_semantics<arbitrary>, #tpu.dimension_semantics<arbitrary>], iteration_bounds = array<i64: 1, 1, 1>, scalar_prefetch = 0 : i64, scratch_operands = 3 : i64, tpu.core_type = #tpu.core_type<tc>, window_params = [{transform_indices = @transform_0, window_bounds = array<i64: 256, 128>}, {transform_indices = @transform_1, window_bounds = array<i64: 256, 1>}, {transform_indices = @transform_2, window_bounds = array<i64: 1, 8, 128>}, {transform_indices = @transform_3, window_bounds = array<i64: 1, 8, 128>}]} {
    %c0_i32 = arith.constant 0 : i32
    %0 = arith.cmpi eq, %arg1, %c0_i32 : i32
    %c0_i32_0 = arith.constant 0 : i32
    %1 = arith.cmpi eq, %arg2, %c0_i32_0 : i32
    %2 = arith.andi %0, %1 : i1
    %3 = arith.extui %2 : i1 to i32
    %c0_i32_1 = arith.constant 0 : i32
    %4 = arith.cmpi ne, %3, %c0_i32_1 : i32
    scf.if %4 {
      %cst_24 = arith.constant 0.000000e+00 : f32
      %47 = vector.broadcast %cst_24 : f32 to vector<1x8x128xf32>
      %c0_25 = arith.constant 0 : index
      %c0_26 = arith.constant 0 : index
      %c0_27 = arith.constant 0 : index
      %48 = vector.load %arg5[%c0_25, %c0_26, %c0_27] : memref<1x8x128xf32, #tpu.memory_space<vmem>>, vector<1x8x128xf32>
      tpu.vector_store %arg5[%c0_25, %c0_26, %c0_27], %47 {strides = array<i32>} : memref<1x8x128xf32, #tpu.memory_space<vmem>>, vector<1x8x128xf32>,
      %cst_28 = arith.constant 0.000000e+00 : f32
      %49 = vector.broadcast %cst_28 : f32 to vector<1x8x128xf32>
      %c0_29 = arith.constant 0 : index
      %c0_30 = arith.constant 0 : index
      %c0_31 = arith.constant 0 : index
      %50 = vector.load %arg6[%c0_29, %c0_30, %c0_31] : memref<1x8x128xf32, #tpu.memory_space<vmem>>, vector<1x8x128xf32>
      tpu.vector_store %arg6[%c0_29, %c0_30, %c0_31], %49 {strides = array<i32>} : memref<1x8x128xf32, #tpu.memory_space<vmem>>, vector<1x8x128xf32>,
    } else {
    }
    %c0_i32_2 = arith.constant 0 : i32
    %5 = arith.cmpi eq, %arg2, %c0_i32_2 : i32
    %6 = arith.extui %5 : i1 to i32
    %c0_i32_3 = arith.constant 0 : i32
    %7 = arith.cmpi ne, %6, %c0_i32_3 : i32
    scf.if %7 {
      %cst_24 = arith.constant 0xFF800000 : f32
      %47 = vector.broadcast %cst_24 : f32 to vector<256x1xf32>
      %c0_25 = arith.constant 0 : index
      %c0_26 = arith.constant 0 : index
      %48 = vector.load %arg7[%c0_25, %c0_26] : memref<256x1xf32, #tpu.memory_space<vmem>>, vector<256x1xf32>
      tpu.vector_store %arg7[%c0_25, %c0_26], %47 {strides = array<i32>} : memref<256x1xf32, #tpu.memory_space<vmem>>, vector<256x1xf32>,
      %cst_27 = arith.constant 0.000000e+00 : f32
      %49 = vector.broadcast %cst_27 : f32 to vector<256x1xf32>
      %c0_28 = arith.constant 0 : index
      %c0_29 = arith.constant 0 : index
      %50 = vector.load %arg8[%c0_28, %c0_29] : memref<256x1xf32, #tpu.memory_space<vmem>>, vector<256x1xf32>
      tpu.vector_store %arg8[%c0_28, %c0_29], %49 {strides = array<i32>} : memref<256x1xf32, #tpu.memory_space<vmem>>, vector<256x1xf32>,
      %cst_30 = arith.constant 0.000000e+00 : f32
      %51 = vector.broadcast %cst_30 : f32 to vector<256x1xf32>
      %c0_31 = arith.constant 0 : index
      %c0_32 = arith.constant 0 : index
      %52 = vector.load %arg9[%c0_31, %c0_32] : memref<256x1xf32, #tpu.memory_space<vmem>>, vector<256x1xf32>
      tpu.vector_store %arg9[%c0_31, %c0_32], %51 {strides = array<i32>} : memref<256x1xf32, #tpu.memory_space<vmem>>, vector<256x1xf32>,
    } else {
    }
    %c0 = arith.constant 0 : index
    %c0_4 = arith.constant 0 : index
    %8 = vector.load %arg3[%c0, %c0_4] : memref<256x128xf32, #tpu.memory_space<vmem>>, vector<256x128xf32>
    %c0_5 = arith.constant 0 : index
    %c0_6 = arith.constant 0 : index
    %9 = vector.load %arg4[%c0_5, %c0_6] : memref<256x1xi32, #tpu.memory_space<vmem>>, vector<256x1xi32>
    %c1073741823_i32 = arith.constant 1073741823 : i32
    %10 = vector.broadcast %c1073741823_i32 : i32 to vector<256x1xi32>
    %11 = arith.andi %9, %10 : vector<256x1xi32>
    %c30_i32 = arith.constant 30 : i32
    %12 = vector.broadcast %c30_i32 : i32 to vector<256x1xi32>
    %13 = arith.shrsi %9, %12 : vector<256x1xi32>
    %14 = arith.sitofp %13 : vector<256x1xi32> to vector<256x1xf32>
    %15 = tpu.iota {dimensions = array<i32: 1>} : vector<256x128xi32>
    %c0_7 = arith.constant 0 : index
    %c0_8 = arith.constant 0 : index
    %16 = vector.load %arg7[%c0_7, %c0_8] : memref<256x1xf32, #tpu.memory_space<vmem>>, vector<256x1xf32>
    %cst = arith.constant dense<0xFF800000> : vector<256xf32>
    %17 = vector.multi_reduction <maximumf>, %8, %cst [1] : vector<256x128xf32> to vector<256xf32>
    %18 = vector.shape_cast %17 : vector<256xf32> to vector<256x1xf32>
    %19 = arith.maximumf %16, %18 : vector<256x1xf32>
    %c0_9 = arith.constant 0 : index
    %c0_10 = arith.constant 0 : index
    %20 = vector.load %arg8[%c0_9, %c0_10] : memref<256x1xf32, #tpu.memory_space<vmem>>, vector<256x1xf32>
    %21 = arith.subf %16, %19 : vector<256x1xf32>
    %22 = math.exp %21 : vector<256x1xf32>
    %23 = arith.mulf %20, %22 : vector<256x1xf32>
    %24 = vector.broadcast %19 : vector<256x1xf32> to vector<256x128xf32>
    %25 = arith.subf %8, %24 : vector<256x128xf32>
    %26 = math.exp %25 : vector<256x128xf32>
    %cst_11 = arith.constant dense<0.000000e+00> : vector<256xf32>
    %27 = vector.multi_reduction <add>, %26, %cst_11 [1] : vector<256x128xf32> to vector<256xf32>
    %28 = vector.shape_cast %27 : vector<256xf32> to vector<256x1xf32>
    %29 = arith.addf %23, %28 : vector<256x1xf32>
    %c0_12 = arith.constant 0 : index
    %c0_13 = arith.constant 0 : index
    %30 = vector.load %arg8[%c0_12, %c0_13] : memref<256x1xf32, #tpu.memory_space<vmem>>, vector<256x1xf32>
    tpu.vector_store %arg8[%c0_12, %c0_13], %29 {strides = array<i32>} : memref<256x1xf32, #tpu.memory_space<vmem>>, vector<256x1xf32>,
    %c0_14 = arith.constant 0 : index
    %c0_15 = arith.constant 0 : index
    %31 = vector.load %arg7[%c0_14, %c0_15] : memref<256x1xf32, #tpu.memory_space<vmem>>, vector<256x1xf32>
    tpu.vector_store %arg7[%c0_14, %c0_15], %19 {strides = array<i32>} : memref<256x1xf32, #tpu.memory_space<vmem>>, vector<256x1xf32>,
    %c0_16 = arith.constant 0 : index
    %c0_17 = arith.constant 0 : index
    %32 = vector.load %arg9[%c0_16, %c0_17] : memref<256x1xf32, #tpu.memory_space<vmem>>, vector<256x1xf32>
    %c128_i32 = arith.constant 128 : i32
    %33 = arith.muli %arg2, %c128_i32 : i32
    %34 = vector.broadcast %33 : i32 to vector<256x1xi32>
    %35 = arith.subi %11, %34 : vector<256x1xi32>
    %36 = vector.broadcast %35 : vector<256x1xi32> to vector<256x128xi32>
    %37 = arith.cmpi eq, %15, %36 : vector<256x128xi32>
    %cst_18 = arith.constant 0.000000e+00 : f32
    %38 = vector.broadcast %cst_18 : f32 to vector<256x128xf32>
    %39 = arith.select %37, %8, %38 : vector<256x128xi1>, vector<256x128xf32>
    %cst_19 = arith.constant dense<0.000000e+00> : vector<256xf32>
    %40 = vector.multi_reduction <add>, %39, %cst_19 [1] : vector<256x128xf32> to vector<256xf32>
    %41 = vector.shape_cast %40 : vector<256xf32> to vector<256x1xf32>
    %42 = arith.addf %32, %41 : vector<256x1xf32>
    %c0_20 = arith.constant 0 : index
    %c0_21 = arith.constant 0 : index
    %43 = vector.load %arg9[%c0_20, %c0_21] : memref<256x1xf32, #tpu.memory_space<vmem>>, vector<256x1xf32>
    tpu.vector_store %arg9[%c0_20, %c0_21], %42 {strides = array<i32>} : memref<256x1xf32, #tpu.memory_space<vmem>>, vector<256x1xf32>,
    %c0_i32_22 = arith.constant 0 : i32
    %44 = arith.cmpi eq, %arg2, %c0_i32_22 : i32
    %45 = arith.extui %44 : i1 to i32
    %c0_i32_23 = arith.constant 0 : i32
    %46 = arith.cmpi ne, %45, %c0_i32_23 : i32
    scf.if %46 {
      %c0_24 = arith.constant 0 : index
      %c0_25 = arith.constant 0 : index
      %47 = vector.load %arg7[%c0_24, %c0_25] : memref<256x1xf32, #tpu.memory_space<vmem>>, vector<256x1xf32>
      %c0_26 = arith.constant 0 : index
      %c0_27 = arith.constant 0 : index
      %48 = vector.load %arg8[%c0_26, %c0_27] : memref<256x1xf32, #tpu.memory_space<vmem>>, vector<256x1xf32>
      %49 = math.log %48 : vector<256x1xf32>
      %50 = arith.addf %47, %49 : vector<256x1xf32>
      %c0_28 = arith.constant 0 : index
      %c0_29 = arith.constant 0 : index
      %51 = vector.load %arg9[%c0_28, %c0_29] : memref<256x1xf32, #tpu.memory_space<vmem>>, vector<256x1xf32>
      %52 = arith.subf %50, %51 : vector<256x1xf32>
      %53 = arith.mulf %52, %14 : vector<256x1xf32>
      %c0_30 = arith.constant 0 : index
      %c0_31 = arith.constant 0 : index
      %c0_32 = arith.constant 0 : index
      %54 = vector.load %arg5[%c0_30, %c0_31, %c0_32] : memref<1x8x128xf32, #tpu.memory_space<vmem>>, vector<1x8x128xf32>
      %55 = vector.shape_cast %53 : vector<256x1xf32> to vector<1x256x1xf32>
      %cst_33 = arith.constant dense<0.000000e+00> : vector<1xf32>
      %56 = vector.multi_reduction <add>, %55, %cst_33 [1, 2] : vector<1x256x1xf32> to vector<1xf32>
      %57 = vector.shape_cast %56 : vector<1xf32> to vector<1x1x1xf32>
      %58 = vector.extract %57[0, 0, 0] : f32 from vector<1x1x1xf32>
      %59 = vector.broadcast %58 : f32 to vector<1x8x128xf32>
      %60 = arith.addf %54, %59 : vector<1x8x128xf32>
      %c0_34 = arith.constant 0 : index
      %c0_35 = arith.constant 0 : index
      %c0_36 = arith.constant 0 : index
      %61 = vector.load %arg5[%c0_34, %c0_35, %c0_36] : memref<1x8x128xf32, #tpu.memory_space<vmem>>, vector<1x8x128xf32>
      tpu.vector_store %arg5[%c0_34, %c0_35, %c0_36], %60 {strides = array<i32>} : memref<1x8x128xf32, #tpu.memory_space<vmem>>, vector<1x8x128xf32>,
      %c0_37 = arith.constant 0 : index
      %c0_38 = arith.constant 0 : index
      %c0_39 = arith.constant 0 : index
      %62 = vector.load %arg6[%c0_37, %c0_38, %c0_39] : memref<1x8x128xf32, #tpu.memory_space<vmem>>, vector<1x8x128xf32>
      %63 = vector.shape_cast %14 : vector<256x1xf32> to vector<1x256x1xf32>
      %cst_40 = arith.constant dense<0.000000e+00> : vector<1xf32>
      %64 = vector.multi_reduction <add>, %63, %cst_40 [1, 2] : vector<1x256x1xf32> to vector<1xf32>
      %65 = vector.shape_cast %64 : vector<1xf32> to vector<1x1x1xf32>
      %66 = vector.extract %65[0, 0, 0] : f32 from vector<1x1x1xf32>
      %67 = vector.broadcast %66 : f32 to vector<1x8x128xf32>
      %68 = arith.addf %62, %67 : vector<1x8x128xf32>
      %c0_41 = arith.constant 0 : index
      %c0_42 = arith.constant 0 : index
      %c0_43 = arith.constant 0 : index
      %69 = vector.load %arg6[%c0_41, %c0_42, %c0_43] : memref<1x8x128xf32, #tpu.memory_space<vmem>>, vector<1x8x128xf32>
      tpu.vector_store %arg6[%c0_41, %c0_42, %c0_43], %68 {strides = array<i32>} : memref<1x8x128xf32, #tpu.memory_space<vmem>>, vector<1x8x128xf32>,
    } else {
    }
    return
  }
  func.func @transform_0(%arg0: i32, %arg1: i32, %arg2: i32) -> (i32, i32) {
    %c1_i32 = arith.constant 1 : i32
    %0 = arith.muli %arg0, %c1_i32 : i32
    %1 = arith.addi %0, %arg1 : i32
    %c0_i32 = arith.constant 0 : i32
    %2 = arith.minsi %1, %c0_i32 : i32
    %c0_i32_0 = arith.constant 0 : i32
    return %2, %arg2 : i32, i32
  }
  func.func @transform_1(%arg0: i32, %arg1: i32, %arg2: i32) -> (i32, i32) {
    %c1_i32 = arith.constant 1 : i32
    %0 = arith.muli %arg0, %c1_i32 : i32
    %1 = arith.addi %0, %arg1 : i32
    %c0_i32 = arith.constant 0 : i32
    %2 = arith.minsi %1, %c0_i32 : i32
    %c0_i32_0 = arith.constant 0 : i32
    %c0_i32_1 = arith.constant 0 : i32
    return %2, %c0_i32_0 : i32, i32
  }
  func.func @transform_2(%arg0: i32, %arg1: i32, %arg2: i32) -> (i32, i32, i32) {
    %c0_i32 = arith.constant 0 : i32
    %c0_i32_0 = arith.constant 0 : i32
    %c0_i32_1 = arith.constant 0 : i32
    return %arg0, %c0_i32, %c0_i32_0 : i32, i32, i32
  }
  func.func @transform_3(%arg0: i32, %arg1: i32, %arg2: i32) -> (i32, i32, i32) {
    %c0_i32 = arith.constant 0 : i32
    %c0_i32_0 = arith.constant 0 : i32
    %c0_i32_1 = arith.constant 0 : i32
    return %arg0, %c0_i32, %c0_i32_0 : i32, i32, i32
  }
}

</mosaic_0001>

<bundles_post_ra>
// kernel: tpu_custom_call.1
= control target key start
LH: loop header
LB: loop body
LE: loop exit
PB: predicated region body
PF: predicated region fallthrough
CT: control target
= control target key end

     0   :  { %9 = vsyncpa [#allocation6], 0  ;;  %v2142_v4 = vmov 0   ;;  %vm90_vm0 = vcmask 7168   ;;  %v2143_v7 = vmov -inf   ;;  %s3781_s0 = inlined_call_operand.vmem [shape: f32[256,128], index: 0, kind: input, shape index: {}]   ;;  %s3782_s1 = inlined_call_operand.vmem [shape: s32[256,1], index: 1, kind: input, shape index: {}]   ;;  %s3783_s2 = inlined_call_operand.hbm [shape: f32[1,8,128], index: 2, kind: output, shape index: {0}]   ;;  %s3784_s3 = inlined_call_operand.hbm [shape: f32[1,8,128], index: 3, kind: output, shape index: {1}]  }
   0x1   :  { %v2170_v0 = vld [vmem:[%s3781_s0 + $0x10] sm:$0xff]  ;;  %v2175_v1 = vld [vmem:[%s3781_s0] sm:$0xff]  ;;  %v2182_v2 = vld [vmem:[%s3781_s0 + $0x18] sm:$0xff]  ;;  %1869 = vset.pattern.permute.xlu0 %v2142_v4  ;;  %1868 = vset.pattern.permute.xlu1 %v2142_v4  ;;  %93 = vst.msk [vmem:[#allocation2 + $0x10] sm:$0xff] %vm90_vm0, %v2143_v7 }
   0x2   :  { %385 = vmax.xlane.f32.xlu1 %v2170_v0  ;;  %381 = vmax.xlane.f32.xlu0 %v2175_v1  ;;  %v2187_v3 = vld [vmem:[%s3781_s0 + $0x8] sm:$0xff]  ;;  %v2199_v6 = vld [vmem:[%s3781_s0 + $0x20] sm:$0xff]  ;;  %91 = vst.msk [vmem:[#allocation2] sm:$0xff] %vm90_vm0, %v2143_v7  ;;  %92 = vst.msk [vmem:[#allocation2 + $0x8] sm:$0xff] %vm90_vm0, %v2143_v7 }
   0x3   :  { %v2194_v5 = vld [vmem:[%s3781_s0 + $0x28] sm:$0xff]  ;;  %94 = vst.msk [vmem:[#allocation2 + $0x18] sm:$0xff] %vm90_vm0, %v2143_v7  ;;  %95 = vst.msk [vmem:[#allocation2 + $0x20] sm:$0xff] %vm90_vm0, %v2143_v7  ;;  %v2238_v8 = vld [vmem:[%s3781_s0 + $0x38] sm:$0xff] }
   0x4   :  { %96 = vst.msk [vmem:[#allocation2 + $0x28] sm:$0xff] %vm90_vm0, %v2143_v7  ;;  %97 = vst.msk [vmem:[#allocation2 + $0x30] sm:$0xff] %vm90_vm0, %v2143_v7  ;;  %v2243_v9 = vld [vmem:[%s3781_s0 + $0x30] sm:$0xff]  ;;  %v2250_v10 = vld [vmem:[%s3781_s0 + $0x48] sm:$0xff] }
   0x5   :  { %98 = vst.msk [vmem:[#allocation2 + $0x38] sm:$0xff] %vm90_vm0, %v2143_v7  ;;  %99 = vst.msk [vmem:[#allocation2 + $0x40] sm:$0xff] %vm90_vm0, %v2143_v7  ;;  %v2255_v11 = vld [vmem:[%s3781_s0 + $0x40] sm:$0xff] }
   0x6   :  { %387 = vmax.xlane.f32.xlu1 %v2182_v2  ;;  %383 = vmax.xlane.f32.xlu0 %v2187_v3  ;;  %100 = vst.msk [vmem:[#allocation2 + $0x48] sm:$0xff] %vm90_vm0, %v2143_v7  ;;  %101 = vst.msk [vmem:[#allocation2 + $0x50] sm:$0xff] %vm90_vm0, %v2143_v7 }
   0x7   :  { %102 = vst.msk [vmem:[#allocation2 + $0x58] sm:$0xff] %vm90_vm0, %v2143_v7  ;;  %103 = vst.msk [vmem:[#allocation2 + $0x60] sm:$0xff] %vm90_vm0, %v2143_v7 }
   0x8   :  { %104 = vst.msk [vmem:[#allocation2 + $0x68] sm:$0xff] %vm90_vm0, %v2143_v7  ;;  %105 = vst.msk [vmem:[#allocation2 + $0x70] sm:$0xff] %vm90_vm0, %v2143_v7 }
   0x9   :  { %106 = vst.msk [vmem:[#allocation2 + $0x78] sm:$0xff] %vm90_vm0, %v2143_v7  ;;  %107 = vst.msk [vmem:[#allocation2 + $0x80] sm:$0xff] %vm90_vm0, %v2143_v7 }
   0xa   :  { %108 = vst.msk [vmem:[#allocation2 + $0x88] sm:$0xff] %vm90_vm0, %v2143_v7  ;;  %109 = vst.msk [vmem:[#allocation2 + $0x90] sm:$0xff] %vm90_vm0, %v2143_v7  ;;  %391 = vmax.xlane.f32.xlu1 %v2194_v5  ;;  %389 = vmax.xlane.f32.xlu0 %v2199_v6 }
   0xb   :  { %110 = vst.msk [vmem:[#allocation2 + $0x98] sm:$0xff] %vm90_vm0, %v2143_v7  ;;  %111 = vst.msk [vmem:[#allocation2 + $0xa0] sm:$0xff] %vm90_vm0, %v2143_v7 }
   0xc   :  { %112 = vst.msk [vmem:[#allocation2 + $0xa8] sm:$0xff] %vm90_vm0, %v2143_v7  ;;  %113 = vst.msk [vmem:[#allocation2 + $0xb0] sm:$0xff] %vm90_vm0, %v2143_v7 }
   0xd   :  { %114 = vst.msk [vmem:[#allocation2 + $0xb8] sm:$0xff] %vm90_vm0, %v2143_v7  ;;  %115 = vst.msk [vmem:[#allocation2 + $0xc0] sm:$0xff] %vm90_vm0, %v2143_v7 }
   0xe   :  { %116 = vst.msk [vmem:[#allocation2 + $0xc8] sm:$0xff] %vm90_vm0, %v2143_v7  ;;  %117 = vst.msk [vmem:[#allocation2 + $0xd0] sm:$0xff] %vm90_vm0, %v2143_v7  ;;  %395 = vmax.xlane.f32.xlu1 %v2238_v8  ;;  %393 = vmax.xlane.f32.xlu0 %v2243_v9 }
   0xf   :  { %118 = vst.msk [vmem:[#allocation2 + $0xd8] sm:$0xff] %vm90_vm0, %v2143_v7  ;;  %119 = vst.msk [vmem:[#allocation2 + $0xe0] sm:$0xff] %vm90_vm0, %v2143_v7 }
  0x10   :  { %120 = vst.msk [vmem:[#allocation2 + $0xe8] sm:$0xff] %vm90_vm0, %v2143_v7  ;;  %121 = vst.msk [vmem:[#allocation2 + $0xf0] sm:$0xff] %vm90_vm0, %v2143_v7 }
  0x11   :  { %122 = vst.msk [vmem:[#allocation2 + $0xf8] sm:$0xff] %vm90_vm0, %v2143_v7 }
  0x12   :  { %10 = vsyncpa [#allocation8], 0  ;;  %399 = vmax.xlane.f32.xlu1 %v2250_v10  ;;  %397 = vmax.xlane.f32.xlu0 %v2255_v11  ;;  %v2262_v12 = vld [vmem:[%s3781_s0 + $0x58] sm:$0xff]  ;;  %v2267_v13 = vld [vmem:[%s3781_s0 + $0x50] sm:$0xff]  ;;  %v2144_v16 = vmov 0.0   ;;  %s2146_s14 = smov [#allocation7]  }
  0x13   :  { %v2274_v14 = vld [vmem:[%s3781_s0 + $0x68] sm:$0xff]  ;;  %v2279_v15 = vld [vmem:[%s3781_s0 + $0x60] sm:$0xff]  ;;  %123 = vst.msk [vmem:[#allocation3] sm:$0xff] %vm90_vm0, %v2144_v16  ;;  %124 = vst.msk [vmem:[#allocation3 + $0x8] sm:$0xff] %vm90_vm0, %v2144_v16  ;;  %s1835_s15 = sshll.u32 %s2146_s14, 4  ;;  %s1836_s15 = int_to_ptr.vmem [resolvable:$true] %s1835_s15 }
  0x14   :  { %125 = vst.msk [vmem:[#allocation3 + $0x10] sm:$0xff] %vm90_vm0, %v2144_v16  ;;  %126 = vst.msk [vmem:[#allocation3 + $0x18] sm:$0xff] %vm90_vm0, %v2144_v16  ;;  %v2414_v17 = vld [vmem:[%s3781_s0 + $0x78] sm:$0xff]  ;;  %v2419_v18 = vld [vmem:[%s3781_s0 + $0x70] sm:$0xff] }
  0x15   :  { %127 = vst.msk [vmem:[#allocation3 + $0x20] sm:$0xff] %vm90_vm0, %v2144_v16  ;;  %128 = vst.msk [vmem:[#allocation3 + $0x28] sm:$0xff] %vm90_vm0, %v2144_v16  ;;  %v2426_v19 = vld [vmem:[%s3781_s0 + $0x88] sm:$0xff]  ;;  %v2431_v20 = vld [vmem:[%s3781_s0 + $0x80] sm:$0xff] }
  0x16   :  { %403 = vmax.xlane.f32.xlu1 %v2262_v12  ;;  %401 = vmax.xlane.f32.xlu0 %v2267_v13  ;;  %129 = vst.msk [vmem:[#allocation3 + $0x30] sm:$0xff] %vm90_vm0, %v2144_v16  ;;  %130 = vst.msk [vmem:[#allocation3 + $0x38] sm:$0xff] %vm90_vm0, %v2144_v16  ;;  %v2438_v21 = vld [vmem:[%s3781_s0 + $0x98] sm:$0xff]  ;;  %v2443_v22 = vld [vmem:[%s3781_s0 + $0x90] sm:$0xff] }
  0x17   :  { %131 = vst.msk [vmem:[#allocation3 + $0x40] sm:$0xff] %vm90_vm0, %v2144_v16  ;;  %132 = vst.msk [vmem:[#allocation3 + $0x48] sm:$0xff] %vm90_vm0, %v2144_v16  ;;  %v2450_v23 = vld [vmem:[%s3781_s0 + $0xa0] sm:$0xff]  ;;  %v208_v24 = vld [vmem:[%s3781_s0 + $0xa8] sm:$0xff] }
  0x18   :  { %133 = vst.msk [vmem:[#allocation3 + $0x50] sm:$0xff] %vm90_vm0, %v2144_v16  ;;  %134 = vst.msk [vmem:[#allocation3 + $0x58] sm:$0xff] %vm90_vm0, %v2144_v16  ;;  %v209_v25 = vld [vmem:[%s3781_s0 + $0xb0] sm:$0xff]  ;;  %v210_v26 = vld [vmem:[%s3781_s0 + $0xb8] sm:$0xff] }
  0x19   :  { %135 = vst.msk [vmem:[#allocation3 + $0x60] sm:$0xff] %vm90_vm0, %v2144_v16  ;;  %136 = vst.msk [vmem:[#allocation3 + $0x68] sm:$0xff] %vm90_vm0, %v2144_v16  ;;  %v211_v27 = vld [vmem:[%s3781_s0 + $0xc0] sm:$0xff]  ;;  %v212_v28 = vld [vmem:[%s3781_s0 + $0xc8] sm:$0xff] }
  0x1a   :  { %407 = vmax.xlane.f32.xlu1 %v2274_v14  ;;  %405 = vmax.xlane.f32.xlu0 %v2279_v15  ;;  %137 = vst.msk [vmem:[#allocation3 + $0x70] sm:$0xff] %vm90_vm0, %v2144_v16  ;;  %138 = vst.msk [vmem:[#allocation3 + $0x78] sm:$0xff] %vm90_vm0, %v2144_v16  ;;  %v213_v29 = vld [vmem:[%s3781_s0 + $0xd0] sm:$0xff]  ;;  %v214_v30 = vld [vmem:[%s3781_s0 + $0xd8] sm:$0xff] }
  0x1b   :  { %139 = vst.msk [vmem:[#allocation3 + $0x80] sm:$0xff] %vm90_vm0, %v2144_v16  ;;  %140 = vst.msk [vmem:[#allocation3 + $0x88] sm:$0xff] %vm90_vm0, %v2144_v16  ;;  %v215_v31 = vld [vmem:[%s3781_s0 + $0xe0] sm:$0xff]  ;;  %v216_v32 = vld [vmem:[%s3781_s0 + $0xe8] sm:$0xff] }
  0x1c   :  { %141 = vst.msk [vmem:[#allocation3 + $0x90] sm:$0xff] %vm90_vm0, %v2144_v16  ;;  %142 = vst.msk [vmem:[#allocation3 + $0x98] sm:$0xff] %vm90_vm0, %v2144_v16  ;;  %v217_v33 = vld [vmem:[%s3781_s0 + $0xf0] sm:$0xff]  ;;  %v218_v34 = vld [vmem:[%s3781_s0 + $0xf8] sm:$0xff] }
  0x1d   :  { %143 = vst.msk [vmem:[#allocation3 + $0xa0] sm:$0xff] %vm90_vm0, %v2144_v16  ;;  %144 = vst.msk [vmem:[#allocation3 + $0xa8] sm:$0xff] %vm90_vm0, %v2144_v16  ;;  %v2489_v35 = vld [vmem:[%s3782_s1] sm:$0xff]  ;;  %v2495_v37 = vld [vmem:[%s3782_s1 + $0x10] sm:$0xff] }
  0x1e   :  { %145 = vst.msk [vmem:[#allocation3 + $0xb0] sm:$0xff] %vm90_vm0, %v2144_v16  ;;  %146 = vst.msk [vmem:[#allocation3 + $0xb8] sm:$0xff] %vm90_vm0, %v2144_v16  ;;  %411 = vmax.xlane.f32.xlu1 %v2414_v17  ;;  %409 = vmax.xlane.f32.xlu0 %v2419_v18  ;;  %v251_v36 = vand.u32 1073741823, %v2489_v35  ;;  %v2500_v38 = vld [vmem:[%s3782_s1 + $0x8] sm:$0xff]  ;;  %v2507_v41 = vld [vmem:[%s3782_s1 + $0x20] sm:$0xff] }
  0x1f   :  { %147 = vst.msk [vmem:[#allocation3 + $0xc0] sm:$0xff] %vm90_vm0, %v2144_v16  ;;  %148 = vst.msk [vmem:[#allocation3 + $0xc8] sm:$0xff] %vm90_vm0, %v2144_v16  ;;  %v253_v39 = vand.u32 1073741823, %v2495_v37  ;;  %v252_v40 = vand.u32 1073741823, %v2500_v38 }
  0x20   :  { %149 = vst.msk [vmem:[#allocation3 + $0xd0] sm:$0xff] %vm90_vm0, %v2144_v16  ;;  %150 = vst.msk [vmem:[#allocation3 + $0xd8] sm:$0xff] %vm90_vm0, %v2144_v16  ;;  %v2512_v42 = vld [vmem:[%s3782_s1 + $0x18] sm:$0xff]  ;;  %v255_v43 = vand.u32 1073741823, %v2507_v41  ;;  %v2519_v45 = vld [vmem:[%s3782_s1 + $0x28] sm:$0xff] }
  0x21   :  { %151 = vst.msk [vmem:[#allocation3 + $0xe0] sm:$0xff] %vm90_vm0, %v2144_v16  ;;  %152 = vst.msk [vmem:[#allocation3 + $0xe8] sm:$0xff] %vm90_vm0, %v2144_v16  ;;  %v254_v44 = vand.u32 1073741823, %v2512_v42  ;;  %v256_v46 = vand.u32 1073741823, %v2519_v45 }
  0x22   :  { %153 = vst.msk [vmem:[#allocation3 + $0xf0] sm:$0xff] %vm90_vm0, %v2144_v16  ;;  %154 = vst.msk [vmem:[#allocation3 + $0xf8] sm:$0xff] %vm90_vm0, %v2144_v16  ;;  %415 = vmax.xlane.f32.xlu1 %v2426_v19  ;;  %413 = vmax.xlane.f32.xlu0 %v2431_v20  ;;  %v2525_v47 = vld [vmem:[%s3782_s1 + $0x30] sm:$0xff]  ;;  %v2530_v50 = vld [vmem:[#allocation2] sm:$0xff] }
  0x23   :  { %155 = vst.msk [vmem:[#allocation4] sm:$0xff] %vm90_vm0, %v2144_v16  ;;  %156 = vst.msk [vmem:[#allocation4 + $0x8] sm:$0xff] %vm90_vm0, %v2144_v16  ;;  %v257_v48 = vand.u32 1073741823, %v2525_v47  ;;  %v2528_v49 = vld [vmem:[#allocation2 + $0x10] sm:$0xff]  ;;  %v2538_v55 = vld [vmem:[#allocation2 + $0x18] sm:$0xff] }
  0x24   :  { %157 = vst.msk [vmem:[#allocation4 + $0x10] sm:$0xff] %vm90_vm0, %v2144_v16  ;;  %158 = vst.msk [vmem:[#allocation4 + $0x18] sm:$0xff] %vm90_vm0, %v2144_v16  ;;  %v2540_v56 = vld [vmem:[#allocation2 + $0x8] sm:$0xff]  ;;  %v2559_v4 = vld [vmem:[#allocation2 + $0x20] sm:$0xff] }
  0x25   :  { %159 = vst.msk [vmem:[#allocation4 + $0x20] sm:$0xff] %vm90_vm0, %v2144_v16  ;;  %160 = vst.msk [vmem:[#allocation4 + $0x28] sm:$0xff] %vm90_vm0, %v2144_v16  ;;  %v2557_v63 = vld [vmem:[#allocation2 + $0x28] sm:$0xff]  ;;  %v2656_v57 = vld [vmem:[#allocation2 + $0x70] sm:$0xff] }
  0x26   :  { %161 = vst.msk [vmem:[#allocation4 + $0x30] sm:$0xff] %vm90_vm0, %v2144_v16  ;;  %162 = vst.msk [vmem:[#allocation4 + $0x38] sm:$0xff] %vm90_vm0, %v2144_v16  ;;  %419 = vmax.xlane.f32.xlu1 %v2438_v21  ;;  %417 = vmax.xlane.f32.xlu0 %v2443_v22  ;;  %v2674_v58 = vld [vmem:[#allocation2 + $0x88] sm:$0xff] }
  0x27   :  { %163 = vst.msk [vmem:[#allocation4 + $0x40] sm:$0xff] %vm90_vm0, %v2144_v16  ;;  %164 = vst.msk [vmem:[#allocation4 + $0x48] sm:$0xff] %vm90_vm0, %v2144_v16 }
  0x28   :  { %165 = vst.msk [vmem:[#allocation4 + $0x50] sm:$0xff] %vm90_vm0, %v2144_v16  ;;  %166 = vst.msk [vmem:[#allocation4 + $0x58] sm:$0xff] %vm90_vm0, %v2144_v16 }
  0x29   :  { %167 = vst.msk [vmem:[#allocation4 + $0x60] sm:$0xff] %vm90_vm0, %v2144_v16  ;;  %168 = vst.msk [vmem:[#allocation4 + $0x68] sm:$0xff] %vm90_vm0, %v2144_v16 }
  0x2a   :  { %169 = vst.msk [vmem:[#allocation4 + $0x70] sm:$0xff] %vm90_vm0, %v2144_v16  ;;  %170 = vst.msk [vmem:[#allocation4 + $0x78] sm:$0xff] %vm90_vm0, %v2144_v16  ;;  %421 = vmax.xlane.f32.xlu0 %v2450_v23  ;;  %423 = vmax.xlane.f32.xlu1 %v208_v24 }
  0x2b   :  { %171 = vst.msk [vmem:[#allocation4 + $0x80] sm:$0xff] %vm90_vm0, %v2144_v16  ;;  %172 = vst.msk [vmem:[#allocation4 + $0x88] sm:$0xff] %vm90_vm0, %v2144_v16 }
  0x2c   :  { %173 = vst.msk [vmem:[#allocation4 + $0x90] sm:$0xff] %vm90_vm0, %v2144_v16  ;;  %174 = vst.msk [vmem:[#allocation4 + $0x98] sm:$0xff] %vm90_vm0, %v2144_v16 }
  0x2d   :  { %175 = vst.msk [vmem:[#allocation4 + $0xa0] sm:$0xff] %vm90_vm0, %v2144_v16  ;;  %176 = vst.msk [vmem:[#allocation4 + $0xa8] sm:$0xff] %vm90_vm0, %v2144_v16 }
  0x2e   :  { %177 = vst.msk [vmem:[#allocation4 + $0xb0] sm:$0xff] %vm90_vm0, %v2144_v16  ;;  %178 = vst.msk [vmem:[#allocation4 + $0xb8] sm:$0xff] %vm90_vm0, %v2144_v16  ;;  %425 = vmax.xlane.f32.xlu0 %v209_v25  ;;  %427 = vmax.xlane.f32.xlu1 %v210_v26 }
  0x2f   :  { %179 = vst.msk [vmem:[#allocation4 + $0xc0] sm:$0xff] %vm90_vm0, %v2144_v16  ;;  %180 = vst.msk [vmem:[#allocation4 + $0xc8] sm:$0xff] %vm90_vm0, %v2144_v16 }
  0x30   :  { %181 = vst.msk [vmem:[#allocation4 + $0xd0] sm:$0xff] %vm90_vm0, %v2144_v16  ;;  %182 = vst.msk [vmem:[#allocation4 + $0xd8] sm:$0xff] %vm90_vm0, %v2144_v16 }
  0x31   :  { %183 = vst.msk [vmem:[#allocation4 + $0xe0] sm:$0xff] %vm90_vm0, %v2144_v16  ;;  %184 = vst.msk [vmem:[#allocation4 + $0xe8] sm:$0xff] %vm90_vm0, %v2144_v16 }
  0x32   :  { %185 = vst.msk [vmem:[#allocation4 + $0xf0] sm:$0xff] %vm90_vm0, %v2144_v16  ;;  %186 = vst.msk [vmem:[#allocation4 + $0xf8] sm:$0xff] %vm90_vm0, %v2144_v16  ;;  %429 = vmax.xlane.f32.xlu0 %v211_v27  ;;  %431 = vmax.xlane.f32.xlu1 %v212_v28  ;;  %v2576_v28 = vld [vmem:[#allocation2 + $0x38] sm:$0xff] }
  0x33   :  { %3868 = vst [vmem:[#allocation11_spill] sm:$0xff] %v2528_v49  ;;  %3870 = vst [vmem:[#allocation13_spill] sm:$0xff] %v2540_v56 }
  0x34   :  { %3873 = vst [vmem:[#allocation16_spill] sm:$0xff] %v2557_v63  ;;  %3874 = vst [vmem:[#allocation17_spill] sm:$0xff] %v2559_v4 }
  0x35   :  { %3877 = vst [vmem:[#allocation20_spill] sm:$0xff] %v2576_v28  ;;  %3894 = vst [vmem:[#allocation37_spill] sm:$0xff] %v2656_v57 }
  0x36   :  { %433 = vmax.xlane.f32.xlu0 %v213_v29  ;;  %435 = vmax.xlane.f32.xlu1 %v214_v30  ;;  %v2578_v29 = vld [vmem:[#allocation2 + $0x30] sm:$0xff]  ;;  %3897 = vst [vmem:[#allocation40_spill] sm:$0xff] %v2674_v58 }
  0x37   :  { %3878 = vst [vmem:[#allocation21_spill] sm:$0xff] %v2578_v29 }
  0x3a   :  { %437 = vmax.xlane.f32.xlu0 %v215_v31  ;;  %439 = vmax.xlane.f32.xlu1 %v216_v32  ;;  %v2654_v31 = vld [vmem:[#allocation2 + $0x78] sm:$0xff] }
  0x3b   :  { %3893 = vst [vmem:[#allocation36_spill] sm:$0xff] %v2654_v31 }
  0x3e   :  { %441 = vmax.xlane.f32.xlu0 %v217_v33  ;;  %443 = vmax.xlane.f32.xlu1 %v218_v34 }
  0x4f   :  { %1121 = vperm.xlu1 %1868, %v251_v36  }
  0x53   :  { %1127 = vperm.xlu1 %1868, %v253_v39   ;;  %v2595_v39 = vld [vmem:[#allocation2 + $0x48] sm:$0xff] }
  0x54   :  { %1124 = vperm.xlu0 %1869, %v252_v40   ;;  %3881 = vst [vmem:[#allocation24_spill] sm:$0xff] %v2595_v39  ;;  %v2597_v40 = vld [vmem:[#allocation2 + $0x40] sm:$0xff] }
  0x55   :  { %3882 = vst [vmem:[#allocation25_spill] sm:$0xff] %v2597_v40 }
  0x57   :  { %1133 = vperm.xlu1 %1868, %v255_v43   ;;  %v2634_v43 = vld [vmem:[#allocation2 + $0x68] sm:$0xff] }
  0x58   :  { %1130 = vperm.xlu0 %1869, %v254_v44   ;;  %3889 = vst [vmem:[#allocation32_spill] sm:$0xff] %v2634_v43 }
  0x5c   :  { %1136 = vperm.xlu0 %1869, %v256_v46  }
  0x60   :  { %1139 = vperm.xlu0 %1869, %v257_v48  }
  0x8f   :  { %v386_v51 = vpop.xlane.xlu1 %385  ;;  %v382_v52 = vpop.xlane.xlu0 %381 }
  0x90   :  { %v2533_v53 = vmax.f32 %v2528_v49, %v386_v51  ;;  %v2536_v54 = vmax.f32 %v2530_v50, %v382_v52 }
  0x92   :  { %3869 = vst [vmem:[#allocation12_spill] sm:$0xff] %v2533_v53  ;;  %1024 = vst.msk [vmem:[#allocation2 + $0x10] sm:$0xff] %vm90_vm0, %v2533_v53  ;;  %639 = vperm.xlu0 %1869, %v2536_v54  }
  0x93   :  { %1022 = vst.msk [vmem:[#allocation2] sm:$0xff] %vm90_vm0, %v2536_v54  ;;  %v388_v59 = vpop.xlane.xlu1 %387  ;;  %v384_v60 = vpop.xlane.xlu0 %383 }
  0x94   :  { %v2552_v61 = vmax.f32 %v2538_v55, %v388_v59  ;;  %v2555_v62 = vmax.f32 %v2540_v56, %v384_v60  ;;  %v2614_v59 = vld [vmem:[#allocation2 + $0x58] sm:$0xff]  ;;  %v2616_v60 = vld [vmem:[#allocation2 + $0x50] sm:$0xff] }
  0x95   :  { %3885 = vst [vmem:[#allocation28_spill] sm:$0xff] %v2614_v59  ;;  %3886 = vst [vmem:[#allocation29_spill] sm:$0xff] %v2616_v60 }
  0x96   :  { %3871 = vst [vmem:[#allocation14_spill] sm:$0xff] %v2552_v61  ;;  %3872 = vst [vmem:[#allocation15_spill] sm:$0xff] %v2555_v62  ;;  %644 = vperm.xlu1 %1868, %v2555_v62  }
  0x97   :  { %1025 = vst.msk [vmem:[#allocation2 + $0x18] sm:$0xff] %vm90_vm0, %v2552_v61  ;;  %1023 = vst.msk [vmem:[#allocation2 + $0x8] sm:$0xff] %vm90_vm0, %v2555_v62  ;;  %v392_v24 = vpop.xlane.xlu1 %391  ;;  %v390_v25 = vpop.xlane.xlu0 %389 }
  0x98   :  { %v2571_v26 = vmax.f32 %v2557_v63, %v392_v24  ;;  %v2574_v27 = vmax.f32 %v2559_v4, %v390_v25  ;;  %v2636_v24 = vld [vmem:[#allocation2 + $0x60] sm:$0xff] }
  0x99   :  { %3890 = vst [vmem:[#allocation33_spill] sm:$0xff] %v2636_v24 }
  0x9a   :  { %3875 = vst [vmem:[#allocation18_spill] sm:$0xff] %v2571_v26  ;;  %3876 = vst [vmem:[#allocation19_spill] sm:$0xff] %v2574_v27  ;;  %649 = vperm.xlu1 %1868, %v2533_v53  }
  0x9b   :  { %1027 = vst.msk [vmem:[#allocation2 + $0x28] sm:$0xff] %vm90_vm0, %v2571_v26  ;;  %1026 = vst.msk [vmem:[#allocation2 + $0x20] sm:$0xff] %vm90_vm0, %v2574_v27  ;;  %v396_v32 = vpop.xlane.xlu1 %395  ;;  %v394_v33 = vpop.xlane.xlu0 %393 }
  0x9c   :  { %v2590_v34 = vmax.f32 %v2576_v28, %v396_v32  ;;  %v2593_v36 = vmax.f32 %v2578_v29, %v394_v33 }
  0x9e   :  { %3879 = vst [vmem:[#allocation22_spill] sm:$0xff] %v2590_v34  ;;  %3880 = vst [vmem:[#allocation23_spill] sm:$0xff] %v2593_v36  ;;  %654 = vperm.xlu1 %1868, %v2552_v61  }
  0x9f   :  { %1029 = vst.msk [vmem:[#allocation2 + $0x38] sm:$0xff] %vm90_vm0, %v2590_v34  ;;  %1028 = vst.msk [vmem:[#allocation2 + $0x30] sm:$0xff] %vm90_vm0, %v2593_v36  ;;  %v400_v46 = vpop.xlane.xlu1 %399  ;;  %v398_v48 = vpop.xlane.xlu0 %397 }
  0xa0   :  { %v2609_v51 = vmax.f32 %v2595_v39, %v400_v46  ;;  %v2612_v52 = vmax.f32 %v2597_v40, %v398_v48 }
  0xa2   :  { %3883 = vst [vmem:[#allocation26_spill] sm:$0xff] %v2609_v51  ;;  %3884 = vst [vmem:[#allocation27_spill] sm:$0xff] %v2612_v52  ;;  %659 = vperm.xlu1 %1868, %v2574_v27   ;;  %684 = vperm.xlu0 %1869, %v2609_v51  }
  0xa3   :  { %1031 = vst.msk [vmem:[#allocation2 + $0x48] sm:$0xff] %vm90_vm0, %v2609_v51  ;;  %1030 = vst.msk [vmem:[#allocation2 + $0x40] sm:$0xff] %vm90_vm0, %v2612_v52  ;;  %v404_v32 = vpop.xlane.xlu1 %403  ;;  %v402_v33 = vpop.xlane.xlu0 %401  ;;  %v2772_v51 = vld [vmem:[#allocation2 + $0xc8] sm:$0xff] }
  0xa4   :  { %v2629_v46 = vmax.f32 %v2614_v59, %v404_v32  ;;  %v2632_v48 = vmax.f32 %v2616_v60, %v402_v33  ;;  %v2721_v59 = vld [vmem:[#allocation2 + $0xa8] sm:$0xff]  ;;  %3914 = vst [vmem:[#allocation57_spill] sm:$0xff] %v2772_v51 }
  0xa5   :  { %3906 = vst [vmem:[#allocation49_spill] sm:$0xff] %v2721_v59 }
  0xa6   :  { %3887 = vst [vmem:[#allocation30_spill] sm:$0xff] %v2629_v46  ;;  %3888 = vst [vmem:[#allocation31_spill] sm:$0xff] %v2632_v48  ;;  %664 = vperm.xlu1 %1868, %v2571_v26   ;;  %694 = vperm.xlu0 %1869, %v2629_v46   ;;  %v2847_v26 = vld [vmem:[#allocation2 + $0xf8] sm:$0xff] }
  0xa7   :  { %1033 = vst.msk [vmem:[#allocation2 + $0x58] sm:$0xff] %vm90_vm0, %v2629_v46  ;;  %1032 = vst.msk [vmem:[#allocation2 + $0x50] sm:$0xff] %vm90_vm0, %v2632_v48  ;;  %v408_v33 = vpop.xlane.xlu1 %407  ;;  %v406_v25 = vpop.xlane.xlu0 %405  ;;  %v2696_v46 = vld [vmem:[#allocation2 + $0x90] sm:$0xff] }
  0xa8   :  { %v2649_v30 = vmax.f32 %v2634_v43, %v408_v33  ;;  %v2652_v44 = vmax.f32 %v2636_v24, %v406_v25  ;;  %v2676_v43 = vld [vmem:[#allocation2 + $0x80] sm:$0xff]  ;;  %3902 = vst [vmem:[#allocation45_spill] sm:$0xff] %v2696_v46  ;;  %3926 = vst [vmem:[#allocation69_spill] sm:$0xff] %v2847_v26 }
  0xa9   :  { %3898 = vst [vmem:[#allocation41_spill] sm:$0xff] %v2676_v43 }
  0xaa   :  { %3891 = vst [vmem:[#allocation34_spill] sm:$0xff] %v2649_v30  ;;  %3892 = vst [vmem:[#allocation35_spill] sm:$0xff] %v2652_v44  ;;  %669 = vperm.xlu1 %1868, %v2593_v36   ;;  %704 = vperm.xlu0 %1869, %v2649_v30   ;;  %v2822_v36 = vld [vmem:[#allocation2 + $0xe8] sm:$0xff] }
  0xab   :  { %1035 = vst.msk [vmem:[#allocation2 + $0x68] sm:$0xff] %vm90_vm0, %v2649_v30  ;;  %1034 = vst.msk [vmem:[#allocation2 + $0x60] sm:$0xff] %vm90_vm0, %v2652_v44  ;;  %v412_v25 = vpop.xlane.xlu1 %411  ;;  %v410_v32 = vpop.xlane.xlu0 %409 }
  0xac   :  { %v2669_v7 = vmax.f32 %v2654_v31, %v412_v25  ;;  %v2672_v16 = vmax.f32 %v2656_v57, %v410_v32  ;;  %v2694_v31 = vld [vmem:[#allocation2 + $0x98] sm:$0xff]  ;;  %3922 = vst [vmem:[#allocation65_spill] sm:$0xff] %v2822_v36 }
  0xad   :  { %3901 = vst [vmem:[#allocation44_spill] sm:$0xff] %v2694_v31  ;;  %v2711_v25 = vld [vmem:[%s3782_s1 + $0x38] sm:$0xff] }
  0xae   :  { %3895 = vst [vmem:[#allocation38_spill] sm:$0xff] %v2669_v7  ;;  %3896 = vst [vmem:[#allocation39_spill] sm:$0xff] %v2672_v16  ;;  %674 = vperm.xlu1 %1868, %v2590_v34   ;;  %714 = vperm.xlu0 %1869, %v2669_v7   ;;  %v2747_v34 = vld [vmem:[#allocation2 + $0xb8] sm:$0xff] }
  0xaf   :  { %1037 = vst.msk [vmem:[#allocation2 + $0x78] sm:$0xff] %vm90_vm0, %v2669_v7  ;;  %1036 = vst.msk [vmem:[#allocation2 + $0x70] sm:$0xff] %vm90_vm0, %v2672_v16  ;;  %v416_v32 = vpop.xlane.xlu1 %415  ;;  %v414_v33 = vpop.xlane.xlu0 %413 }
  0xb0   :  { %v2689_v24 = vmax.f32 %v2674_v58, %v416_v32  ;;  %v2692_v30 = vmax.f32 %v2676_v43, %v414_v33  ;;  %v2737_v43 = vld [vmem:[%s3782_s1 + $0x40] sm:$0xff]  ;;  %3910 = vst [vmem:[#allocation53_spill] sm:$0xff] %v2747_v34 }
  0xb2   :  { %3899 = vst [vmem:[#allocation42_spill] sm:$0xff] %v2689_v24  ;;  %3900 = vst [vmem:[#allocation43_spill] sm:$0xff] %v2692_v30  ;;  %679 = vperm.xlu1 %1868, %v2612_v52   ;;  %724 = vperm.xlu0 %1869, %v2689_v24   ;;  %v2797_v52 = vld [vmem:[#allocation2 + $0xd8] sm:$0xff] }
  0xb3   :  { %1039 = vst.msk [vmem:[#allocation2 + $0x88] sm:$0xff] %vm90_vm0, %v2689_v24  ;;  %1038 = vst.msk [vmem:[#allocation2 + $0x80] sm:$0xff] %vm90_vm0, %v2692_v30  ;;  %v420_v33 = vpop.xlane.xlu1 %419  ;;  %v418_v7 = vpop.xlane.xlu0 %417  ;;  %v2719_v24 = vld [vmem:[#allocation2 + $0xa0] sm:$0xff] }
  0xb4   :  { %v2714_v58 = vmax.f32 %v2694_v31, %v420_v33  ;;  %v2717_v57 = vmax.f32 %v2696_v46, %v418_v7  ;;  %3905 = vst [vmem:[#allocation48_spill] sm:$0xff] %v2719_v24  ;;  %v258_v33 = vand.u32 1073741823, %v2711_v25  ;;  %v259_v7 = vand.u32 1073741823, %v2737_v43  ;;  %3918 = vst [vmem:[#allocation61_spill] sm:$0xff] %v2797_v52 }
  0xb6   :  { %3903 = vst [vmem:[#allocation46_spill] sm:$0xff] %v2714_v58  ;;  %3904 = vst [vmem:[#allocation47_spill] sm:$0xff] %v2717_v57  ;;  %689 = vperm.xlu1 %1868, %v2632_v48   ;;  %734 = vperm.xlu0 %1869, %v2714_v58   ;;  %v2745_v48 = vld [vmem:[#allocation2 + $0xb0] sm:$0xff] }
  0xb7   :  { %1041 = vst.msk [vmem:[#allocation2 + $0x98] sm:$0xff] %vm90_vm0, %v2714_v58  ;;  %1040 = vst.msk [vmem:[#allocation2 + $0x90] sm:$0xff] %vm90_vm0, %v2717_v57  ;;  %v422_v32 = vpop.xlane.xlu0 %421  ;;  %v424_v31 = vpop.xlane.xlu1 %423 }
  0xb8   :  { %v2740_v60 = vmax.f32 %v2719_v24, %v422_v32  ;;  %v2743_v58 = vmax.f32 %v2721_v59, %v424_v31  ;;  %3909 = vst [vmem:[#allocation52_spill] sm:$0xff] %v2745_v48  ;;  %v2762_v31 = vld [vmem:[%s3782_s1 + $0x48] sm:$0xff]  ;;  %v2770_v24 = vld [vmem:[#allocation2 + $0xc0] sm:$0xff] }
  0xb9   :  { %3913 = vst [vmem:[#allocation56_spill] sm:$0xff] %v2770_v24  ;;  %v260_v32 = vand.u32 1073741823, %v2762_v31 }
  0xba   :  { %3907 = vst [vmem:[#allocation50_spill] sm:$0xff] %v2740_v60  ;;  %3908 = vst [vmem:[#allocation51_spill] sm:$0xff] %v2743_v58  ;;  %699 = vperm.xlu1 %1868, %v2652_v44   ;;  %1142 = vperm.xlu0 %1869, %v258_v33  }
  0xbb   :  { %1042 = vst.msk [vmem:[#allocation2 + $0xa0] sm:$0xff] %vm90_vm0, %v2740_v60  ;;  %1043 = vst.msk [vmem:[#allocation2 + $0xa8] sm:$0xff] %vm90_vm0, %v2743_v58  ;;  %v426_v33 = vpop.xlane.xlu0 %425  ;;  %v428_v44 = vpop.xlane.xlu1 %427 }
  0xbc   :  { %v2765_v28 = vmax.f32 %v2745_v48, %v426_v33  ;;  %v2768_v46 = vmax.f32 %v2747_v34, %v428_v44  ;;  %v2787_v44 = vld [vmem:[%s3782_s1 + $0x50] sm:$0xff] }
  0xbd   :  { %v2795_v48 = vld [vmem:[#allocation2 + $0xd0] sm:$0xff]  ;;  %v261_v33 = vand.u32 1073741823, %v2787_v44 }
  0xbe   :  { %3911 = vst [vmem:[#allocation54_spill] sm:$0xff] %v2765_v28  ;;  %3912 = vst [vmem:[#allocation55_spill] sm:$0xff] %v2768_v46  ;;  %709 = vperm.xlu1 %1868, %v2672_v16   ;;  %1145 = vperm.xlu0 %1869, %v259_v7  }
  0xbf   :  { %1044 = vst.msk [vmem:[#allocation2 + $0xb0] sm:$0xff] %vm90_vm0, %v2765_v28  ;;  %1045 = vst.msk [vmem:[#allocation2 + $0xb8] sm:$0xff] %vm90_vm0, %v2768_v46  ;;  %v430_v7 = vpop.xlane.xlu0 %429  ;;  %v432_v16 = vpop.xlane.xlu1 %431 }
  0xc0   :  { %v2790_v39 = vmax.f32 %v2770_v24, %v430_v7  ;;  %v2793_v59 = vmax.f32 %v2772_v51, %v432_v16  ;;  %3917 = vst [vmem:[#allocation60_spill] sm:$0xff] %v2795_v48  ;;  %v2812_v16 = vld [vmem:[%s3782_s1 + $0x58] sm:$0xff]  ;;  %v2820_v24 = vld [vmem:[#allocation2 + $0xe0] sm:$0xff] }
  0xc1   :  { %3921 = vst [vmem:[#allocation64_spill] sm:$0xff] %v2820_v24  ;;  %v262_v7 = vand.u32 1073741823, %v2812_v16 }
  0xc2   :  { %3915 = vst [vmem:[#allocation58_spill] sm:$0xff] %v2790_v39  ;;  %3916 = vst [vmem:[#allocation59_spill] sm:$0xff] %v2793_v59  ;;  %719 = vperm.xlu1 %1868, %v2692_v30   ;;  %1148 = vperm.xlu0 %1869, %v260_v32  }
  0xc3   :  { %1046 = vst.msk [vmem:[#allocation2 + $0xc0] sm:$0xff] %vm90_vm0, %v2790_v39  ;;  %1047 = vst.msk [vmem:[#allocation2 + $0xc8] sm:$0xff] %vm90_vm0, %v2793_v59  ;;  %v434_v32 = vpop.xlane.xlu0 %433  ;;  %v436_v30 = vpop.xlane.xlu1 %435 }
  0xc4   :  { %v2815_v40 = vmax.f32 %v2795_v48, %v434_v32  ;;  %v2818_v34 = vmax.f32 %v2797_v52, %v436_v30  ;;  %v2837_v30 = vld [vmem:[%s3782_s1 + $0x60] sm:$0xff]  ;;  %v2845_v48 = vld [vmem:[#allocation2 + $0xf0] sm:$0xff] }
  0xc5   :  { %3925 = vst [vmem:[#allocation68_spill] sm:$0xff] %v2845_v48  ;;  %v263_v32 = vand.u32 1073741823, %v2837_v30 }
  0xc6   :  { %3919 = vst [vmem:[#allocation62_spill] sm:$0xff] %v2815_v40  ;;  %3920 = vst [vmem:[#allocation63_spill] sm:$0xff] %v2818_v34  ;;  %729 = vperm.xlu1 %1868, %v2717_v57   ;;  %1151 = vperm.xlu0 %1869, %v261_v33  }
  0xc7   :  { %1048 = vst.msk [vmem:[#allocation2 + $0xd0] sm:$0xff] %vm90_vm0, %v2815_v40  ;;  %1049 = vst.msk [vmem:[#allocation2 + $0xd8] sm:$0xff] %vm90_vm0, %v2818_v34  ;;  %v438_v33 = vpop.xlane.xlu0 %437  ;;  %v440_v57 = vpop.xlane.xlu1 %439 }
  0xc8   :  { %v2840_v29 = vmax.f32 %v2820_v24, %v438_v33  ;;  %v2843_v51 = vmax.f32 %v2822_v36, %v440_v57  ;;  %v2862_v57 = vld [vmem:[%s3782_s1 + $0x68] sm:$0xff]  ;;  %v2897_v36 = vld [vmem:[%s3782_s1 + $0x80] sm:$0xff] }
  0xc9   :  { %3927 = vst [vmem:[#allocation70_spill] sm:$0xff] %v2862_v57  ;;  %v264_v33 = vand.u32 1073741823, %v2862_v57  ;;  %3932 = vst [vmem:[#allocation75_spill] sm:$0xff] %v2897_v36 }
  0xca   :  { %3923 = vst [vmem:[#allocation66_spill] sm:$0xff] %v2840_v29  ;;  %3924 = vst [vmem:[#allocation67_spill] sm:$0xff] %v2843_v51  ;;  %739 = vperm.xlu1 %1868, %v2740_v60   ;;  %1154 = vperm.xlu0 %1869, %v262_v7  }
  0xcb   :  { %1050 = vst.msk [vmem:[#allocation2 + $0xe0] sm:$0xff] %vm90_vm0, %v2840_v29  ;;  %1051 = vst.msk [vmem:[#allocation2 + $0xe8] sm:$0xff] %vm90_vm0, %v2843_v51  ;;  %v442_v7 = vpop.xlane.xlu0 %441  ;;  %v444_v60 = vpop.xlane.xlu1 %443 }
  0xcc   :  { %v2865_v63 = vmax.f32 %v2845_v48, %v442_v7  ;;  %v2868_v52 = vmax.f32 %v2847_v26, %v444_v60  ;;  %v2883_v60 = vld [vmem:[%s3782_s1 + $0x70] sm:$0xff]  ;;  %v2890_v7 = vld [vmem:[%s3782_s1 + $0x78] sm:$0xff]  ;;  %v2904_v26 = vld [vmem:[%s3782_s1 + $0x88] sm:$0xff] }
  0xcd   :  { %3930 = vst [vmem:[#allocation73_spill] sm:$0xff] %v2883_v60  ;;  %3931 = vst [vmem:[#allocation74_spill] sm:$0xff] %v2890_v7  ;;  %v266_v24 = vand.u32 1073741823, %v2890_v7  ;;  %v2911_v48 = vld [vmem:[%s3782_s1 + $0x98] sm:$0xff] }
  0xce   :  { %3928 = vst [vmem:[#allocation71_spill] sm:$0xff] %v2865_v63  ;;  %3929 = vst [vmem:[#allocation72_spill] sm:$0xff] %v2868_v52  ;;  %744 = vperm.xlu1 %1868, %v2743_v58   ;;  %1157 = vperm.xlu0 %1869, %v263_v32   ;;  %v265_v32 = vand.u32 1073741823, %v2883_v60  ;;  %v2975_v58 = vld [vmem:[%s3782_s1 + $0xd0] sm:$0xff] }
  0xcf   :  { %1052 = vst.msk [vmem:[#allocation2 + $0xf0] sm:$0xff] %vm90_vm0, %v2865_v63  ;;  %1053 = vst.msk [vmem:[#allocation2 + $0xf8] sm:$0xff] %vm90_vm0, %v2868_v52 }
  0xd0   :  { %3933 = vst [vmem:[#allocation76_spill] sm:$0xff] %v2904_v26  ;;  %3934 = vst [vmem:[#allocation77_spill] sm:$0xff] %v2911_v48 }
  0xd1   :  { %3943 = vst [vmem:[#allocation86_spill] sm:$0xff] %v2975_v58 }
  0xd2   :  { %749 = vperm.xlu1 %1868, %v2765_v28   ;;  %1160 = vperm.xlu0 %1869, %v264_v33   ;;  %v267_v33 = vand.u32 1073741823, %v2897_v36  ;;  %v2969_v28 = vld [vmem:[%s3782_s1 + $0xc0] sm:$0xff] }
  0xd3   :  { %3942 = vst [vmem:[#allocation85_spill] sm:$0xff] %v2969_v28 }
  0xd6   :  { %754 = vperm.xlu1 %1868, %v2768_v46   ;;  %1163 = vperm.xlu0 %1869, %v265_v32   ;;  %v268_v32 = vand.u32 1073741823, %v2904_v26  ;;  %v2955_v46 = vpop.permute.xlu0 %1124 }
  0xda   :  { %759 = vperm.xlu1 %1868, %v2790_v39   ;;  %1166 = vperm.xlu0 %1869, %v266_v24   ;;  %v270_v24 = vand.u32 1073741823, %v2911_v48  ;;  %v2918_v39 = vld [vmem:[%s3782_s1 + $0xa8] sm:$0xff] }
  0xdb   :  { %3935 = vst [vmem:[#allocation78_spill] sm:$0xff] %v2918_v39 }
  0xde   :  { %764 = vperm.xlu1 %1868, %v2793_v59   ;;  %1169 = vperm.xlu0 %1869, %v267_v33   ;;  %v272_v33 = vand.u32 1073741823, %v2918_v39  ;;  %v2925_v59 = vld [vmem:[%s3782_s1 + $0xb8] sm:$0xff] }
  0xdf   :  { %3936 = vst [vmem:[#allocation79_spill] sm:$0xff] %v2925_v59 }
  0xe2   :  { %769 = vperm.xlu1 %1868, %v2815_v40   ;;  %1172 = vperm.xlu0 %1869, %v268_v32   ;;  %v274_v32 = vand.u32 1073741823, %v2925_v59  ;;  %v2932_v40 = vld [vmem:[%s3782_s1 + $0xc8] sm:$0xff] }
  0xe3   :  { %3937 = vst [vmem:[#allocation80_spill] sm:$0xff] %v2932_v40 }
  0xe6   :  { %774 = vperm.xlu1 %1868, %v2818_v34   ;;  %1178 = vperm.xlu0 %1869, %v270_v24   ;;  %v276_v24 = vand.u32 1073741823, %v2932_v40  ;;  %v2939_v34 = vld [vmem:[%s3782_s1 + $0xd8] sm:$0xff]  ;;  %v277_v40 = vand.u32 1073741823, %v2975_v58 }
  0xe7   :  { %3938 = vst [vmem:[#allocation81_spill] sm:$0xff] %v2939_v34 }
  0xea   :  { %779 = vperm.xlu1 %1868, %v2840_v29   ;;  %1184 = vperm.xlu0 %1869, %v272_v33   ;;  %v278_v33 = vand.u32 1073741823, %v2939_v34  ;;  %v2946_v29 = vld [vmem:[%s3782_s1 + $0x90] sm:$0xff]  ;;  %v2977_v34 = vpop.permute.xlu1 %1121 }
  0xeb   :  { %3939 = vst [vmem:[#allocation82_spill] sm:$0xff] %v2946_v29 }
  0xee   :  { %784 = vperm.xlu1 %1868, %v2843_v51   ;;  %1190 = vperm.xlu0 %1869, %v274_v32   ;;  %v269_v32 = vand.u32 1073741823, %v2946_v29  ;;  %v2953_v51 = vld [vmem:[%s3782_s1 + $0xa0] sm:$0xff]  ;;  %v2982_v59 = vpop.permute.xlu1 %1127 }
  0xef   :  { %3940 = vst [vmem:[#allocation83_spill] sm:$0xff] %v2953_v51 }
  0xf2   :  { %789 = vperm.xlu1 %1868, %v2865_v63   ;;  %1196 = vperm.xlu0 %1869, %v276_v24   ;;  %v271_v24 = vand.u32 1073741823, %v2953_v51  ;;  %v2961_v63 = vld [vmem:[%s3782_s1 + $0xb0] sm:$0xff] }
  0xf3   :  { %3941 = vst [vmem:[#allocation84_spill] sm:$0xff] %v2961_v63 }
  0xf6   :  { %794 = vperm.xlu1 %1868, %v2868_v52   ;;  %1202 = vperm.xlu0 %1869, %v278_v33   ;;  %v273_v33 = vand.u32 1073741823, %v2961_v63  ;;  %v2964_v52 = vpop.permute.xlu0 %1130 }
  0xfa   :  { %1175 = vperm.xlu1 %1868, %v269_v32   ;;  %v275_v32 = vand.u32 1073741823, %v2969_v28 }
  0xfe   :  { %1181 = vperm.xlu1 %1868, %v271_v24   ;;  %v2979_v24 = vpop.permute.xlu0 %1136 }
 0x102   :  { %1187 = vperm.xlu1 %1868, %v273_v33   ;;  %v2984_v63 = vpop.permute.xlu0 %1139  ;;  %v2986_v33 = vpop.permute.xlu1 %1133 }
 0x106   :  { %1193 = vperm.xlu1 %1868, %v275_v32  }
 0x10a   :  { %1199 = vperm.xlu1 %1868, %v277_v40  }
 0x111   :  { %v640_v28 = vpop.permute.xlu0 %639 }
 0x112   :  { %v797_v39 = vsub.f32 %v2175_v1, %v640_v28 }
 0x114   :  { %v829_v51 = vmul.f32 1.442695, %v797_v39 }
 0x115   :  { %v645_v48 = vpop.permute.xlu1 %644 }
 0x116   :  { %1870 = vpow2.f32 %v829_v51  ;;  %v798_v26 = vsub.f32 %v2187_v3, %v645_v48 }
 0x118   :  { %v831_v58 = vmul.f32 1.442695, %v798_v26 }
 0x119   :  { %v650_v29 = vpop.permute.xlu1 %649 }
 0x11a   :  { %v799_v40 = vsub.f32 %v2170_v0, %v650_v29 }
 0x11c   :  { %v833_v60 = vmul.f32 1.442695, %v799_v40 }
 0x11d   :  { %v655_v36 = vpop.permute.xlu1 %654 }
 0x11e   :  { %v800_v32 = vsub.f32 %v2182_v2, %v655_v36 }
 0x120   :  { %v1871_v7 = vpop.eup %1870  ;;  %v835_v27 = vmul.f32 1.442695, %v800_v32 }
 0x121   :  { %v660_v4 = vpop.permute.xlu1 %659  ;;  %893 = vadd.xlane.f32.xlu0 %v1871_v7  ;;  %v685_v36 = vpop.permute.xlu0 %684  ;;  %v3001_v7 = vld [vmem:[%s3782_s1 + $0xf0] sm:$0xff] }
 0x122   :  { %1872 = vpow2.f32 %v835_v27  ;;  %v801_v1 = vsub.f32 %v2199_v6, %v660_v4  ;;  %3944 = vst [vmem:[#allocation87_spill] sm:$0xff] %v3001_v7 }
 0x123   :  { %1874 = vpow2.f32 %v831_v58 }
 0x124   :  { %1876 = vpow2.f32 %v833_v60  ;;  %v837_v39 = vmul.f32 1.442695, %v801_v1  ;;  %v281_v1 = vand.u32 1073741823, %v3001_v7 }
 0x125   :  { %v665_v28 = vpop.permute.xlu1 %664  ;;  %v2994_v58 = vpop.permute.xlu0 %694 }
 0x126   :  { %v802_v3 = vsub.f32 %v2194_v5, %v665_v28  ;;  %1878 = vpow2.f32 %v837_v39  ;;  %v3013_v39 = vld [vmem:[%s3782_s1 + $0xe0] sm:$0xff] }
 0x127   :  { %3945 = vst [vmem:[#allocation88_spill] sm:$0xff] %v3013_v39 }
 0x128   :  { %v839_v2 = vmul.f32 1.442695, %v802_v3 }
 0x129   :  { %v670_v51 = vpop.permute.xlu1 %669  ;;  %v2996_v48 = vpop.permute.xlu0 %704 }
 0x12a   :  { %1880 = vpow2.f32 %v839_v2  ;;  %v279_v2 = vand.u32 1073741823, %v3013_v39 }
 0x12c   :  { %v1873_v26 = vpop.eup %1872 }
 0x12d   :  { %v1875_v0 = vpop.eup %1874  ;;  %v675_v29 = vpop.permute.xlu1 %674  ;;  %899 = vadd.xlane.f32.xlu0 %v1873_v26  ;;  %v3021_v26 = vld [vmem:[%s3782_s1 + $0xe8] sm:$0xff] }
 0x12e   :  { %895 = vadd.xlane.f32.xlu1 %v1875_v0  ;;  %v1877_v27 = vpop.eup %1876  ;;  %v3003_v32 = vpop.permute.xlu0 %714  ;;  %3946 = vst [vmem:[#allocation89_spill] sm:$0xff] %v3021_v26 }
 0x130   :  { %v1879_v4 = vpop.eup %1878 }
 0x131   :  { %v680_v6 = vpop.permute.xlu1 %679 }
 0x132   :  { %897 = vadd.xlane.f32.xlu1 %v1877_v27  ;;  %v3008_v28 = vpop.permute.xlu0 %724  ;;  %v805_v57 = vsub.f32 %v2255_v11, %v680_v6 }
 0x134   :  { %v1881_v5 = vpop.eup %1880 }
 0x135   :  { %v690_v60 = vpop.permute.xlu1 %689 }
 0x136   :  { %901 = vadd.xlane.f32.xlu1 %v1879_v4  ;;  %v3023_v0 = vpop.permute.xlu0 %734  ;;  %v280_v4 = vand.u32 1073741823, %v3021_v26  ;;  %v845_v26 = vmul.f32 1.442695, %v805_v57 }
 0x139   :  { %v3005_v40 = vpop.permute.xlu1 %699 }
 0x13a   :  { %903 = vadd.xlane.f32.xlu1 %v1881_v5  ;;  %v3031_v5 = vld [vmem:[%s3782_s1 + $0xf8] sm:$0xff]  ;;  %v3035_v39 = vpop.permute.xlu0 %1142 }
 0x13b   :  { %3947 = vst [vmem:[#allocation90_spill] sm:$0xff] %v3031_v5  ;;  %v282_v7 = vand.u32 1073741823, %v3031_v5 }
 0x13d   :  { %v3015_v3 = vpop.permute.xlu1 %709 }
 0x141   :  { %v3025_v27 = vpop.permute.xlu1 %719 }
 0x143   :  { %1211 = vperm.xlu0 %1869, %v281_v1   ;;  %v803_v1 = vsub.f32 %v2243_v9, %v670_v51  ;;  %v347_v51 = vlaneseq }
 0x145   :  { %v3037_v53 = vpop.permute.xlu1 %729  ;;  %v841_v49 = vmul.f32 1.442695, %v803_v1  ;;  %v3049_v61 = vand.u32 127, %v347_v51 }
 0x147   :  { %1882 = vpow2.f32 %v841_v49  ;;  %v804_v49 = vsub.f32 %v2238_v8, %v675_v29  ;;  %vm1216_vm1 = vcmp.eq.s32.totalorder %v3049_v61, %v2977_v34  ;;  %vm1217_vm2 = vcmp.eq.s32.totalorder %v3049_v61, %v2955_v46 }
 0x148   :  { %1884 = vpow2.f32 %v845_v26  ;;  %v808_v8 = vsub.f32 %v2262_v12, %v2994_v58  ;;  %v809_v46 = vsub.f32 %v2279_v15, %v3005_v40  ;;  %vm1218_vm3 = vcmp.eq.s32.totalorder %v3049_v61, %v2982_v59  ;;  %v2065_v40 = vld [vmem:[%s3781_s0 + $0x18] sm:$0xff] }
 0x149   :  { %v3042_v62 = vpop.permute.xlu1 %739  ;;  %v810_v12 = vsub.f32 %v2274_v14, %v2996_v48  ;;  %vm1219_vm4 = vcmp.eq.s32.totalorder %v3049_v61, %v2964_v52  ;;  %v811_v14 = vsub.f32 %v2419_v18, %v3015_v3  ;;  %v284_v48 = vshra.s32 %v2500_v38, 30 }
 0x14a   :  { %v853_v58 = vmul.f32 1.442695, %v809_v46  ;;  %vm1220_vm5 = vcmp.eq.s32.totalorder %v3049_v61, %v2986_v33  ;;  %v812_v18 = vsub.f32 %v2414_v17, %v3003_v32  ;;  %v285_v46 = vshra.s32 %v2495_v37, 30  ;;  %v2067_v37 = vld [vmem:[%s3781_s0 + $0x28] sm:$0xff] }
 0x14b   :  { %1205 = vperm.xlu1 %1868, %v279_v2   ;;  %v3040_v2 = vpop.permute.xlu0 %1145  ;;  %v855_v59 = vmul.f32 1.442695, %v810_v12  ;;  %v857_v38 = vmul.f32 1.442695, %v811_v14  ;;  %v3107_v3 = vcvt.s32.f32 %v284_v48  ;;  %vm1221_vm6 = vcmp.eq.s32.totalorder %v3049_v61, %v2979_v24 }
 0x14c   :  { %v813_v12 = vsub.f32 %v2431_v20, %v3025_v27  ;;  %v1253_v24 = vsel %vm1221_vm6, %v2067_v37, 0.0  ;;  %vm1222_vm7 = vcmp.eq.s32.totalorder %v3049_v61, %v2984_v63  ;;  %v814_v27 = vsub.f32 %v2426_v19, %v3008_v28 }
 0x14d   :  { %v3046_v9 = vpop.permute.xlu1 %744  ;;  %v1745_v17 = vsel %vm90_vm0, %v3107_v3, 0.0  ;;  %v287_v63 = vshra.s32 %v2507_v41, 30  ;;  %vm1223_vm8 = vcmp.eq.s32.totalorder %v3049_v61, %v3035_v39  ;;  %v2069_v41 = vld [vmem:[%s3781_s0 + $0x38] sm:$0xff]  ;;  %vm1224_vm9 = vcmp.eq.s32.totalorder %v3049_v61, %v3040_v2 }
 0x14e   :  { %v861_v48 = vmul.f32 1.442695, %v813_v12  ;;  %v863_v28 = vmul.f32 1.442695, %v814_v27  ;;  %v1255_v39 = vsel %vm1223_vm8, %v2069_v41, 0.0 }
 0x14f   :  { %1208 = vperm.xlu1 %1868, %v280_v4   ;;  %v3044_v56 = vpop.permute.xlu0 %1148  ;;  %v806_v4 = vsub.f32 %v2250_v10, %v685_v36  ;;  %v807_v10 = vsub.f32 %v2267_v13, %v690_v60  ;;  %v2063_v13 = vld [vmem:[%s3781_s0 + $0x8] sm:$0xff] }
 0x150   :  { %v1249_v29 = vsel %vm1217_vm2, %v2063_v13, 0.0  ;;  %vm1225_vm10 = vcmp.eq.s32.totalorder %v3049_v61, %v3044_v56  ;;  %v290_v56 = vshra.s32 %v2711_v25, 30 }
 0x151   :  { %v1883_v5 = vpop.eup %1882  ;;  %v847_v11 = vmul.f32 1.442695, %v806_v4  ;;  %v3053_v6 = vpop.permute.xlu1 %749  ;;  %v849_v34 = vmul.f32 1.442695, %v807_v10  ;;  %v2064_v10 = vld [vmem:[%s3781_s0 + $0x10] sm:$0xff] }
 0x152   :  { %v1885_v57 = vpop.eup %1884 }
 0x153   :  { %1214 = vperm.xlu1 %1868, %v282_v7   ;;  %v3051_v1 = vpop.permute.xlu0 %1151  ;;  %1886 = vpow2.f32 %v847_v11  ;;  %v843_v7 = vmul.f32 1.442695, %v804_v49  ;;  %v851_v11 = vmul.f32 1.442695, %v808_v8 }
 0x154   :  { %vm1226_vm11 = vcmp.eq.s32.totalorder %v3049_v61, %v3051_v1  ;;  %v2073_v1 = vld [vmem:[%s3781_s0 + $0x50] sm:$0xff] }
 0x155   :  { %v3061_v26 = vpop.permute.xlu1 %754  ;;  %1888 = vpow2.f32 %v843_v7 }
 0x156   :  { %1890 = vpow2.f32 %v849_v34  ;;  %v283_v34 = vshra.s32 %v2489_v35, 30  ;;  %v2066_v35 = vld [vmem:[%s3781_s0 + $0x20] sm:$0xff] }
 0x157   :  { %v3059_v36 = vpop.permute.xlu0 %1154  ;;  %1892 = vpow2.f32 %v851_v11 }
 0x158   :  { %1894 = vpow2.f32 %v853_v58  ;;  %v3112_v33 = vcvt.s32.f32 %v283_v34  ;;  %vm1227_vm12 = vcmp.eq.s32.totalorder %v3049_v61, %v3059_v36  ;;  %v2075_v36 = vld [vmem:[%s3781_s0 + $0x58] sm:$0xff] }
 0x159   :  { %v3075_v4 = vpop.permute.xlu1 %759  ;;  %1896 = vpow2.f32 %v855_v59  ;;  %v3131_v59 = vcvt.s32.f32 %v285_v46  ;;  %v3159_v46 = vcvt.s32.f32 %v287_v63  ;;  %v3200_v63 = vld [vmem:[%s3781_s0 + $0xa8] sm:$0xff] }
 0x15a   :  { %v1744_v32 = vsel %vm90_vm0, %v3112_v33, 0.0  ;;  %1898 = vpow2.f32 %v857_v38  ;;  %v818_v25 = vsub.f32 %v3200_v63, %v3046_v9 }
 0x15b   :  { %v3073_v60 = vpop.permute.xlu0 %1157  ;;  %v1746_v14 = vadd.f32 %v1745_v17, %v1744_v32  ;;  %v1747_v20 = vsel %vm90_vm0, %v3131_v59, 0.0  ;;  %v1751_v32 = vsel %vm90_vm0, %v3159_v46, 0.0 }
 0x15c   :  { %v871_v9 = vmul.f32 1.442695, %v818_v25  ;;  %vm1228_vm13 = vcmp.eq.s32.totalorder %v3049_v61, %v3073_v60 }
 0x15d   :  { %v1887_v49 = vpop.eup %1886  ;;  %v3085_v7 = vpop.permute.xlu1 %764 }
 0x15f   :  { %v1889_v15 = vpop.eup %1888 }
 0x160   :  { %v1891_v8 = vpop.eup %1890 }
 0x161   :  { %v3103_v13 = vpop.permute.xlu1 %769  ;;  %v1893_v11 = vpop.eup %1892 }
 0x162   :  { %905 = vadd.xlane.f32.xlu0 %v1883_v5  ;;  %v2062_v5 = vld [vmem:[%s3781_s0] sm:$0xff] }
 0x163   :  { %v1248_v51 = vsel %vm1216_vm1, %v2062_v5, 0.0  ;;  %v1250_v5 = vsel %vm1218_vm3, %v2064_v10, 0.0 }
 0x165   :  { %v3125_v10 = vpop.permute.xlu1 %774 }
 0x166   :  { %909 = vadd.xlane.f32.xlu0 %v1885_v57  ;;  %v3083_v57 = vpop.permute.xlu0 %1160 }
 0x167   :  { %vm1229_vm14 = vcmp.eq.s32.totalorder %v3049_v61, %v3083_v57 }
 0x169   :  { %v3149_v38 = vpop.permute.xlu1 %779 }
 0x16a   :  { %1280 = vadd.xlane.f32.xlu0 %v1248_v51  ;;  %v1251_v51 = vsel %vm1219_vm4, %v2065_v40, 0.0  ;;  %v3101_v52 = vpop.permute.xlu0 %1163 }
 0x16b   :  { %vm1230_vm15 = vcmp.eq.s32.totalorder %v3049_v61, %v3101_v52  ;;  %v2081_v52 = vld [vmem:[%s3781_s0 + $0x70] sm:$0xff] }
 0x16d   :  { %v3169_v12 = vpop.permute.xlu1 %784 }
 0x16e   :  { %1282 = vadd.xlane.f32.xlu0 %v1249_v29  ;;  %v1252_v29 = vsel %vm1220_vm5, %v2066_v35, 0.0  ;;  %v3123_v58 = vpop.permute.xlu0 %1166  ;;  %v815_v35 = vsub.f32 %v2443_v22, %v3037_v53  ;;  %v816_v22 = vsub.f32 %v2438_v21, %v3023_v0 }
 0x16f   :  { %vm1231_vm1 = vcmp.eq.s32.totalorder %v3049_v61, %v3123_v58 }
 0x170   :  { %v865_v53 = vmul.f32 1.442695, %v815_v35  ;;  %v291_v35 = vshra.s32 %v2737_v43, 30 }
 0x172   :  { %911 = vadd.xlane.f32.xlu0 %v1887_v49  ;;  %v859_v49 = vmul.f32 1.442695, %v812_v18  ;;  %v3147_v34 = vpop.permute.xlu0 %1169  ;;  %v1748_v18 = vadd.f32 %v1747_v20, %v1746_v14  ;;  %v817_v14 = vsub.f32 %v2450_v23, %v3042_v62  ;;  %v2071_v20 = vld [vmem:[%s3781_s0 + $0x48] sm:$0xff] }
 0x173   :  { %v1257_v27 = vsel %vm1225_vm10, %v2071_v20, 0.0  ;;  %vm1232_vm2 = vcmp.eq.s32.totalorder %v3049_v61, %v3147_v34 }
 0x174   :  { %1900 = vpow2.f32 %v859_v49  ;;  %v869_v62 = vmul.f32 1.442695, %v817_v14  ;;  %v293_v14 = vshra.s32 %v2787_v44, 30  ;;  %v3262_v44 = vld [vmem:[%s3781_s0 + $0xc0] sm:$0xff] }
 0x175   :  { %1902 = vpow2.f32 %v861_v48  ;;  %v821_v57 = vsub.f32 %v3262_v44, %v3075_v4 }
 0x176   :  { %1284 = vadd.xlane.f32.xlu0 %v1250_v5  ;;  %v1895_v5 = vpop.eup %1894  ;;  %1904 = vpow2.f32 %v863_v28  ;;  %v3167_v49 = vpop.permute.xlu0 %1172  ;;  %v3207_v28 = vcvt.s32.f32 %v290_v56  ;;  %v3269_v25 = vcvt.s32.f32 %v293_v14 }
 0x177   :  { %907 = vadd.xlane.f32.xlu1 %v1889_v15  ;;  %v286_v15 = vshra.s32 %v2512_v42, 30  ;;  %v2068_v42 = vld [vmem:[%s3781_s0 + $0x30] sm:$0xff]  ;;  %1906 = vpow2.f32 %v865_v53  ;;  %v3228_v53 = vcvt.s32.f32 %v291_v35  ;;  %v877_v4 = vmul.f32 1.442695, %v821_v57  ;;  %v3279_v35 = vld [vmem:[%s3781_s0 + $0xc8] sm:$0xff] }
 0x178   :  { %v1254_v40 = vsel %vm1222_vm7, %v2068_v42, 0.0  ;;  %vm1233_vm3 = vcmp.eq.s32.totalorder %v3049_v61, %v3167_v49  ;;  %v3959_v49 = vld [vmem:[#allocation17_spill] sm:$0xff] }
 0x17a   :  { %1286 = vadd.xlane.f32.xlu0 %v1251_v51  ;;  %v1897_v51 = vpop.eup %1896  ;;  %v3191_v42 = vpop.permute.xlu0 %1178 }
 0x17b   :  { %913 = vadd.xlane.f32.xlu1 %v1891_v8  ;;  %v3142_v8 = vcvt.s32.f32 %v286_v15  ;;  %v867_v15 = vmul.f32 1.442695, %v816_v22  ;;  %vm1235_vm5 = vcmp.eq.s32.totalorder %v3049_v61, %v3191_v42 }
 0x17d   :  { %v1749_v19 = vsel %vm90_vm0, %v3142_v8, 0.0  ;;  %1908 = vpow2.f32 %v867_v15 }
 0x17e   :  { %1288 = vadd.xlane.f32.xlu0 %v1252_v29  ;;  %v1899_v29 = vpop.eup %1898  ;;  %v1750_v17 = vadd.f32 %v1749_v19, %v1748_v18  ;;  %v1258_v18 = vsel %vm1226_vm11, %v2073_v1, 0.0  ;;  %1910 = vpow2.f32 %v869_v62  ;;  %v3221_v43 = vpop.permute.xlu0 %1184  ;;  %v294_v1 = vshra.s32 %v2812_v16, 30 }
 0x17f   :  { %915 = vadd.xlane.f32.xlu1 %v1893_v11  ;;  %v288_v11 = vshra.s32 %v2519_v45, 30  ;;  %v2070_v45 = vld [vmem:[%s3781_s0 + $0x40] sm:$0xff]  ;;  %v1901_v37 = vpop.eup %1900  ;;  %1912 = vpow2.f32 %v871_v9  ;;  %vm1237_vm7 = vcmp.eq.s32.totalorder %v3049_v61, %v3221_v43 }
 0x180   :  { %v1256_v2 = vsel %vm1224_vm9, %v2070_v45, 0.0  ;;  %v1752_v21 = vadd.f32 %v1751_v32, %v1750_v17  ;;  %v1259_v17 = vsel %vm1227_vm12, %v2075_v36, 0.0  ;;  %v292_v45 = vshra.s32 %v2762_v31, 30 }
 0x181   :  { %v3290_v36 = vcvt.s32.f32 %v294_v1  ;;  %v1269_v43 = vsel %vm1237_vm7, %v3200_v63, 0.0 }
 0x182   :  { %1290 = vadd.xlane.f32.xlu0 %v1253_v24  ;;  %v3174_v24 = vcvt.s32.f32 %v288_v11  ;;  %v3248_v15 = vcvt.s32.f32 %v292_v45  ;;  %v3253_v20 = vpop.permute.xlu0 %1190 }
 0x183   :  { %917 = vadd.xlane.f32.xlu1 %v1895_v5  ;;  %v289_v5 = vshra.s32 %v2525_v47, 30  ;;  %v1903_v47 = vpop.eup %1902  ;;  %vm1239_vm9 = vcmp.eq.s32.totalorder %v3049_v61, %v3253_v20  ;;  %v3971_v20 = vld [vmem:[#allocation78_spill] sm:$0xff] }
 0x184   :  { %v1753_v0 = vsel %vm90_vm0, %v3174_v24, 0.0  ;;  %v1905_v19 = vpop.eup %1904 }
 0x185   :  { %v3186_v48 = vcvt.s32.f32 %v289_v5  ;;  %v1907_v22 = vpop.eup %1906  ;;  %v1759_v5 = vsel %vm90_vm0, %v3228_v53, 0.0 }
 0x186   :  { %1292 = vadd.xlane.f32.xlu0 %v1254_v40  ;;  %v1754_v40 = vadd.f32 %v1753_v0, %v1752_v21  ;;  %v3241_v0 = vld [vmem:[%s3781_s0 + $0xb8] sm:$0xff]  ;;  %v3283_v16 = vpop.permute.xlu0 %1196 }
 0x187   :  { %919 = vadd.xlane.f32.xlu1 %v1897_v51  ;;  %v3193_v51 = vpop.permute.xlu1 %789  ;;  %v1755_v23 = vsel %vm90_vm0, %v3186_v48, 0.0  ;;  %v820_v31 = vsub.f32 %v3241_v0, %v3061_v26  ;;  %v1909_v60 = vpop.eup %1908  ;;  %v1761_v26 = vsel %vm90_vm0, %v3248_v15, 0.0  ;;  %vm1241_vm12 = vcmp.eq.s32.totalorder %v3049_v61, %v3283_v16 }
 0x188   :  { %v1756_v41 = vadd.f32 %v1755_v23, %v1754_v40  ;;  %v2079_v40 = vld [vmem:[%s3781_s0 + $0x68] sm:$0xff]  ;;  %v1911_v62 = vpop.eup %1910 }
 0x189   :  { %v875_v56 = vmul.f32 1.442695, %v820_v31  ;;  %v1261_v23 = vsel %vm1229_vm14, %v2079_v40, 0.0  ;;  %v3952_v31 = vld [vmem:[#allocation15_spill] sm:$0xff] }
 0x18a   :  { %1294 = vadd.xlane.f32.xlu0 %v1255_v39  ;;  %v1757_v39 = vsel %vm90_vm0, %v3207_v28, 0.0  ;;  %v3318_v57 = vpop.permute.xlu0 %1202 }
 0x18b   :  { %921 = vadd.xlane.f32.xlu1 %v1899_v29  ;;  %v3217_v29 = vld [vmem:[%s3781_s0 + $0xb0] sm:$0xff]  ;;  %v3226_v32 = vpop.permute.xlu1 %794  ;;  %vm1243_vm14 = vcmp.eq.s32.totalorder %v3049_v61, %v3318_v57  ;;  %v3975_v57 = vld [vmem:[#allocation80_spill] sm:$0xff] }
 0x18c   :  { %v819_v11 = vsub.f32 %v3217_v29, %v3053_v6  ;;  %v3948_v6 = vsub.f32 %v2530_v50, %v2536_v54  ;;  %v2077_v50 = vld [vmem:[%s3781_s0 + $0x60] sm:$0xff] }
 0x18d   :  { %v1260_v54 = vsel %vm1228_vm13, %v2077_v50, 0.0 }
 0x18e   :  { %1296 = vadd.xlane.f32.xlu0 %v1256_v2  ;;  %v541_v2 = vmul.f32 1.442695, %v3948_v6  ;;  %v873_v21 = vmul.f32 1.442695, %v819_v11  ;;  %v1913_v11 = vpop.eup %1912 }
 0x18f   :  { %923 = vadd.xlane.f32.xlu1 %v1901_v37  ;;  %v1758_v37 = vadd.f32 %v1757_v39, %v1756_v41  ;;  %v822_v41 = vsub.f32 %v3279_v35, %v3085_v7  ;;  %v1262_v39 = vsel %vm1230_vm15, %v2081_v52, 0.0  ;;  %v3949_v7 = vld [vmem:[#allocation14_spill] sm:$0xff] }
 0x190   :  { %1914 = vpow2.f32 %v541_v2  ;;  %v1765_v2 = vsel %vm90_vm0, %v3290_v36, 0.0 }
 0x191   :  { %1916 = vpow2.f32 %v873_v21  ;;  %v3951_v21 = vld [vmem:[#allocation13_spill] sm:$0xff] }
 0x192   :  { %1298 = vadd.xlane.f32.xlu0 %v1257_v27  ;;  %v1760_v27 = vadd.f32 %v1759_v5, %v1758_v37  ;;  %1918 = vpow2.f32 %v875_v56  ;;  %v879_v37 = vmul.f32 1.442695, %v822_v41  ;;  %v3303_v5 = vld [vmem:[%s3781_s0 + $0xd0] sm:$0xff]  ;;  %v3956_v41 = vld [vmem:[#allocation12_spill] sm:$0xff] }
 0x193   :  { %925 = vadd.xlane.f32.xlu1 %v1903_v47  ;;  %v3255_v47 = vpop.permute.xlu1 %1175  ;;  %1920 = vpow2.f32 %v877_v4  ;;  %v3955_v4 = vld [vmem:[#allocation11_spill] sm:$0xff] }
 0x194   :  { %v3957_v52 = vsub.f32 %v3955_v4, %v3956_v41  ;;  %vm1234_vm4 = vcmp.eq.s32.totalorder %v3049_v61, %v3255_v47  ;;  %v3373_v4 = vld [vmem:[%s3781_s0 + $0xe8] sm:$0xff] }
 0x195   :  { %v826_v41 = vsub.f32 %v3373_v4, %v3169_v12 }
 0x196   :  { %1300 = vadd.xlane.f32.xlu0 %v1258_v18  ;;  %v1762_v18 = vadd.f32 %v1761_v26, %v1760_v27  ;;  %v3954_v26 = vld [vmem:[#allocation70_spill] sm:$0xff] }
 0x197   :  { %927 = vadd.xlane.f32.xlu1 %v1905_v19  ;;  %v1763_v19 = vsel %vm90_vm0, %v3269_v25, 0.0  ;;  %v3288_v9 = vpop.permute.xlu1 %1181  ;;  %v296_v56 = vshra.s32 %v3954_v26, 30 }
 0x198   :  { %v1764_v6 = vadd.f32 %v1763_v19, %v1762_v18  ;;  %v3327_v18 = vld [vmem:[%s3781_s0 + $0xd8] sm:$0xff]  ;;  %vm1236_vm6 = vcmp.eq.s32.totalorder %v3049_v61, %v3288_v9 }
 0x199   :  { %v824_v19 = vsub.f32 %v3327_v18, %v3125_v10 }
 0x19a   :  { %1302 = vadd.xlane.f32.xlu0 %v1259_v17  ;;  %v295_v17 = vshra.s32 %v2837_v30, 30  ;;  %v823_v30 = vsub.f32 %v3303_v5, %v3103_v13  ;;  %v1915_v58 = vpop.eup %1914  ;;  %v477_v13 = vld [vmem:[#allocation3] sm:$0xff]  ;;  %v1766_v40 = vadd.f32 %v1765_v2, %v1764_v6 }
 0x19b   :  { %929 = vadd.xlane.f32.xlu1 %v1907_v22  ;;  %v3950_v22 = vsub.f32 %v2538_v55, %v3949_v7  ;;  %v3953_v55 = vsub.f32 %v3951_v21, %v3952_v31  ;;  %v1917_v14 = vpop.eup %1916  ;;  %v605_v7 = vmul.f32 %v1915_v58, %v477_v13  ;;  %v3958_v6 = vld [vmem:[#allocation73_spill] sm:$0xff]  ;;  %v883_v34 = vmul.f32 1.442695, %v824_v19 }
 0x19c   :  { %v3313_v27 = vcvt.s32.f32 %v295_v17  ;;  %v881_v1 = vmul.f32 1.442695, %v823_v30  ;;  %v297_v2 = vshra.s32 %v3958_v6, 30  ;;  %v3350_v58 = vld [vmem:[%s3781_s0 + $0xe0] sm:$0xff] }
 0x19d   :  { %v547_v45 = vmul.f32 1.442695, %v3950_v22  ;;  %v543_v50 = vmul.f32 1.442695, %v3953_v55  ;;  %v1919_v22 = vpop.eup %1918  ;;  %v825_v31 = vsub.f32 %v3350_v58, %v3149_v38  ;;  %v3960_v55 = vld [vmem:[#allocation19_spill] sm:$0xff] }
 0x19e   :  { %1304 = vadd.xlane.f32.xlu0 %v1260_v54  ;;  %v2083_v54 = vld [vmem:[%s3781_s0 + $0x78] sm:$0xff]  ;;  %v3363_v13 = vcvt.s32.f32 %v297_v2 }
 0x19f   :  { %931 = vadd.xlane.f32.xlu1 %v1909_v60  ;;  %v1263_v60 = vsel %vm1231_vm1, %v2083_v54, 0.0  ;;  %1922 = vpow2.f32 %v547_v45  ;;  %v3340_v45 = vcvt.s32.f32 %v296_v56  ;;  %v1921_v56 = vpop.eup %1920  ;;  %v885_v19 = vmul.f32 1.442695, %v825_v31  ;;  %v478_v31 = vld [vmem:[#allocation3 + $0x8] sm:$0xff] }
 0x1a0   :  { %1924 = vpow2.f32 %v879_v37 }
 0x1a1   :  { %1926 = vpow2.f32 %v543_v50  ;;  %v1769_v21 = vsel %vm90_vm0, %v3340_v45, 0.0  ;;  %v3961_v50 = vsub.f32 %v3959_v49, %v3960_v55  ;;  %v887_v55 = vmul.f32 1.442695, %v826_v41  ;;  %v3967_v41 = vld [vmem:[#allocation76_spill] sm:$0xff] }
 0x1a2   :  { %1306 = vadd.xlane.f32.xlu0 %v1261_v23  ;;  %v3320_v23 = vpop.permute.xlu1 %1187  ;;  %1928 = vpow2.f32 %v881_v1  ;;  %v1771_v1 = vsel %vm90_vm0, %v3363_v13, 0.0 }
 0x1a3   :  { %933 = vadd.xlane.f32.xlu1 %v1911_v62  ;;  %v1767_v62 = vsel %vm90_vm0, %v3313_v27, 0.0  ;;  %v549_v54 = vmul.f32 1.442695, %v3961_v50  ;;  %v3395_v50 = vld [vmem:[%s3781_s0 + $0xf0] sm:$0xff]  ;;  %vm1238_vm8 = vcmp.eq.s32.totalorder %v3049_v61, %v3320_v23 }
 0x1a4   :  { %v1768_v37 = vadd.f32 %v1767_v62, %v1766_v40  ;;  %v3962_v40 = vld [vmem:[#allocation74_spill] sm:$0xff]  ;;  %v1270_v23 = vsel %vm1238_vm8, %v3217_v29, 0.0  ;;  %v1271_v29 = vsel %vm1239_vm9, %v3241_v0, 0.0 }
 0x1a5   :  { %v298_v62 = vshra.s32 %v3962_v40, 30 }
 0x1a6   :  { %1308 = vadd.xlane.f32.xlu0 %v1262_v39  ;;  %v545_v39 = vmul.f32 1.442695, %v3957_v52  ;;  %v3360_v26 = vpop.permute.xlu1 %1193  ;;  %v1770_v38 = vadd.f32 %v1769_v21, %v1768_v37 }
 0x1a7   :  { %935 = vadd.xlane.f32.xlu1 %v1913_v11  ;;  %v2085_v11 = vld [vmem:[%s3781_s0 + $0x80] sm:$0xff]  ;;  %v3383_v2 = vcvt.s32.f32 %v298_v62  ;;  %vm1240_vm10 = vcmp.eq.s32.totalorder %v3049_v61, %v3360_v26 }
 0x1a8   :  { %v1264_v17 = vsel %vm1232_vm2, %v2085_v11, 0.0  ;;  %1930 = vpow2.f32 %v545_v39  ;;  %v3963_v39 = vld [vmem:[#allocation16_spill] sm:$0xff]  ;;  %v3964_v11 = vld [vmem:[#allocation18_spill] sm:$0xff]  ;;  %v1772_v37 = vadd.f32 %v1771_v1, %v1770_v38 }
 0x1a9   :  { %1932 = vpow2.f32 %v883_v34  ;;  %v1923_v52 = vpop.eup %1922  ;;  %v3965_v47 = vsub.f32 %v3963_v39, %v3964_v11  ;;  %v1773_v49 = vsel %vm90_vm0, %v3383_v2, 0.0  ;;  %v300_v39 = vshra.s32 %v3967_v41, 30 }
 0x1aa   :  { %1310 = vadd.xlane.f32.xlu0 %v1263_v60  ;;  %v2087_v60 = vld [vmem:[%s3781_s0 + $0x88] sm:$0xff]  ;;  %1934 = vpow2.f32 %v549_v54  ;;  %v1925_v6 = vpop.eup %1924  ;;  %v3388_v34 = vpop.permute.xlu1 %1199  ;;  %v827_v54 = vsub.f32 %v3395_v50, %v3193_v51 }
 0x1ab   :  { %937 = vadd.xlane.f32.xlu1 %v1917_v14  ;;  %v1265_v14 = vsel %vm1233_vm3, %v2087_v60, 0.0  ;;  %v1927_v12 = vpop.eup %1926  ;;  %1936 = vpow2.f32 %v885_v19  ;;  %v2091_v60 = vld [vmem:[%s3781_s0 + $0x98] sm:$0xff]  ;;  %v1774_v19 = vadd.f32 %v1773_v49, %v1772_v37  ;;  %vm1242_vm11 = vcmp.eq.s32.totalorder %v3049_v61, %v3388_v34 }
 0x1ac   :  { %v1929_v40 = vpop.eup %1928  ;;  %v606_v38 = vmul.f32 %v1927_v12, %v478_v31  ;;  %v889_v42 = vmul.f32 1.442695, %v827_v54  ;;  %v3968_v31 = vld [vmem:[#allocation82_spill] sm:$0xff]  ;;  %v481_v54 = vld [vmem:[#allocation3 + $0x20] sm:$0xff] }
 0x1ad   :  { %v301_v49 = vshra.s32 %v3968_v31, 30 }
 0x1ae   :  { %1312 = vadd.xlane.f32.xlu0 %v1264_v17  ;;  %v894_v10 = vpop.xlane.xlu0 %893  ;;  %v551_v17 = vmul.f32 1.442695, %v3965_v47 }
 0x1af   :  { %v957_v30 = vadd.f32 %v894_v10, %v605_v7  ;;  %939 = vadd.xlane.f32.xlu1 %v1919_v22  ;;  %v2089_v7 = vld [vmem:[%s3781_s0 + $0x90] sm:$0xff]  ;;  %v480_v10 = vld [vmem:[#allocation3 + $0x18] sm:$0xff] }
 0x1b0   :  { %v1266_v22 = vsel %vm1234_vm4, %v2089_v7, 0.0  ;;  %1938 = vpow2.f32 %v551_v17  ;;  %v479_v17 = vld [vmem:[#allocation3 + $0x10] sm:$0xff] }
 0x1b1   :  { %990 = vst.msk [vmem:[#allocation3] sm:$0xff] %vm90_vm0, %v957_v30  ;;  %v3966_v30 = vld [vmem:[#allocation75_spill] sm:$0xff]  ;;  %1940 = vpow2.f32 %v887_v55 }
 0x1b2   :  { %1314 = vadd.xlane.f32.xlu0 %v1265_v14  ;;  %v299_v21 = vshra.s32 %v3966_v30, 30  ;;  %v1267_v14 = vsel %vm1235_vm5, %v2091_v60, 0.0  ;;  %v1931_v1 = vpop.eup %1930  ;;  %1942 = vpow2.f32 %v889_v42 }
 0x1b3   :  { %941 = vadd.xlane.f32.xlu1 %v1921_v56  ;;  %v608_v56 = vmul.f32 %v1923_v52, %v480_v10  ;;  %v3413_v52 = vld [vmem:[%s3781_s0 + $0xf8] sm:$0xff]  ;;  %v2093_v10 = vld [vmem:[%s3781_s0 + $0xa0] sm:$0xff]  ;;  %v1933_v37 = vpop.eup %1932  ;;  %s2145_s0 = smov [#allocation5]  }
 0x1b4   :  { %v3407_v51 = vcvt.s32.f32 %v299_v21  ;;  %v828_v7 = vsub.f32 %v3413_v52, %v3226_v32  ;;  %v1268_v12 = vsel %vm1236_vm6, %v2093_v10, 0.0  ;;  %v607_v32 = vmul.f32 %v1931_v1, %v479_v17  ;;  %v1935_v30 = vpop.eup %1934  ;;  %v3969_v1 = vld [vmem:[#allocation77_spill] sm:$0xff]  ;;  %s1825_s12 = sshll.u32 %s2145_s0, 4  ;;  %s1826_s12 = int_to_ptr.vmem [resolvable:$true] %s1825_s12 }
 0x1b5   :  { %v3429_v21 = vcvt.s32.f32 %v300_v39  ;;  %v302_v41 = vshra.s32 %v3969_v1, 30  ;;  %s2094_s17 = scalar_lea.vmem %s1826_s12, 128  ;;  %p2099_p1 = scmp.lt.s32.totalorder %s1826_s12, %s1826_s12 }
 0x1b6   :  { %1316 = vadd.xlane.f32.xlu0 %v1266_v22  ;;  %v891_v60 = vmul.f32 1.442695, %v828_v7  ;;  %p2095_p0 = scmp.ne.s32.totalorder %s1826_s12, %s2094_s17  ;;  %p2100_p2 = scmp.lt.s32.totalorder %s2094_s17, %s2094_s17 }
 0x1b7   :  { %943 = vadd.xlane.f32.xlu1 %v1925_v6  ;;  %v1775_v6 = vsel %vm90_vm0, %v3407_v51, 0.0 }
 0x1b8   :  { %v1776_v9 = vadd.f32 %v1775_v6, %v1774_v19  ;;  %v3439_v19 = vcvt.s32.f32 %v301_v49  ;;  %1944 = vpow2.f32 %v891_v60  ;;  %v3970_v6 = vld [vmem:[#allocation83_spill] sm:$0xff]  ;;  %v304_v49 = vshra.s32 %v3971_v20, 30  ;;  %p2101_p3 = por %p2100_p2, %p2099_p1 }
 0x1b9   :  { %v303_v10 = vshra.s32 %v3970_v6, 30 }
 0x1ba   :  { %1318 = vadd.xlane.f32.xlu0 %v1267_v14  ;;  %v900_v62 = vpop.xlane.xlu0 %899  ;;  %v1779_v63 = vsel %vm90_vm0, %v3439_v19, 0.0  ;;  %v3464_v26 = vcvt.s32.f32 %v304_v49  ;;  %p2102_p4 = pnand %p2101_p3, %p2095_p0 }
 0x1bb   :  { %v960_v11 = vadd.f32 %v900_v62, %v608_v56  ;;  %v896_v47 = vpop.xlane.xlu1 %895  ;;  %945 = vadd.xlane.f32.xlu1 %v1929_v40  ;;  %v1777_v56 = vsel %vm90_vm0, %v3429_v21, 0.0  ;;  %v1937_v40 = vpop.eup %1936  ;;  %v609_v62 = vmul.f32 %v1935_v30, %v481_v54 }
 0x1bc   :  { %v958_v22 = vadd.f32 %v896_v47, %v606_v38  ;;  %v1939_v38 = vpop.eup %1938  ;;  %v1778_v47 = vadd.f32 %v1777_v56, %v1776_v9  ;;  %v3972_v56 = vld [vmem:[#allocation84_spill] sm:$0xff] }
 0x1bd   :  { %993 = vst.msk [vmem:[#allocation3 + $0x18] sm:$0xff] %vm90_vm0, %v960_v11  ;;  %v482_v11 = vld [vmem:[#allocation3 + $0x28] sm:$0xff]  ;;  %v1941_v42 = vpop.eup %1940 }
 0x1be   :  { %991 = vst.msk [vmem:[#allocation3 + $0x8] sm:$0xff] %vm90_vm0, %v958_v22  ;;  %1320 = vadd.xlane.f32.xlu0 %v1268_v12  ;;  %v610_v7 = vmul.f32 %v1939_v38, %v482_v11  ;;  %v3447_v22 = vcvt.s32.f32 %v302_v41  ;;  %v1943_v31 = vpop.eup %1942  ;;  %v3973_v38 = vld [vmem:[#allocation79_spill] sm:$0xff]  ;;  %v1273_v41 = vsel %vm1241_vm12, %v3279_v35, 0.0 }
 0x1bf   :  { %v898_v55 = vpop.xlane.xlu1 %897  ;;  %947 = vadd.xlane.f32.xlu1 %v1933_v37  ;;  %v1780_v37 = vadd.f32 %v1779_v63, %v1778_v47  ;;  %v306_v1 = vshra.s32 %v3973_v38, 30 }
 0x1c0   :  { %v959_v14 = vadd.f32 %v898_v55, %v607_v32  ;;  %v1781_v30 = vsel %vm90_vm0, %v3447_v22, 0.0  ;;  %v3457_v55 = vcvt.s32.f32 %v303_v10 }
 0x1c1   :  { %v1782_v54 = vadd.f32 %v1781_v30, %v1780_v37  ;;  %v3479_v47 = vcvt.s32.f32 %v306_v1  ;;  %v3976_v30 = vld [vmem:[#allocation21_spill] sm:$0xff] }
 0x1c2   :  { %992 = vst.msk [vmem:[#allocation3 + $0x10] sm:$0xff] %vm90_vm0, %v959_v14  ;;  %1322 = vadd.xlane.f32.xlu0 %v1269_v43  ;;  %v1783_v60 = vsel %vm90_vm0, %v3457_v55, 0.0  ;;  %v1272_v14 = vsel %vm1240_vm10, %v3262_v44, 0.0  ;;  %v1945_v0 = vpop.eup %1944  ;;  %v305_v43 = vshra.s32 %v3972_v56, 30  ;;  %v1274_v44 = vsel %vm1242_vm11, %v3303_v5, 0.0  ;;  %v1212_v16 = vpop.permute.xlu0 %1211  ;;  %v3974_v5 = vld [vmem:[#allocation85_spill] sm:$0xff] }
 0x1c3   :  { %v902_v39 = vpop.xlane.xlu1 %901  ;;  %949 = vadd.xlane.f32.xlu1 %v1937_v40  ;;  %v1784_v40 = vadd.f32 %v1783_v60, %v1782_v54  ;;  %v307_v63 = vshra.s32 %v3974_v5, 30  ;;  %vm1246_vm15 = vcmp.eq.s32.totalorder %v3049_v61, %v1212_v16  ;;  %v1789_v10 = vsel %vm90_vm0, %v3479_v47, 0.0  ;;  %v3979_v54 = vld [vmem:[#allocation86_spill] sm:$0xff]  ;;  %v3980_v60 = vld [vmem:[#allocation25_spill] sm:$0xff]  ;;  %v3986_v5 = vld [vmem:[#allocation87_spill] sm:$0xff] }
 0x1c4   :  { %v961_v17 = vadd.f32 %v902_v39, %v609_v62  ;;  %v1785_v62 = vsel %vm90_vm0, %v3464_v26, 0.0  ;;  %v3475_v39 = vcvt.s32.f32 %v305_v43  ;;  %v1278_v37 = vsel %vm1246_vm15, %v3395_v50, 0.0  ;;  %v3983_v43 = vld [vmem:[#allocation81_spill] sm:$0xff] }
 0x1c5   :  { %v1786_v11 = vadd.f32 %v1785_v62, %v1784_v40  ;;  %v310_v40 = vshra.s32 %v3983_v43, 30 }
 0x1c6   :  { %994 = vst.msk [vmem:[#allocation3 + $0x20] sm:$0xff] %vm90_vm0, %v961_v17  ;;  %1324 = vadd.xlane.f32.xlu0 %v1270_v23  ;;  %v1787_v17 = vsel %vm90_vm0, %v3475_v39, 0.0  ;;  %v1275_v23 = vsel %vm1243_vm14, %v3327_v18, 0.0 }
 0x1c7   :  { %v904_v12 = vpop.xlane.xlu1 %903  ;;  %951 = vadd.xlane.f32.xlu1 %v1941_v42  ;;  %v308_v42 = vshra.s32 %v3975_v57, 30  ;;  %v3513_v1 = vcvt.s32.f32 %v310_v40 }
 0x1c8   :  { %v962_v32 = vadd.f32 %v904_v12, %v610_v7  ;;  %v1788_v7 = vadd.f32 %v1787_v17, %v1786_v11  ;;  %v3491_v12 = vcvt.s32.f32 %v307_v63  ;;  %v313_v63 = vshra.s32 %v3986_v5, 30  ;;  %v3998_v5 = vld [vmem:[#allocation31_spill] sm:$0xff] }
 0x1c9   :  { %v3496_v18 = vcvt.s32.f32 %v308_v42  ;;  %v1797_v17 = vsel %vm90_vm0, %v3513_v1, 0.0  ;;  %v483_v42 = vld [vmem:[#allocation3 + $0x30] sm:$0xff] }
 0x1ca   :  { %995 = vst.msk [vmem:[#allocation3 + $0x28] sm:$0xff] %vm90_vm0, %v962_v32  ;;  %1326 = vadd.xlane.f32.xlu0 %v1271_v29  ;;  %v1790_v32 = vadd.f32 %v1789_v10, %v1788_v7  ;;  %v3977_v29 = vld [vmem:[#allocation23_spill] sm:$0xff]  ;;  %v1791_v49 = vsel %vm90_vm0, %v3491_v12, 0.0  ;;  %v3989_v10 = vld [vmem:[#allocation26_spill] sm:$0xff] }
 0x1cb   :  { %953 = vadd.xlane.f32.xlu1 %v1943_v31  ;;  %v1206_v9 = vpop.permute.xlu1 %1205  ;;  %v3978_v31 = vsub.f32 %v3976_v30, %v3977_v29 }
 0x1cc   :  { %vm1244_vm13 = vcmp.eq.s32.totalorder %v3049_v61, %v1206_v9  ;;  %v309_v9 = vshra.s32 %v3979_v54, 30 }
 0x1cd   :  { %v1276_v35 = vsel %vm1244_vm13, %v3350_v58, 0.0  ;;  %v553_v20 = vmul.f32 1.442695, %v3978_v31 }
 0x1ce   :  { %1328 = vadd.xlane.f32.xlu0 %v1272_v14  ;;  %v3981_v14 = vld [vmem:[#allocation27_spill] sm:$0xff]  ;;  %v3511_v62 = vcvt.s32.f32 %v309_v9 }
 0x1cf   :  { %955 = vadd.xlane.f32.xlu1 %v1945_v0  ;;  %v1209_v34 = vpop.permute.xlu1 %1208  ;;  %1946 = vpow2.f32 %v553_v20  ;;  %v3982_v0 = vsub.f32 %v3980_v60, %v3981_v14  ;;  %v485_v20 = vld [vmem:[#allocation3 + $0x40] sm:$0xff] }
 0x1d0   :  { %vm1245_vm1 = vcmp.eq.s32.totalorder %v3049_v61, %v1209_v34  ;;  %v3985_v34 = vld [vmem:[#allocation89_spill] sm:$0xff] }
 0x1d1   :  { %v1277_v58 = vsel %vm1245_vm1, %v3373_v4, 0.0  ;;  %v1793_v4 = vsel %vm90_vm0, %v3496_v18, 0.0  ;;  %v557_v56 = vmul.f32 1.442695, %v3982_v0  ;;  %v312_v16 = vshra.s32 %v3985_v34, 30  ;;  %v3994_v0 = vld [vmem:[#allocation20_spill] sm:$0xff] }
 0x1d2   :  { %1332 = vadd.xlane.f32.xlu0 %v1274_v44  ;;  %v3984_v44 = vld [vmem:[#allocation88_spill] sm:$0xff] }
 0x1d3   :  { %1330 = vadd.xlane.f32.xlu1 %v1273_v41  ;;  %v1215_v6 = vpop.permute.xlu1 %1214  ;;  %1948 = vpow2.f32 %v557_v56  ;;  %v311_v41 = vshra.s32 %v3984_v44, 30  ;;  %v3524_v57 = vcvt.s32.f32 %v312_v16  ;;  %v3995_v56 = vld [vmem:[#allocation22_spill] sm:$0xff] }
 0x1d4   :  { %vm1247_vm2 = vcmp.eq.s32.totalorder %v3049_v61, %v1215_v6  ;;  %v1792_v61 = vadd.f32 %v1791_v49, %v1790_v32  ;;  %v3988_v6 = vld [vmem:[#allocation24_spill] sm:$0xff]  ;;  %v3529_v32 = vcvt.s32.f32 %v313_v63  ;;  %v3992_v49 = vld [vmem:[#allocation90_spill] sm:$0xff]  ;;  %v3996_v43 = vsub.f32 %v3994_v0, %v3995_v56 }
 0x1d5   :  { %v1279_v50 = vsel %vm1247_vm2, %v3413_v52, 0.0  ;;  %v1795_v52 = vsel %vm90_vm0, %v3511_v62, 0.0  ;;  %3987 = vst [vmem:[#allocation14_spill] sm:$0xff] %v3524_v57  ;;  %v314_v54 = vshra.s32 %v3992_v49, 30  ;;  %v486_v49 = vld [vmem:[#allocation3 + $0x48] sm:$0xff] }
 0x1d6   :  { %1336 = vadd.xlane.f32.xlu0 %v1276_v35  ;;  %v1794_v38 = vadd.f32 %v1793_v4, %v1792_v61  ;;  %3991 = vst [vmem:[#allocation13_spill] sm:$0xff] %v3529_v32  ;;  %v1803_v14 = vsel %vm90_vm0, %v3529_v32, 0.0  ;;  %v555_v40 = vmul.f32 1.442695, %v3996_v43  ;;  %v4054_v32 = vld [vmem:[#allocation65_spill] sm:$0xff] }
 0x1d7   :  { %1334 = vadd.xlane.f32.xlu1 %v1275_v23  ;;  %v3522_v23 = vcvt.s32.f32 %v311_v41  ;;  %v3536_v60 = vcvt.s32.f32 %v314_v54 }
 0x1d8   :  { %v1796_v11 = vadd.f32 %v1795_v52, %v1794_v38 }
 0x1d9   :  { %v1947_v35 = vpop.eup %1946  ;;  %v1799_v9 = vsel %vm90_vm0, %v3522_v23, 0.0  ;;  %3993 = vst [vmem:[#allocation15_spill] sm:$0xff] %v3536_v60  ;;  %v1805_v41 = vsel %vm90_vm0, %v3536_v60, 0.0 }
 0x1da   :  { %1340 = vadd.xlane.f32.xlu0 %v1278_v37  ;;  %v1798_v7 = vadd.f32 %v1797_v17, %v1796_v11  ;;  %v3990_v37 = vsub.f32 %v3988_v6, %v3989_v10  ;;  %v611_v30 = vmul.f32 %v1947_v35, %v483_v42  ;;  %v1054_v11 = vld [vmem:[#allocation4] sm:$0xff]  ;;  %v1055_v10 = vld [vmem:[#allocation4 + $0x8] sm:$0xff] }
 0x1db   :  { %1338 = vadd.xlane.f32.xlu1 %v1277_v58  ;;  %v3997_v17 = vld [vmem:[#allocation29_spill] sm:$0xff] }
 0x1dc   :  { %v559_v58 = vmul.f32 1.442695, %v3990_v37  ;;  %v1800_v61 = vadd.f32 %v1799_v9, %v1798_v7  ;;  %v3999_v63 = vsub.f32 %v3997_v17, %v3998_v5  ;;  %v4000_v37 = vld [vmem:[#allocation28_spill] sm:$0xff]  ;;  %v4003_v9 = vld [vmem:[#allocation33_spill] sm:$0xff] }
 0x1dd   :  { %v1949_v29 = vpop.eup %1948 }
 0x1de   :  { %1950 = vpow2.f32 %v559_v58  ;;  %v613_v38 = vmul.f32 %v1949_v29, %v485_v20  ;;  %v561_v35 = vmul.f32 1.442695, %v3999_v63  ;;  %v4001_v58 = vld [vmem:[#allocation30_spill] sm:$0xff] }
 0x1df   :  { %1342 = vadd.xlane.f32.xlu1 %v1279_v50  ;;  %v1801_v50 = vsel %vm90_vm0, %v3524_v57, 0.0  ;;  %1952 = vpow2.f32 %v555_v40  ;;  %v484_v40 = vld [vmem:[#allocation3 + $0x38] sm:$0xff] }
 0x1e0   :  { %v1802_v52 = vadd.f32 %v1801_v50, %v1800_v61  ;;  %1954 = vpow2.f32 %v561_v35  ;;  %v4004_v50 = vld [vmem:[#allocation35_spill] sm:$0xff] }
 0x1e1   :  { %v487_v35 = vld [vmem:[#allocation3 + $0x50] sm:$0xff] }
 0x1e2   :  { %v1804_v16 = vadd.f32 %v1803_v14, %v1802_v52  ;;  %v4006_v52 = vld [vmem:[#allocation32_spill] sm:$0xff] }
 0x1e4   :  { %v1806_v42 = vadd.f32 %v1805_v41, %v1804_v16 }
 0x1e6   :  { %1807 = vadd.xlane.f32.xlu1 %v1806_v42 }
 0x1ef   :  { %v906_v31 = vpop.xlane.xlu0 %905 }
 0x1f0   :  { %v963_v4 = vadd.f32 %v906_v31, %v611_v30  ;;  %v4002_v30 = vsub.f32 %v4000_v37, %v4001_v58  ;;  %v1951_v31 = vpop.eup %1950 }
 0x1f1   :  { %v614_v14 = vmul.f32 %v1951_v31, %v486_v49  ;;  %v1953_v56 = vpop.eup %1952 }
 0x1f2   :  { %996 = vst.msk [vmem:[#allocation3 + $0x30] sm:$0xff] %vm90_vm0, %v963_v4  ;;  %v563_v29 = vmul.f32 1.442695, %v4002_v30  ;;  %v4005_v4 = vsub.f32 %v4003_v9, %v4004_v50  ;;  %v1955_v17 = vpop.eup %1954  ;;  %v1058_v50 = vld [vmem:[#allocation4 + $0x20] sm:$0xff] }
 0x1f3   :  { %v910_v44 = vpop.xlane.xlu0 %909 }
 0x1f4   :  { %v965_v34 = vadd.f32 %v910_v44, %v613_v38  ;;  %1956 = vpow2.f32 %v563_v29  ;;  %v565_v61 = vmul.f32 1.442695, %v4005_v4  ;;  %v1056_v38 = vld [vmem:[#allocation4 + $0x10] sm:$0xff]  ;;  %v4007_v44 = vld [vmem:[#allocation34_spill] sm:$0xff]  ;;  %v615_v29 = vmul.f32 %v1955_v17, %v487_v35  ;;  %v4012_v4 = vld [vmem:[#allocation36_spill] sm:$0xff] }
 0x1f5   :  { %v4008_v41 = vsub.f32 %v4006_v52, %v4007_v44  ;;  %v489_v44 = vld [vmem:[#allocation3 + $0x60] sm:$0xff] }
 0x1f6   :  { %998 = vst.msk [vmem:[#allocation3 + $0x40] sm:$0xff] %vm90_vm0, %v965_v34  ;;  %1958 = vpow2.f32 %v565_v61  ;;  %v4013_v61 = vld [vmem:[#allocation38_spill] sm:$0xff] }
 0x1f7   :  { %v1281_v7 = vpop.xlane.xlu0 %1280  ;;  %v567_v34 = vmul.f32 1.442695, %v4008_v41 }
 0x1f8   :  { %v1344_v6 = vadd.f32 %v1281_v7, %v1054_v11  ;;  %v612_v11 = vmul.f32 %v1953_v56, %v484_v40  ;;  %v1057_v7 = vld [vmem:[#allocation4 + $0x18] sm:$0xff] }
 0x1f9   :  { %1960 = vpow2.f32 %v567_v34  ;;  %v1059_v34 = vld [vmem:[#allocation4 + $0x28] sm:$0xff] }
 0x1fa   :  { %1376 = vst.msk [vmem:[#allocation4] sm:$0xff] %vm90_vm0, %v1344_v6  ;;  %v4009_v6 = vld [vmem:[#allocation37_spill] sm:$0xff] }
 0x1fb   :  { %v1283_v20 = vpop.xlane.xlu0 %1282 }
 0x1fc   :  { %v1345_v54 = vadd.f32 %v1283_v20, %v1055_v10  ;;  %v4010_v10 = vld [vmem:[#allocation39_spill] sm:$0xff] }
 0x1fd   :  { %v4011_v37 = vsub.f32 %v4009_v6, %v4010_v10  ;;  %v490_v10 = vld [vmem:[#allocation3 + $0x68] sm:$0xff] }
 0x1fe   :  { %1377 = vst.msk [vmem:[#allocation4 + $0x8] sm:$0xff] %vm90_vm0, %v1345_v54  ;;  %v1957_v31 = vpop.eup %1956  ;;  %v488_v54 = vld [vmem:[#allocation3 + $0x58] sm:$0xff] }
 0x1ff   :  { %v912_v0 = vpop.xlane.xlu0 %911  ;;  %v569_v58 = vmul.f32 1.442695, %v4011_v37 }
 0x200   :  { %v966_v43 = vadd.f32 %v912_v0, %v614_v14  ;;  %v4014_v14 = vsub.f32 %v4012_v4, %v4013_v61  ;;  %v1959_v40 = vpop.eup %1958  ;;  %v491_v61 = vld [vmem:[#allocation3 + $0x70] sm:$0xff] }
 0x201   :  { %1962 = vpow2.f32 %v569_v58  ;;  %v617_v35 = vmul.f32 %v1959_v40, %v489_v44  ;;  %v1060_v58 = vld [vmem:[#allocation4 + $0x30] sm:$0xff] }
 0x202   :  { %999 = vst.msk [vmem:[#allocation3 + $0x48] sm:$0xff] %vm90_vm0, %v966_v43  ;;  %v571_v0 = vmul.f32 1.442695, %v4014_v14  ;;  %v616_v43 = vmul.f32 %v1957_v31, %v488_v54 }
 0x203   :  { %v1285_v16 = vpop.xlane.xlu0 %1284 }
 0x204   :  { %v1346_v5 = vadd.f32 %v1285_v16, %v1056_v38  ;;  %v908_v63 = vpop.xlane.xlu1 %907  ;;  %1964 = vpow2.f32 %v571_v0  ;;  %v4015_v16 = vld [vmem:[#allocation41_spill] sm:$0xff]  ;;  %v1061_v0 = vld [vmem:[#allocation4 + $0x38] sm:$0xff] }
 0x205   :  { %v964_v42 = vadd.f32 %v908_v63, %v612_v11  ;;  %v4016_v11 = vld [vmem:[#allocation43_spill] sm:$0xff] }
 0x206   :  { %1378 = vst.msk [vmem:[#allocation4 + $0x10] sm:$0xff] %vm90_vm0, %v1346_v5  ;;  %v4017_v17 = vsub.f32 %v4015_v16, %v4016_v11  ;;  %v4025_v16 = vld [vmem:[#allocation46_spill] sm:$0xff] }
 0x207   :  { %997 = vst.msk [vmem:[#allocation3 + $0x38] sm:$0xff] %vm90_vm0, %v964_v42  ;;  %v1287_v30 = vpop.xlane.xlu0 %1286  ;;  %v1961_v42 = vpop.eup %1960 }
 0x208   :  { %v1347_v20 = vadd.f32 %v1287_v30, %v1057_v7  ;;  %v914_v49 = vpop.xlane.xlu1 %913  ;;  %v573_v5 = vmul.f32 1.442695, %v4017_v17  ;;  %v4018_v30 = vld [vmem:[#allocation40_spill] sm:$0xff]  ;;  %v618_v54 = vmul.f32 %v1961_v42, %v490_v10  ;;  %v1443_v10 = vld [vmem:[#allocation3] sm:$0xff] }
 0x209   :  { %v967_v9 = vadd.f32 %v914_v49, %v615_v29  ;;  %v4019_v29 = vld [vmem:[#allocation42_spill] sm:$0xff] }
 0x20a   :  { %1379 = vst.msk [vmem:[#allocation4 + $0x18] sm:$0xff] %vm90_vm0, %v1347_v20  ;;  %v4020_v31 = vsub.f32 %v4018_v30, %v4019_v29  ;;  %1966 = vpow2.f32 %v573_v5  ;;  %v1445_v29 = vld [vmem:[#allocation3 + $0x10] sm:$0xff] }
 0x20b   :  { %1000 = vst.msk [vmem:[#allocation3 + $0x50] sm:$0xff] %vm90_vm0, %v967_v9  ;;  %v1289_v56 = vpop.xlane.xlu0 %1288  ;;  %v1963_v9 = vpop.eup %1962 }
 0x20c   :  { %v1348_v38 = vadd.f32 %v1289_v56, %v1058_v50  ;;  %v916_v52 = vpop.xlane.xlu1 %915  ;;  %v575_v20 = vmul.f32 1.442695, %v4020_v31  ;;  %v4021_v56 = vld [vmem:[#allocation45_spill] sm:$0xff]  ;;  %v619_v44 = vmul.f32 %v1963_v9, %v491_v61  ;;  %v1063_v9 = vld [vmem:[#allocation4 + $0x48] sm:$0xff] }
 0x20d   :  { %v968_v41 = vadd.f32 %v916_v52, %v616_v43  ;;  %v4022_v43 = vld [vmem:[#allocation47_spill] sm:$0xff] }
 0x20e   :  { %1380 = vst.msk [vmem:[#allocation4 + $0x20] sm:$0xff] %vm90_vm0, %v1348_v38  ;;  %1968 = vpow2.f32 %v575_v20  ;;  %v4023_v40 = vsub.f32 %v4021_v56, %v4022_v43 }
 0x20f   :  { %1001 = vst.msk [vmem:[#allocation3 + $0x58] sm:$0xff] %vm90_vm0, %v968_v41  ;;  %v1291_v63 = vpop.xlane.xlu0 %1290  ;;  %v1965_v41 = vpop.eup %1964 }
 0x210   :  { %v1349_v7 = vadd.f32 %v1291_v63, %v1059_v34  ;;  %v918_v6 = vpop.xlane.xlu1 %917  ;;  %v577_v38 = vmul.f32 1.442695, %v4023_v40  ;;  %v4024_v34 = vld [vmem:[#allocation44_spill] sm:$0xff] }
 0x211   :  { %v969_v37 = vadd.f32 %v918_v6, %v617_v35  ;;  %v4026_v11 = vsub.f32 %v4024_v34, %v4025_v16  ;;  %v492_v35 = vld [vmem:[#allocation3 + $0x78] sm:$0xff]  ;;  %v1444_v6 = vld [vmem:[#allocation3 + $0x8] sm:$0xff]  ;;  %v1064_v34 = vld [vmem:[#allocation4 + $0x50] sm:$0xff] }
 0x212   :  { %1381 = vst.msk [vmem:[#allocation4 + $0x28] sm:$0xff] %vm90_vm0, %v1349_v7  ;;  %v1062_v7 = vld [vmem:[#allocation4 + $0x40] sm:$0xff]  ;;  %1970 = vpow2.f32 %v577_v38 }
 0x213   :  { %1002 = vst.msk [vmem:[#allocation3 + $0x60] sm:$0xff] %vm90_vm0, %v969_v37  ;;  %v1293_v49 = vpop.xlane.xlu0 %1292  ;;  %v579_v17 = vmul.f32 1.442695, %v4026_v11  ;;  %v4030_v16 = vld [vmem:[#allocation49_spill] sm:$0xff]  ;;  %v4031_v11 = vld [vmem:[#allocation51_spill] sm:$0xff] }
 0x214   :  { %v1350_v50 = vadd.f32 %v1293_v49, %v1060_v58  ;;  %v920_v4 = vpop.xlane.xlu1 %919  ;;  %v620_v58 = vmul.f32 %v1965_v41, %v492_v35  ;;  %v1967_v30 = vpop.eup %1966  ;;  %v493_v49 = vld [vmem:[#allocation3 + $0x80] sm:$0xff]  ;;  %v4033_v35 = vld [vmem:[#allocation52_spill] sm:$0xff] }
 0x215   :  { %v970_v14 = vadd.f32 %v920_v4, %v618_v54  ;;  %1972 = vpow2.f32 %v579_v17  ;;  %v4028_v4 = vld [vmem:[#allocation50_spill] sm:$0xff]  ;;  %v621_v43 = vmul.f32 %v1967_v30, %v493_v49  ;;  %v4032_v17 = vsub.f32 %v4030_v16, %v4031_v11 }
 0x216   :  { %1382 = vst.msk [vmem:[#allocation4 + $0x30] sm:$0xff] %vm90_vm0, %v1350_v50  ;;  %1974 = vlog2.f32 %v1444_v6  ;;  %v4027_v50 = vld [vmem:[#allocation48_spill] sm:$0xff] }
 0x217   :  { %1003 = vst.msk [vmem:[#allocation3 + $0x68] sm:$0xff] %vm90_vm0, %v970_v14  ;;  %v1295_v52 = vpop.xlane.xlu0 %1294  ;;  %v4029_v61 = vsub.f32 %v4027_v50, %v4028_v4  ;;  %1976 = vlog2.f32 %v1443_v10  ;;  %v4036_v50 = vld [vmem:[#allocation53_spill] sm:$0xff]  ;;  %v4037_v4 = vld [vmem:[#allocation55_spill] sm:$0xff] }
 0x218   :  { %v1351_v5 = vadd.f32 %v1295_v52, %v1061_v0  ;;  %v922_v63 = vpop.xlane.xlu1 %921  ;;  %v1446_v0 = vld [vmem:[#allocation3 + $0x18] sm:$0xff]  ;;  %1978 = vlog2.f32 %v1445_v29  ;;  %v1969_v40 = vpop.eup %1968 }
 0x219   :  { %v971_v42 = vadd.f32 %v922_v63, %v619_v44  ;;  %v581_v14 = vmul.f32 1.442695, %v4029_v61  ;;  %v494_v44 = vld [vmem:[#allocation3 + $0x88] sm:$0xff]  ;;  %1980 = vlog2.f32 %v1446_v0  ;;  %v1447_v63 = vld [vmem:[#allocation3 + $0x20] sm:$0xff]  ;;  %v4038_v61 = vsub.f32 %v4036_v50, %v4037_v4  ;;  %v1449_v0 = vld [vmem:[#allocation3 + $0x30] sm:$0xff] }
 0x21a   :  { %1383 = vst.msk [vmem:[#allocation4 + $0x38] sm:$0xff] %vm90_vm0, %v1351_v5  ;;  %v583_v5 = vmul.f32 1.442695, %v4032_v17  ;;  %v496_v17 = vld [vmem:[#allocation3 + $0x98] sm:$0xff] }
 0x21b   :  { %1004 = vst.msk [vmem:[#allocation3 + $0x70] sm:$0xff] %vm90_vm0, %v971_v42  ;;  %v1297_v37 = vpop.xlane.xlu0 %1296  ;;  %1982 = vpow2.f32 %v581_v14  ;;  %v4034_v42 = vld [vmem:[#allocation54_spill] sm:$0xff]  ;;  %v587_v14 = vmul.f32 1.442695, %v4038_v61  ;;  %v4045_v4 = vld [vmem:[#allocation60_spill] sm:$0xff] }
 0x21c   :  { %v1352_v31 = vadd.f32 %v1297_v37, %v1062_v7  ;;  %v924_v20 = vpop.xlane.xlu1 %923  ;;  %v4035_v7 = vsub.f32 %v4033_v35, %v4034_v42  ;;  %v622_v37 = vmul.f32 %v1969_v40, %v494_v44  ;;  %1984 = vlog2.f32 %v1447_v63  ;;  %v4040_v40 = vld [vmem:[#allocation58_spill] sm:$0xff]  ;;  %v1451_v63 = vld [vmem:[#allocation3 + $0x40] sm:$0xff] }
 0x21d   :  { %v972_v54 = vadd.f32 %v924_v20, %v620_v58  ;;  %v1971_v58 = vpop.eup %1970  ;;  %v1448_v20 = vld [vmem:[#allocation3 + $0x28] sm:$0xff]  ;;  %1986 = vpow2.f32 %v583_v5  ;;  %v1066_v42 = vld [vmem:[#allocation4 + $0x60] sm:$0xff] }
 0x21e   :  { %1384 = vst.msk [vmem:[#allocation4 + $0x40] sm:$0xff] %vm90_vm0, %v1352_v31  ;;  %v585_v6 = vmul.f32 1.442695, %v4035_v7  ;;  %v495_v31 = vld [vmem:[#allocation3 + $0x90] sm:$0xff]  ;;  %v4046_v61 = vld [vmem:[#allocation62_spill] sm:$0xff] }
 0x21f   :  { %1005 = vst.msk [vmem:[#allocation3 + $0x78] sm:$0xff] %vm90_vm0, %v972_v54  ;;  %v1299_v56 = vpop.xlane.xlu0 %1298  ;;  %v1065_v54 = vld [vmem:[#allocation4 + $0x58] sm:$0xff] }
 0x220   :  { %v1353_v38 = vadd.f32 %v1299_v56, %v1063_v9  ;;  %v926_v52 = vpop.xlane.xlu1 %925  ;;  %v1973_v9 = vpop.eup %1972  ;;  %1988 = vpow2.f32 %v585_v6  ;;  %v1450_v6 = vld [vmem:[#allocation3 + $0x38] sm:$0xff] }
 0x221   :  { %v973_v41 = vadd.f32 %v926_v52, %v621_v43  ;;  %v1975_v56 = vpop.eup %1974  ;;  %v4039_v43 = vld [vmem:[#allocation56_spill] sm:$0xff]  ;;  %1990 = vlog2.f32 %v1448_v20  ;;  %v1452_v20 = vld [vmem:[#allocation3 + $0x48] sm:$0xff] }
 0x222   :  { %1385 = vst.msk [vmem:[#allocation4 + $0x48] sm:$0xff] %vm90_vm0, %v1353_v38  ;;  %v4041_v38 = vsub.f32 %v4039_v43, %v4040_v40  ;;  %1992 = vlog2.f32 %v1449_v0  ;;  %v1478_v7 = vmul.f32 0.6931472, %v1975_v56 }
 0x223   :  { %1006 = vst.msk [vmem:[#allocation3 + $0x80] sm:$0xff] %vm90_vm0, %v973_v41  ;;  %v1301_v10 = vpop.xlane.xlu0 %1300  ;;  %v623_v41 = vmul.f32 %v1971_v58, %v495_v31  ;;  %1994 = vpow2.f32 %v587_v14  ;;  %v4047_v14 = vsub.f32 %v4045_v4, %v4046_v61 }
 0x224   :  { %v1354_v30 = vadd.f32 %v1301_v10, %v1064_v34  ;;  %v928_v29 = vpop.xlane.xlu1 %927  ;;  %v589_v52 = vmul.f32 1.442695, %v4041_v38  ;;  %v1977_v34 = vpop.eup %1976  ;;  %v497_v38 = vld [vmem:[#allocation3 + $0xa0] sm:$0xff] }
 0x225   :  { %v974_v49 = vadd.f32 %v928_v29, %v622_v37  ;;  %v1979_v5 = vpop.eup %1978  ;;  %v4042_v37 = vld [vmem:[#allocation57_spill] sm:$0xff]  ;;  %v1476_v31 = vmul.f32 0.6931472, %v1977_v34  ;;  %v593_v0 = vmul.f32 1.442695, %v4047_v14 }
 0x226   :  { %1386 = vst.msk [vmem:[#allocation4 + $0x50] sm:$0xff] %vm90_vm0, %v1354_v30  ;;  %v1981_v10 = vpop.eup %1980  ;;  %1996 = vpow2.f32 %v589_v52  ;;  %v4043_v30 = vld [vmem:[#allocation59_spill] sm:$0xff]  ;;  %v1480_v56 = vmul.f32 0.6931472, %v1979_v5  ;;  %v1412_v52 = vld [vmem:[#allocation2 + $0x8] sm:$0xff] }
 0x227   :  { %1007 = vst.msk [vmem:[#allocation3 + $0x88] sm:$0xff] %vm90_vm0, %v974_v49  ;;  %v1303_v44 = vpop.xlane.xlu0 %1302  ;;  %v4044_v58 = vsub.f32 %v4042_v37, %v4043_v30  ;;  %v1983_v50 = vpop.eup %1982  ;;  %1998 = vlog2.f32 %v1451_v63  ;;  %v1067_v37 = vld [vmem:[#allocation4 + $0x68] sm:$0xff]  ;;  %v1540_v30 = vadd.f32 %v1478_v7, %v1412_v52  ;;  %v1413_v63 = vld [vmem:[#allocation2 + $0x10] sm:$0xff] }
 0x228   :  { %v1355_v16 = vadd.f32 %v1303_v44, %v1065_v54  ;;  %v930_v11 = vpop.xlane.xlu1 %929  ;;  %v624_v54 = vmul.f32 %v1973_v9, %v496_v17  ;;  %v4048_v44 = vld [vmem:[#allocation61_spill] sm:$0xff]  ;;  %2000 = vlog2.f32 %v1450_v6  ;;  %v1985_v5 = vpop.eup %1984  ;;  %v625_v61 = vmul.f32 %v1983_v50, %v497_v38  ;;  %v1414_v6 = vld [vmem:[#allocation2 + $0x18] sm:$0xff]  ;;  %v1068_v50 = vld [vmem:[#allocation4 + $0x70] sm:$0xff] }
 0x229   :  { %v975_v35 = vadd.f32 %v930_v11, %v623_v41  ;;  %v591_v29 = vmul.f32 1.442695, %v4044_v58  ;;  %v4049_v41 = vld [vmem:[#allocation63_spill] sm:$0xff]  ;;  %v1572_v11 = vld [vmem:[#allocation4 + $0x8] sm:$0xff]  ;;  %v1411_v9 = vld [vmem:[#allocation2] sm:$0xff]  ;;  %2002 = vlog2.f32 %v1452_v20  ;;  %v1987_v14 = vpop.eup %1986 }
 0x22a   :  { %1387 = vst.msk [vmem:[#allocation4 + $0x58] sm:$0xff] %vm90_vm0, %v1355_v16  ;;  %v4050_v16 = vsub.f32 %v4048_v44, %v4049_v41  ;;  %v1571_v17 = vld [vmem:[#allocation4] sm:$0xff]  ;;  %v1482_v58 = vmul.f32 0.6931472, %v1981_v10  ;;  %v1453_v44 = vld [vmem:[#allocation3 + $0x50] sm:$0xff]  ;;  %v498_v10 = vld [vmem:[#allocation3 + $0xa8] sm:$0xff]  ;;  %v1989_v52 = vpop.eup %1988 }
 0x22b   :  { %1008 = vst.msk [vmem:[#allocation3 + $0x90] sm:$0xff] %vm90_vm0, %v975_v35  ;;  %v1305_v49 = vpop.xlane.xlu0 %1304  ;;  %2004 = vpow2.f32 %v591_v29  ;;  %v4052_v41 = vld [vmem:[#allocation66_spill] sm:$0xff]  ;;  %v1991_v38 = vpop.eup %1990 }
 0x22c   :  { %v1356_v43 = vadd.f32 %v1305_v49, %v1066_v42  ;;  %v932_v40 = vpop.xlane.xlu1 %931  ;;  %v595_v34 = vmul.f32 1.442695, %v4050_v16  ;;  %v1539_v42 = vadd.f32 %v1476_v31, %v1411_v9  ;;  %v1573_v49 = vld [vmem:[#allocation4 + $0x10] sm:$0xff]  ;;  %2006 = vpow2.f32 %v593_v0  ;;  %v1574_v9 = vld [vmem:[#allocation4 + $0x18] sm:$0xff] }
 0x22d   :  { %v976_v35 = vadd.f32 %v932_v40, %v624_v54  ;;  %v1604_v54 = vsub.f32 %v1540_v30, %v1572_v11  ;;  %v1541_v40 = vadd.f32 %v1480_v56, %v1413_v63  ;;  %v4055_v0 = vld [vmem:[#allocation67_spill] sm:$0xff]  ;;  %v1484_v63 = vmul.f32 0.6931472, %v1985_v5  ;;  %v1415_v5 = vld [vmem:[#allocation2 + $0x20] sm:$0xff] }
 0x22e   :  { %1388 = vst.msk [vmem:[#allocation4 + $0x60] sm:$0xff] %vm90_vm0, %v1356_v43  ;;  %2008 = vpow2.f32 %v595_v34  ;;  %v4051_v43 = vld [vmem:[#allocation64_spill] sm:$0xff]  ;;  %v1603_v16 = vsub.f32 %v1539_v42, %v1571_v17  ;;  %v4056_v11 = vsub.f32 %v4054_v32, %v4055_v0  ;;  %v1993_v34 = vpop.eup %1992  ;;  %v626_v17 = vmul.f32 %v1987_v14, %v498_v10  ;;  %v4058_v0 = vld [vmem:[#allocation71_spill] sm:$0xff] }
 0x22f   :  { %1009 = vst.msk [vmem:[#allocation3 + $0x98] sm:$0xff] %vm90_vm0, %v976_v35  ;;  %v1307_v4 = vpop.xlane.xlu0 %1306  ;;  %v4053_v29 = vsub.f32 %v4051_v43, %v4052_v41  ;;  %v1454_v35 = vld [vmem:[#allocation3 + $0x58] sm:$0xff]  ;;  %v1605_v30 = vsub.f32 %v1541_v40, %v1573_v49  ;;  %2010 = vlog2.f32 %v1453_v44  ;;  %v1995_v42 = vpop.eup %1994  ;;  %v1455_v43 = vld [vmem:[#allocation3 + $0x60] sm:$0xff]  ;;  %v1488_v10 = vmul.f32 0.6931472, %v1993_v34  ;;  %v1576_v34 = vld [vmem:[#allocation4 + $0x28] sm:$0xff] }
 0x230   :  { %v1357_v7 = vadd.f32 %v1307_v4, %v1067_v37  ;;  %v934_v20 = vpop.xlane.xlu1 %933  ;;  %v599_v56 = vmul.f32 1.442695, %v4056_v11  ;;  %v1542_v37 = vadd.f32 %v1482_v58, %v1414_v6  ;;  %2012 = vlog2.f32 %v1454_v35  ;;  %v500_v49 = vld [vmem:[#allocation3 + $0xb8] sm:$0xff]  ;;  %v3635_v58 = vpop.eup %1996  ;;  %v1575_v40 = vld [vmem:[#allocation4 + $0x20] sm:$0xff] }
 0x231   :  { %v597_v31 = vmul.f32 1.442695, %v4053_v29  ;;  %v977_v60 = vadd.f32 %v934_v20, %v625_v61  ;;  %v1636_v61 = vmul.f32 %v1604_v54, %v3107_v3  ;;  %v499_v29 = vld [vmem:[#allocation3 + $0xb0] sm:$0xff]  ;;  %v1635_v6 = vmul.f32 %v1603_v16, %v3112_v33  ;;  %v1069_v14 = vld [vmem:[#allocation4 + $0x78] sm:$0xff] }
 0x232   :  { %1389 = vst.msk [vmem:[#allocation4 + $0x68] sm:$0xff] %vm90_vm0, %v1357_v7  ;;  %v1606_v20 = vsub.f32 %v1542_v37, %v1574_v9  ;;  %v1999_v7 = vpop.eup %1998  ;;  %v1637_v3 = vmul.f32 %v1605_v30, %v3131_v59  ;;  %v1543_v54 = vadd.f32 %v1484_v63, %v1415_v5  ;;  %v1456_v9 = vld [vmem:[#allocation3 + $0x68] sm:$0xff]  ;;  %v1457_v33 = vld [vmem:[#allocation3 + $0x70] sm:$0xff]  ;;  %v628_v37 = vmul.f32 %v1995_v42, %v500_v49  ;;  %v1070_v42 = vld [vmem:[#allocation4 + $0x80] sm:$0xff] }
 0x233   :  { %1010 = vst.msk [vmem:[#allocation3 + $0xa0] sm:$0xff] %vm90_vm0, %v977_v60  ;;  %v1309_v4 = vpop.xlane.xlu0 %1308  ;;  %2014 = vpow2.f32 %v597_v31  ;;  %v1486_v60 = vmul.f32 0.6931472, %v1991_v38  ;;  %v2001_v35 = vpop.eup %2000  ;;  %v627_v38 = vmul.f32 %v1989_v52, %v499_v29  ;;  %v1669_v59 = vsel %vm90_vm0, %v1636_v61, 0.0  ;;  %v1417_v5 = vld [vmem:[#allocation2 + $0x30] sm:$0xff] }
 0x234   :  { %v1358_v41 = vadd.f32 %v1309_v4, %v1068_v50  ;;  %v936_v32 = vpop.xlane.xlu1 %935  ;;  %2016 = vpow2.f32 %v599_v56  ;;  %v4057_v50 = vld [vmem:[#allocation68_spill] sm:$0xff]  ;;  %v2003_v56 = vpop.eup %2002  ;;  %v1416_v4 = vld [vmem:[#allocation2 + $0x28] sm:$0xff]  ;;  %v1638_v30 = vmul.f32 %v1606_v20, %v3142_v8  ;;  %v1607_v63 = vsub.f32 %v1543_v54, %v1575_v40  ;;  %v1577_v8 = vld [vmem:[#allocation4 + $0x30] sm:$0xff] }
 0x235   :  { %v978_v44 = vadd.f32 %v936_v32, %v626_v17  ;;  %v4059_v11 = vsub.f32 %v4057_v50, %v4058_v0  ;;  %2018 = vlog2.f32 %v1455_v43  ;;  %v3646_v32 = vpop.eup %2004  ;;  %v1668_v43 = vsel %vm90_vm0, %v1635_v6, 0.0 }
 0x236   :  { %1390 = vst.msk [vmem:[#allocation4 + $0x70] sm:$0xff] %vm90_vm0, %v1358_v41  ;;  %v1544_v50 = vadd.f32 %v1486_v60, %v1416_v4  ;;  %2020 = vlog2.f32 %v1456_v9  ;;  %v3649_v29 = vpop.eup %2006  ;;  %v1671_v61 = vsel %vm90_vm0, %v1637_v3, 0.0  ;;  %v1545_v49 = vadd.f32 %v1488_v10, %v1417_v5  ;;  %v1459_v9 = vld [vmem:[#allocation3 + $0x80] sm:$0xff] }
 0x237   :  { %v601_v31 = vmul.f32 1.442695, %v4059_v11  ;;  %1011 = vst.msk [vmem:[#allocation3 + $0xa8] sm:$0xff] %vm90_vm0, %v978_v44  ;;  %v1311_v16 = vpop.xlane.xlu0 %1310  ;;  %v1458_v44 = vld [vmem:[#allocation3 + $0x78] sm:$0xff]  ;;  %v1490_v20 = vmul.f32 0.6931472, %v2001_v35  ;;  %2022 = vlog2.f32 %v1457_v33  ;;  %v1639_v3 = vmul.f32 %v1607_v63, %v3159_v46 }
 0x238   :  { %v1359_v17 = vadd.f32 %v1311_v16, %v1069_v14  ;;  %v938_v41 = vpop.xlane.xlu1 %937  ;;  %v3653_v40 = vpop.eup %2008  ;;  %v1670_v14 = vadd.f32 %v1669_v59, %v1668_v43  ;;  %v1608_v54 = vsub.f32 %v1544_v50, %v1576_v34  ;;  %v1492_v6 = vmul.f32 0.6931472, %v1999_v7  ;;  %v501_v11 = vld [vmem:[#allocation3 + $0xc0] sm:$0xff]  ;;  %v1578_v34 = vld [vmem:[#allocation4 + $0x38] sm:$0xff]  ;;  %v1460_v46 = vld [vmem:[#allocation3 + $0x88] sm:$0xff] }
 0x239   :  { %v979_v52 = vadd.f32 %v938_v41, %v627_v38  ;;  %v1494_v60 = vmul.f32 0.6931472, %v2003_v56  ;;  %v1673_v16 = vsel %vm90_vm0, %v1638_v30, 0.0  ;;  %2024 = vlog2.f32 %v1458_v44  ;;  %v2011_v33 = vpop.eup %2010  ;;  %v1418_v38 = vld [vmem:[#allocation2 + $0x38] sm:$0xff]  ;;  %v1071_v56 = vld [vmem:[#allocation4 + $0x88] sm:$0xff]  ;;  %v1419_v5 = vld [vmem:[#allocation2 + $0x40] sm:$0xff] }
 0x23a   :  { %1391 = vst.msk [vmem:[#allocation4 + $0x78] sm:$0xff] %vm90_vm0, %v1359_v17  ;;  %2026 = vpow2.f32 %v601_v31  ;;  %v1672_v4 = vadd.f32 %v1671_v61, %v1670_v14  ;;  %v1609_v59 = vsub.f32 %v1545_v49, %v1577_v8  ;;  %v2013_v17 = vpop.eup %2012  ;;  %v1420_v41 = vld [vmem:[#allocation2 + $0x48] sm:$0xff]  ;;  %v4060_v43 = vld [vmem:[#allocation69_spill] sm:$0xff]  ;;  %v4061_v50 = vld [vmem:[#allocation72_spill] sm:$0xff]  ;;  %v1546_v57 = vadd.f32 %v1490_v20, %v1418_v38 }
 0x23b   :  { %1012 = vst.msk [vmem:[#allocation3 + $0xb0] sm:$0xff] %vm90_vm0, %v979_v52  ;;  %v1313_v0 = vpop.xlane.xlu0 %1312  ;;  %v4062_v52 = vsub.f32 %v4060_v43, %v4061_v50  ;;  %2028 = vlog2.f32 %v1459_v9  ;;  %v629_v63 = vmul.f32 %v3635_v58, %v501_v11  ;;  %v1579_v61 = vld [vmem:[#allocation4 + $0x40] sm:$0xff]  ;;  %v1548_v49 = vadd.f32 %v1494_v60, %v1420_v41  ;;  %v502_v14 = vld [vmem:[#allocation3 + $0xc8] sm:$0xff]  ;;  %v1461_v11 = vld [vmem:[#allocation3 + $0x90] sm:$0xff] }
 0x23c   :  { %v1360_v10 = vadd.f32 %v1313_v0, %v1070_v42  ;;  %v940_v35 = vpop.xlane.xlu1 %939  ;;  %v1674_v44 = vadd.f32 %v1673_v16, %v1672_v4  ;;  %v1547_v42 = vadd.f32 %v1492_v6, %v1419_v5  ;;  %v503_v0 = vld [vmem:[#allocation3 + $0xd0] sm:$0xff]  ;;  %v1675_v9 = vsel %vm90_vm0, %v1639_v3, 0.0  ;;  %v1462_v41 = vld [vmem:[#allocation3 + $0x98] sm:$0xff] }
 0x23d   :  { %v980_v7 = vadd.f32 %v940_v35, %v628_v37  ;;  %v603_v30 = vmul.f32 1.442695, %v4062_v52  ;;  %v3663_v31 = vpop.eup %2014  ;;  %v1640_v37 = vmul.f32 %v1608_v54, %v3174_v24  ;;  %v1580_v35 = vld [vmem:[#allocation4 + $0x48] sm:$0xff]  ;;  %v1496_v58 = vmul.f32 0.6931472, %v2011_v33  ;;  %v1072_v60 = vld [vmem:[#allocation4 + $0x90] sm:$0xff] }
 0x23e   :  { %1392 = vst.msk [vmem:[#allocation4 + $0x80] sm:$0xff] %vm90_vm0, %v1360_v10  ;;  %v3667_v20 = vpop.eup %2016  ;;  %v1610_v10 = vsub.f32 %v1546_v57, %v1578_v34  ;;  %v1641_v24 = vmul.f32 %v1609_v59, %v3186_v48  ;;  %2030 = vlog2.f32 %v1460_v46  ;;  %v1498_v54 = vmul.f32 0.6931472, %v2013_v17  ;;  %v1421_v34 = vld [vmem:[#allocation2 + $0x50] sm:$0xff]  ;;  %v1463_v17 = vld [vmem:[#allocation3 + $0xa0] sm:$0xff]  ;;  %v1422_v52 = vld [vmem:[#allocation2 + $0x58] sm:$0xff] }
 0x23f   :  { %1013 = vst.msk [vmem:[#allocation3 + $0xb8] sm:$0xff] %vm90_vm0, %v980_v7  ;;  %v1315_v8 = vpop.xlane.xlu0 %1314  ;;  %v2019_v4 = vpop.eup %2018  ;;  %2032 = vpow2.f32 %v603_v30  ;;  %v1611_v7 = vsub.f32 %v1547_v42, %v1579_v61  ;;  %v630_v3 = vmul.f32 %v3646_v32, %v502_v14  ;;  %v631_v57 = vmul.f32 %v3649_v29, %v503_v0  ;;  %v1581_v48 = vld [vmem:[#allocation4 + $0x50] sm:$0xff]  ;;  %v504_v42 = vld [vmem:[#allocation3 + $0xd8] sm:$0xff] }
 0x240   :  { %v1361_v38 = vadd.f32 %v1315_v8, %v1071_v56  ;;  %v942_v16 = vpop.xlane.xlu1 %941  ;;  %v2021_v33 = vpop.eup %2020  ;;  %v1676_v56 = vadd.f32 %v1675_v9, %v1674_v44  ;;  %v1677_v5 = vsel %vm90_vm0, %v1640_v37, 0.0  ;;  %v1612_v43 = vsub.f32 %v1548_v49, %v1580_v35  ;;  %v1582_v37 = vld [vmem:[#allocation4 + $0x58] sm:$0xff] }
 0x241   :  { %v981_v6 = vadd.f32 %v942_v16, %v629_v63  ;;  %2034 = vlog2.f32 %v1461_v11  ;;  %v2023_v50 = vpop.eup %2022  ;;  %v1642_v30 = vmul.f32 %v1610_v10, %v3207_v28  ;;  %v1549_v46 = vadd.f32 %v1496_v58, %v1421_v34  ;;  %v1073_v8 = vld [vmem:[#allocation4 + $0x98] sm:$0xff]  ;;  %v1464_v28 = vld [vmem:[#allocation3 + $0xa8] sm:$0xff]  ;;  %v1423_v58 = vld [vmem:[#allocation2 + $0x60] sm:$0xff] }
 0x242   :  { %1393 = vst.msk [vmem:[#allocation4 + $0x88] sm:$0xff] %vm90_vm0, %v1361_v38  ;;  %v1500_v32 = vmul.f32 0.6931472, %v2019_v4  ;;  %v1679_v44 = vsel %vm90_vm0, %v1641_v24, 0.0  ;;  %v1550_v61 = vadd.f32 %v1498_v54, %v1422_v52  ;;  %2036 = vlog2.f32 %v1462_v41  ;;  %v1583_v16 = vld [vmem:[#allocation4 + $0x60] sm:$0xff] }
 0x243   :  { %1014 = vst.msk [vmem:[#allocation3 + $0xc0] sm:$0xff] %vm90_vm0, %v981_v6  ;;  %v1317_v59 = vpop.xlane.xlu0 %1316  ;;  %v2025_v14 = vpop.eup %2024  ;;  %v1643_v0 = vmul.f32 %v1611_v7, %v3228_v53  ;;  %v1613_v9 = vsub.f32 %v1549_v46, %v1581_v48  ;;  %v1502_v35 = vmul.f32 0.6931472, %v2021_v33  ;;  %2038 = vlog2.f32 %v1463_v17  ;;  %v1424_v6 = vld [vmem:[#allocation2 + $0x68] sm:$0xff]  ;;  %v1585_v46 = vld [vmem:[#allocation4 + $0x70] sm:$0xff] }
 0x244   :  { %v1362_v63 = vadd.f32 %v1317_v59, %v1072_v60  ;;  %v944_v29 = vpop.xlane.xlu1 %943  ;;  %v3680_v10 = vpop.eup %2026  ;;  %v1678_v11 = vadd.f32 %v1677_v5, %v1676_v56  ;;  %v1644_v38 = vmul.f32 %v1612_v43, %v3248_v15  ;;  %v1504_v4 = vmul.f32 0.6931472, %v2023_v50  ;;  %v1584_v48 = vld [vmem:[#allocation4 + $0x68] sm:$0xff]  ;;  %v1074_v15 = vld [vmem:[#allocation4 + $0xa0] sm:$0xff]  ;;  %v1465_v43 = vld [vmem:[#allocation3 + $0xb0] sm:$0xff] }
 0x245   :  { %v982_v49 = vadd.f32 %v944_v29, %v630_v3  ;;  %v632_v54 = vmul.f32 %v3653_v40, %v504_v42  ;;  %v2029_v53 = vpop.eup %2028  ;;  %v1681_v60 = vsel %vm90_vm0, %v1642_v30, 0.0  ;;  %v1614_v7 = vsub.f32 %v1550_v61, %v1582_v37  ;;  %v1425_v59 = vld [vmem:[#allocation2 + $0x70] sm:$0xff]  ;;  %v1426_v37 = vld [vmem:[#allocation2 + $0x78] sm:$0xff] }
 0x246   :  { %1394 = vst.msk [vmem:[#allocation4 + $0x90] sm:$0xff] %vm90_vm0, %v1362_v63  ;;  %v1551_v41 = vadd.f32 %v1500_v32, %v1423_v58  ;;  %v1680_v34 = vadd.f32 %v1679_v44, %v1678_v11  ;;  %v1506_v56 = vmul.f32 0.6931472, %v2025_v14  ;;  %2040 = vlog2.f32 %v1464_v28  ;;  %v1466_v44 = vld [vmem:[#allocation3 + $0xb8] sm:$0xff] }
 0x247   :  { %1015 = vst.msk [vmem:[#allocation3 + $0xc8] sm:$0xff] %vm90_vm0, %v982_v49  ;;  %v1319_v24 = vpop.xlane.xlu0 %1318  ;;  %v1683_v17 = vsel %vm90_vm0, %v1643_v0, 0.0  ;;  %v1645_v40 = vmul.f32 %v1613_v9, %v3269_v25  ;;  %v1552_v52 = vadd.f32 %v1502_v35, %v1424_v6  ;;  %v1685_v63 = vsel %vm90_vm0, %v1644_v38, 0.0  ;;  %v505_v9 = vld [vmem:[#allocation3 + $0xe0] sm:$0xff] }
 0x248   :  { %v1363_v3 = vadd.f32 %v1319_v24, %v1073_v8  ;;  %v946_v33 = vpop.xlane.xlu1 %945  ;;  %v1615_v50 = vsub.f32 %v1551_v41, %v1583_v16  ;;  %v2031_v30 = vpop.eup %2030  ;;  %v1682_v32 = vadd.f32 %v1681_v60, %v1680_v34  ;;  %v1553_v29 = vadd.f32 %v1504_v4, %v1425_v59  ;;  %v1586_v8 = vld [vmem:[#allocation4 + $0x78] sm:$0xff]  ;;  %v1075_v16 = vld [vmem:[#allocation4 + $0xa8] sm:$0xff]  ;;  %v1427_v4 = vld [vmem:[#allocation2 + $0x80] sm:$0xff] }
 0x249   :  { %v983_v5 = vadd.f32 %v946_v33, %v631_v57  ;;  %v1508_v42 = vmul.f32 0.6931472, %v2029_v53  ;;  %v3691_v61 = vpop.eup %2032  ;;  %v1646_v25 = vmul.f32 %v1614_v7, %v3290_v36  ;;  %v1616_v49 = vsub.f32 %v1552_v52, %v1584_v48  ;;  %v1587_v6 = vld [vmem:[#allocation4 + $0x80] sm:$0xff]  ;;  %v1588_v52 = vld [vmem:[#allocation4 + $0x88] sm:$0xff] }
 0x24a   :  { %1395 = vst.msk [vmem:[#allocation4 + $0x98] sm:$0xff] %vm90_vm0, %v1363_v3  ;;  %2042 = vlog2.f32 %v1465_v43  ;;  %v1684_v28 = vadd.f32 %v1683_v17, %v1682_v32  ;;  %v1617_v58 = vsub.f32 %v1553_v29, %v1585_v46  ;;  %v1554_v11 = vadd.f32 %v1506_v56, %v1426_v37  ;;  %v1467_v34 = vld [vmem:[#allocation3 + $0xc0] sm:$0xff]  ;;  %v506_v43 = vld [vmem:[#allocation3 + $0xe8] sm:$0xff] }
 0x24b   :  { %1016 = vst.msk [vmem:[#allocation3 + $0xd0] sm:$0xff] %vm90_vm0, %v983_v5  ;;  %v1321_v57 = vpop.xlane.xlu0 %1320  ;;  %v2035_v35 = vpop.eup %2034  ;;  %v1687_v24 = vsel %vm90_vm0, %v1645_v40, 0.0  ;;  %v1647_v53 = vmul.f32 %v1615_v50, %v3313_v27  ;;  %v1510_v36 = vmul.f32 0.6931472, %v2031_v30  ;;  %2044 = vlog2.f32 %v1466_v44  ;;  %v1076_v30 = vld [vmem:[#allocation4 + $0xb0] sm:$0xff]  ;;  %v1428_v32 = vld [vmem:[#allocation2 + $0x88] sm:$0xff] }
 0x24c   :  { %v1364_v14 = vadd.f32 %v1321_v57, %v1074_v15  ;;  %v948_v0 = vpop.xlane.xlu1 %947  ;;  %v2037_v60 = vpop.eup %2036  ;;  %v1686_v7 = vadd.f32 %v1685_v63, %v1684_v28  ;;  %v1618_v41 = vsub.f32 %v1554_v11, %v1586_v8  ;;  %v1555_v3 = vadd.f32 %v1508_v42, %v1427_v4 }
 0x24d   :  { %v984_v38 = vadd.f32 %v948_v0, %v632_v54  ;;  %v633_v54 = vmul.f32 %v3663_v31, %v505_v9  ;;  %v2039_v48 = vpop.eup %2038  ;;  %v1689_v56 = vsel %vm90_vm0, %v1646_v25, 0.0  ;;  %v1648_v27 = vmul.f32 %v1616_v49, %v3340_v45  ;;  %v1589_v49 = vld [vmem:[#allocation4 + $0x90] sm:$0xff] }
 0x24e   :  { %1396 = vst.msk [vmem:[#allocation4 + $0xa0] sm:$0xff] %vm90_vm0, %v1364_v14  ;;  %v1512_v59 = vmul.f32 0.6931472, %v2035_v35  ;;  %v1688_v17 = vadd.f32 %v1687_v24, %v1686_v7  ;;  %v1649_v40 = vmul.f32 %v1617_v58, %v3363_v13  ;;  %v1619_v50 = vsub.f32 %v1555_v3, %v1587_v6  ;;  %v1429_v13 = vld [vmem:[#allocation2 + $0x90] sm:$0xff]  ;;  %v1430_v35 = vld [vmem:[#allocation2 + $0x98] sm:$0xff]  ;;  %v1468_v4 = vld [vmem:[#allocation3 + $0xc8] sm:$0xff] }
 0x24f   :  { %1017 = vst.msk [vmem:[#allocation3 + $0xd8] sm:$0xff] %vm90_vm0, %v984_v38  ;;  %v1323_v33 = vpop.xlane.xlu0 %1322  ;;  %v1691_v31 = vsel %vm90_vm0, %v1647_v53, 0.0  ;;  %v1514_v63 = vmul.f32 0.6931472, %v2037_v60  ;;  %2046 = vlog2.f32 %v1467_v34  ;;  %v1556_v29 = vadd.f32 %v1510_v36, %v1428_v32  ;;  %v507_v9 = vld [vmem:[#allocation3 + $0xf0] sm:$0xff] }
 0x250   :  { %v1365_v5 = vadd.f32 %v1323_v33, %v1075_v16  ;;  %v950_v15 = vpop.xlane.xlu1 %949  ;;  %v2041_v45 = vpop.eup %2040  ;;  %v1690_v42 = vadd.f32 %v1689_v56, %v1688_v17  ;;  %v634_v44 = vmul.f32 %v3667_v20, %v506_v43  ;;  %v1516_v25 = vmul.f32 0.6931472, %v2039_v48  ;;  %v1077_v16 = vld [vmem:[#allocation4 + $0xb8] sm:$0xff] }
 0x251   :  { %v985_v46 = vadd.f32 %v950_v15, %v633_v54  ;;  %v1650_v8 = vmul.f32 %v1618_v41, %v3383_v2  ;;  %v1557_v28 = vadd.f32 %v1512_v59, %v1429_v13  ;;  %v1620_v58 = vsub.f32 %v1556_v29, %v1588_v52  ;;  %v1590_v24 = vld [vmem:[#allocation4 + $0x98] sm:$0xff]  ;;  %v1431_v2 = vld [vmem:[#allocation2 + $0xa0] sm:$0xff]  ;;  %v1432_v52 = vld [vmem:[#allocation2 + $0xa8] sm:$0xff] }
 0x252   :  { %1397 = vst.msk [vmem:[#allocation4 + $0xa8] sm:$0xff] %vm90_vm0, %v1365_v5  ;;  %v1469_v37 = vld [vmem:[#allocation3 + $0xd0] sm:$0xff]  ;;  %v1693_v11 = vsel %vm90_vm0, %v1648_v27, 0.0  ;;  %v1651_v20 = vmul.f32 %v1619_v50, %v3407_v51  ;;  %v1692_v53 = vadd.f32 %v1691_v31, %v1690_v42  ;;  %v1695_v6 = vsel %vm90_vm0, %v1649_v40, 0.0  ;;  %v508_v43 = vld [vmem:[#allocation3 + $0xf8] sm:$0xff]  ;;  %v1078_v50 = vld [vmem:[#allocation4 + $0xc0] sm:$0xff] }
 0x253   :  { %1018 = vst.msk [vmem:[#allocation3 + $0xe0] sm:$0xff] %vm90_vm0, %v985_v46  ;;  %v1325_v57 = vpop.xlane.xlu0 %1324  ;;  %v1518_v60 = vmul.f32 0.6931472, %v2041_v45  ;;  %2048 = vlog2.f32 %v1469_v37  ;;  %v1558_v7 = vadd.f32 %v1514_v63, %v1430_v35  ;;  %v1621_v41 = vsub.f32 %v1557_v28, %v1589_v49  ;;  %v1433_v49 = vld [vmem:[#allocation2 + $0xb0] sm:$0xff] }
 0x254   :  { %v1366_v14 = vadd.f32 %v1325_v57, %v1076_v30  ;;  %v952_v0 = vpop.xlane.xlu1 %951  ;;  %v2043_v36 = vpop.eup %2042  ;;  %v635_v33 = vmul.f32 %v3680_v10, %v507_v9  ;;  %v1559_v34 = vadd.f32 %v1516_v25, %v1431_v2  ;;  %v1694_v51 = vadd.f32 %v1693_v11, %v1692_v53  ;;  %v1080_v35 = vld [vmem:[#allocation4 + $0xd0] sm:$0xff]  ;;  %v1434_v11 = vld [vmem:[#allocation2 + $0xb8] sm:$0xff] }
 0x255   :  { %v986_v38 = vadd.f32 %v952_v0, %v634_v44  ;;  %v1591_v48 = vld [vmem:[#allocation4 + $0xa0] sm:$0xff]  ;;  %v1697_v56 = vsel %vm90_vm0, %v1650_v8, 0.0  ;;  %v2045_v27 = vpop.eup %2044  ;;  %2050 = vlog2.f32 %v1468_v4  ;;  %v1622_v59 = vsub.f32 %v1558_v7, %v1590_v24 }
 0x256   :  { %1398 = vst.msk [vmem:[#allocation4 + $0xb0] sm:$0xff] %vm90_vm0, %v1366_v14  ;;  %v1470_v54 = vld [vmem:[#allocation3 + $0xd8] sm:$0xff]  ;;  %v1652_v17 = vmul.f32 %v1620_v58, %v3429_v21  ;;  %v1520_v46 = vmul.f32 0.6931472, %v2043_v36  ;;  %v1696_v10 = vadd.f32 %v1695_v6, %v1694_v51  ;;  %v1699_v32 = vsel %vm90_vm0, %v1651_v20, 0.0 }
 0x257   :  { %1019 = vst.msk [vmem:[#allocation3 + $0xe8] sm:$0xff] %vm90_vm0, %v986_v38  ;;  %v1327_v3 = vpop.xlane.xlu0 %1326  ;;  %2052 = vlog2.f32 %v1470_v54  ;;  %v1560_v63 = vadd.f32 %v1518_v60, %v1432_v52  ;;  %v1623_v29 = vsub.f32 %v1559_v34, %v1591_v48  ;;  %v1653_v45 = vmul.f32 %v1621_v41, %v3439_v19  ;;  %v1081_v48 = vld [vmem:[#allocation4 + $0xd8] sm:$0xff] }
 0x258   :  { %v1367_v5 = vadd.f32 %v1327_v3, %v1077_v16  ;;  %v954_v15 = vpop.xlane.xlu1 %953  ;;  %v636_v21 = vmul.f32 %v3691_v61, %v508_v43  ;;  %v1522_v57 = vmul.f32 0.6931472, %v2045_v27  ;;  %v1698_v44 = vadd.f32 %v1697_v56, %v1696_v10  ;;  %v1079_v61 = vld [vmem:[#allocation4 + $0xc8] sm:$0xff] }
 0x259   :  { %v987_v40 = vadd.f32 %v954_v15, %v635_v33  ;;  %v1592_v30 = vld [vmem:[#allocation4 + $0xa8] sm:$0xff]  ;;  %v2047_v13 = vpop.eup %2046  ;;  %v1654_v14 = vmul.f32 %v1622_v59, %v3447_v22  ;;  %v1701_v0 = vsel %vm90_vm0, %v1652_v17, 0.0  ;;  %v1561_v19 = vadd.f32 %v1520_v46, %v1433_v49  ;;  %v1082_v33 = vld [vmem:[#allocation4 + $0xe0] sm:$0xff] }
 0x25a   :  { %1399 = vst.msk [vmem:[#allocation4 + $0xb8] sm:$0xff] %vm90_vm0, %v1367_v5  ;;  %v1471_v31 = vld [vmem:[#allocation3 + $0xe0] sm:$0xff]  ;;  %v1624_v8 = vsub.f32 %v1560_v63, %v1592_v30  ;;  %v1700_v58 = vadd.f32 %v1699_v32, %v1698_v44  ;;  %v1655_v16 = vmul.f32 %v1623_v29, %v3457_v55  ;;  %v1703_v4 = vsel %vm90_vm0, %v1653_v45, 0.0  ;;  %v1084_v32 = vld [vmem:[#allocation4 + $0xf0] sm:$0xff] }
 0x25b   :  { %1020 = vst.msk [vmem:[#allocation3 + $0xf0] sm:$0xff] %vm90_vm0, %v987_v40  ;;  %v1329_v42 = vpop.xlane.xlu0 %1328  ;;  %2054 = vlog2.f32 %v1471_v31  ;;  %v1524_v22 = vmul.f32 0.6931472, %v2047_v13  ;;  %v1562_v20 = vadd.f32 %v1522_v57, %v1434_v11  ;;  %v1705_v41 = vsel %vm90_vm0, %v1654_v14, 0.0  ;;  %v1435_v15 = vld [vmem:[#allocation2 + $0xc0] sm:$0xff]  ;;  %v1436_v14 = vld [vmem:[#allocation2 + $0xc8] sm:$0xff] }
 0x25c   :  { %v1368_v37 = vadd.f32 %v1329_v42, %v1078_v50  ;;  %v956_v25 = vpop.xlane.xlu1 %955  ;;  %v1702_v6 = vadd.f32 %v1701_v0, %v1700_v58  ;;  %v1656_v7 = vmul.f32 %v1624_v8, %v3464_v26  ;;  %v1707_v27 = vsel %vm90_vm0, %v1655_v16, 0.0  ;;  %v1083_v42 = vld [vmem:[#allocation4 + $0xe8] sm:$0xff]  ;;  %v1085_v11 = vld [vmem:[#allocation4 + $0xf8] sm:$0xff] }
 0x25d   :  { %v988_v9 = vadd.f32 %v956_v25, %v636_v21  ;;  %v1593_v28 = vld [vmem:[#allocation4 + $0xb0] sm:$0xff]  ;;  %v2049_v36 = vpop.eup %2048  ;;  %v1563_v52 = vadd.f32 %v1524_v22, %v1435_v15  ;;  %v1439_v22 = vld [vmem:[#allocation2 + $0xe0] sm:$0xff]  ;;  %v1440_v15 = vld [vmem:[#allocation2 + $0xe8] sm:$0xff] }
 0x25e   :  { %1400 = vst.msk [vmem:[#allocation4 + $0xc0] sm:$0xff] %vm90_vm0, %v1368_v37  ;;  %v1472_v38 = vld [vmem:[#allocation3 + $0xe8] sm:$0xff]  ;;  %v1625_v53 = vsub.f32 %v1561_v19, %v1593_v28  ;;  %v1704_v54 = vadd.f32 %v1703_v4, %v1702_v6  ;;  %v1528_v43 = vmul.f32 0.6931472, %v2049_v36  ;;  %v1709_v46 = vsel %vm90_vm0, %v1656_v7, 0.0  ;;  %v1437_v21 = vld [vmem:[#allocation2 + $0xd0] sm:$0xff] }
 0x25f   :  { %1021 = vst.msk [vmem:[#allocation3 + $0xf8] sm:$0xff] %vm90_vm0, %v988_v9  ;;  %v1333_v24 = vpop.xlane.xlu0 %1332  ;;  %2056 = vlog2.f32 %v1472_v38  ;;  %v2051_v34 = vpop.eup %2050 }
 0x260   :  { %v1370_v2 = vadd.f32 %v1333_v24, %v1080_v35  ;;  %v1331_v60 = vpop.xlane.xlu1 %1330  ;;  %v1657_v26 = vmul.f32 %v1625_v53, %v3475_v39  ;;  %v1706_v59 = vadd.f32 %v1705_v41, %v1704_v54  ;;  %v1526_v31 = vmul.f32 0.6931472, %v2051_v34  ;;  %v1438_v24 = vld [vmem:[#allocation2 + $0xd8] sm:$0xff] }
 0x261   :  { %v1369_v3 = vadd.f32 %v1331_v60, %v1079_v61  ;;  %v1594_v55 = vld [vmem:[#allocation4 + $0xb8] sm:$0xff]  ;;  %v2053_v17 = vpop.eup %2052  ;;  %v1565_v13 = vadd.f32 %v1528_v43, %v1437_v21 }
 0x262   :  { %1402 = vst.msk [vmem:[#allocation4 + $0xd0] sm:$0xff] %vm90_vm0, %v1370_v2  ;;  %v1473_v51 = vld [vmem:[#allocation3 + $0xf0] sm:$0xff]  ;;  %v1626_v56 = vsub.f32 %v1562_v20, %v1594_v55  ;;  %v1708_v45 = vadd.f32 %v1707_v27, %v1706_v59  ;;  %v1711_v25 = vsel %vm90_vm0, %v1657_v26, 0.0  ;;  %v1530_v0 = vmul.f32 0.6931472, %v2053_v17 }
 0x263   :  { %1401 = vst.msk [vmem:[#allocation4 + $0xc8] sm:$0xff] %vm90_vm0, %v1369_v3  ;;  %v1337_v5 = vpop.xlane.xlu0 %1336  ;;  %2058 = vlog2.f32 %v1473_v51  ;;  %v1564_v19 = vadd.f32 %v1526_v31, %v1436_v14 }
 0x264   :  { %v1372_v40 = vadd.f32 %v1337_v5, %v1082_v33  ;;  %v1335_v50 = vpop.xlane.xlu1 %1334  ;;  %v1658_v29 = vmul.f32 %v1626_v56, %v3479_v47  ;;  %v1710_v37 = vadd.f32 %v1709_v46, %v1708_v45  ;;  %v1566_v6 = vadd.f32 %v1530_v0, %v1438_v24  ;;  %v1441_v56 = vld [vmem:[#allocation2 + $0xf0] sm:$0xff] }
 0x265   :  { %v2055_v30 = vpop.eup %2054  ;;  %v1371_v10 = vadd.f32 %v1335_v50, %v1081_v48  ;;  %v1595_v63 = vld [vmem:[#allocation4 + $0xc0] sm:$0xff] }
 0x266   :  { %1404 = vst.msk [vmem:[#allocation4 + $0xe0] sm:$0xff] %vm90_vm0, %v1372_v40  ;;  %v1474_v39 = vld [vmem:[#allocation3 + $0xf8] sm:$0xff]  ;;  %v1627_v57 = vsub.f32 %v1563_v52, %v1595_v63  ;;  %v1532_v47 = vmul.f32 0.6931472, %v2055_v30  ;;  %v1713_v58 = vsel %vm90_vm0, %v1658_v29, 0.0  ;;  %v1712_v4 = vadd.f32 %v1711_v25, %v1710_v37 }
 0x267   :  { %1403 = vst.msk [vmem:[#allocation4 + $0xd8] sm:$0xff] %vm90_vm0, %v1371_v10  ;;  %v1341_v44 = vpop.xlane.xlu0 %1340  ;;  %2060 = vlog2.f32 %v1474_v39  ;;  %v4064_v39 = vld [vmem:[#allocation13_spill] sm:$0xff] }
 0x268   :  { %v1374_v49 = vadd.f32 %v1341_v44, %v1084_v32  ;;  %v1339_v8 = vpop.xlane.xlu1 %1338  ;;  %v1659_v9 = vmul.f32 %v1627_v57, %v3491_v12  ;;  %v1567_v36 = vadd.f32 %v1532_v47, %v1439_v22  ;;  %v1714_v2 = vadd.f32 %v1713_v58, %v1712_v4  ;;  %v1442_v32 = vld [vmem:[#allocation2 + $0xf8] sm:$0xff] }
 0x269   :  { %v1373_v35 = vadd.f32 %v1339_v8, %v1083_v42  ;;  %v1597_v28 = vld [vmem:[#allocation4 + $0xd0] sm:$0xff]  ;;  %v2057_v61 = vpop.eup %2056  ;;  %v4063_v42 = vld [vmem:[#allocation14_spill] sm:$0xff] }
 0x26a   :  { %1406 = vst.msk [vmem:[#allocation4 + $0xf0] sm:$0xff] %vm90_vm0, %v1374_v49  ;;  %v1596_v38 = vld [vmem:[#allocation4 + $0xc8] sm:$0xff]  ;;  %v1629_v16 = vsub.f32 %v1565_v13, %v1597_v28  ;;  %v1715_v53 = vsel %vm90_vm0, %v1659_v9, 0.0  ;;  %v1534_v41 = vmul.f32 0.6931472, %v2057_v61  ;;  %v4065_v49 = vld [vmem:[#allocation15_spill] sm:$0xff] }
 0x26b   :  { %1405 = vst.msk [vmem:[#allocation4 + $0xe8] sm:$0xff] %vm90_vm0, %v1373_v35  ;;  %v1628_v20 = vsub.f32 %v1564_v19, %v1596_v38  ;;  %v1716_v51 = vadd.f32 %v1715_v53, %v1714_v2 }
 0x26c   :  { %v1343_v12 = vpop.xlane.xlu1 %1342  ;;  %v1661_v55 = vmul.f32 %v1629_v16, %v3511_v62  ;;  %v1568_v17 = vadd.f32 %v1534_v41, %v1440_v15 }
 0x26d   :  { %v2059_v60 = vpop.eup %2058  ;;  %v1375_v7 = vadd.f32 %v1343_v12, %v1085_v11  ;;  %v1599_v3 = vld [vmem:[#allocation4 + $0xe0] sm:$0xff]  ;;  %v1660_v33 = vmul.f32 %v1628_v20, %v3496_v18 }
 0x26e   :  { %v1536_v54 = vmul.f32 0.6931472, %v2059_v60  ;;  %v1598_v34 = vld [vmem:[#allocation4 + $0xd8] sm:$0xff]  ;;  %v1631_v48 = vsub.f32 %v1567_v36, %v1599_v3  ;;  %v1719_v50 = vsel %vm90_vm0, %v1661_v55, 0.0 }
 0x26f   :  { %1407 = vst.msk [vmem:[#allocation4 + $0xf8] sm:$0xff] %vm90_vm0, %v1375_v7  ;;  %v1630_v27 = vsub.f32 %v1566_v6, %v1598_v34  ;;  %v1717_v5 = vsel %vm90_vm0, %v1660_v33, 0.0 }
 0x270   :  { %v1569_v43 = vadd.f32 %v1536_v54, %v1441_v56  ;;  %v1718_v26 = vadd.f32 %v1717_v5, %v1716_v51  ;;  %v1663_v62 = vmul.f32 %v1631_v48, %v3522_v23 }
 0x271   :  { %v2061_v59 = vpop.eup %2060  ;;  %v1601_v40 = vld [vmem:[#allocation4 + $0xf0] sm:$0xff]  ;;  %v1662_v18 = vmul.f32 %v1630_v27, %v3513_v1 }
 0x272   :  { %v1538_v52 = vmul.f32 0.6931472, %v2061_v59  ;;  %v1600_v46 = vld [vmem:[#allocation4 + $0xe8] sm:$0xff]  ;;  %v1633_v30 = vsub.f32 %v1569_v43, %v1601_v40  ;;  %v1720_v10 = vadd.f32 %v1719_v50, %v1718_v26  ;;  %v1723_v1 = vsel %vm90_vm0, %v1663_v62, 0.0 }
 0x273   :  { %v1632_v31 = vsub.f32 %v1568_v17, %v1600_v46  ;;  %v1721_v63 = vsel %vm90_vm0, %v1662_v18, 0.0  ;;  %v1808_v35 = vpop.xlane.xlu1 %1807 }
 0x274   :  { %v1570_v29 = vadd.f32 %v1538_v52, %v1442_v32  ;;  %v1722_v45 = vadd.f32 %v1721_v63, %v1720_v10  ;;  %v1665_v57 = vmul.f32 %v1633_v30, %v4064_v39  ;;  %v1809_v19 = vrot.slane %v1808_v35, 4 }
 0x275   :  { %v1664_v21 = vmul.f32 %v1632_v31, %v4063_v42 }
 0x276   :  { %v1602_v44 = vld [vmem:[#allocation4 + $0xf8] sm:$0xff]  ;;  %v1724_v23 = vadd.f32 %v1723_v1, %v1722_v45  ;;  %v1727_v14 = vsel %vm90_vm0, %v1665_v57, 0.0  ;;  %v1810_v28 = vadd.f32 %v1809_v19, %v1808_v35 }
 0x277   :  { %v1634_v13 = vsub.f32 %v1570_v29, %v1602_v44  ;;  %v1725_v37 = vsel %vm90_vm0, %v1664_v21, 0.0 }
 0x278   :  { %v1726_v25 = vadd.f32 %v1725_v37, %v1724_v23  ;;  %v1811_v58 = vrot.slane %v1810_v28, 2 }
 0x279   :  { %v1666_v8 = vmul.f32 %v1634_v13, %v4065_v49 }
 0x27a   :  { %v1728_v0 = vadd.f32 %v1727_v14, %v1726_v25  ;;  %v1812_v16 = vadd.f32 %v1811_v58, %v1810_v28 }
 0x27b   :  { %v1729_v47 = vsel %vm90_vm0, %v1666_v8, 0.0 }
 0x27c   :  { %v1730_v9 = vadd.f32 %v1729_v47, %v1728_v0  ;;  %v1813_v22 = vrot.slane %v1812_v16, 1 }
 0x27e   :  { %1731 = vadd.xlane.f32.xlu0 %v1730_v9  ;;  %v1814_v12 = vadd.f32 %v1813_v22, %v1812_v16 }
 0x30b   :  { %v1732_v61 = vpop.xlane.xlu0 %1731 }
 0x30c   :  { %v1733_v11 = vrot.slane %v1732_v61, 4 }
 0x30e   :  { %v1734_v38 = vadd.f32 %v1733_v11, %v1732_v61 }
 0x310   :  { %v1735_v4 = vrot.slane %v1734_v38, 2 }
 0x312   :  { %v1736_v24 = vadd.f32 %v1735_v4, %v1734_v38 }
 0x314   :  { %v1737_v20 = vrot.slane %v1736_v24, 1 }
 0x316   :  { %v1738_v53 = vadd.f32 %v1737_v20, %v1736_v24 }
 0x318   :  { %1859 = vpush %v1738_v53 }
 0x319   :  { %1861 = vpush %v1814_v12 }
 0x349   :  { %s1860_s13 = spop %1859 }
 0x34a   :  { %v1740_v6 = vstv %s1860_s13  ;;  %s1862_s16 = spop %1861 }
 0x34b   :  { %v1816_v36 = vstv %s1862_s16  ;;  %1742 = vst [vmem:[#allocation5] sm:$0xff] %v1740_v6 }
 0x34c   :  { %1818 = vst [vmem:[#allocation7] sm:$0xff] %v1816_v36 }
 0x34d   :  { %2105 = shalt.err (!%p2102_p4)
}
 0x34e   :  { %s2106_s20 = scalar_lea.hbm %s3783_s2, 128 }
 0x34f   :  { %p2107_p5 = scmp.ne.s32.totalorder %s3783_s2, %s2106_s20  ;;  %p2110_p6 = scmp.lt.u32.totalorder %s2106_s20, %s3783_s2 }
 0x351   :  { %p2112_p7 = pnand %p2110_p6, %p2107_p5 }
 0x353   :  { %2115 = shalt.err (!%p2112_p7)
}
 0x354   :  { %1828 = dma.vmem_to_hbm [thread:$0]  %s1826_s12, 128, %s3783_s2, [#allocation6]  }
 0x355   :  { %s2116_s27 = scalar_lea.vmem %s1836_s15, 128  ;;  %p2121_p9 = scmp.lt.s32.totalorder %s1836_s15, %s1836_s15 }
 0x356   :  { %p2117_p8 = scmp.ne.s32.totalorder %s1836_s15, %s2116_s27  ;;  %p2122_p10 = scmp.lt.s32.totalorder %s2116_s27, %s2116_s27 }
 0x358   :  { %p2123_p11 = por %p2122_p10, %p2121_p9 }
 0x35a   :  { %p2124_p12 = pnand %p2123_p11, %p2117_p8 }
 0x35c   :  { %2127 = shalt.err (!%p2124_p12)
}
 0x35d   :  { %s2128_s30 = scalar_lea.hbm %s3784_s3, 128 }
 0x35e   :  { %p2129_p13 = scmp.ne.s32.totalorder %s3784_s3, %s2128_s30  ;;  %p2132_p0 = scmp.lt.u32.totalorder %s2128_s30, %s3784_s3 }
 0x360   :  { %p2134_p1 = pnand %p2132_p0, %p2129_p13 }
 0x362   :  { %2137 = shalt.err (!%p2134_p1)
}
 0x363   :  { %1838 = dma.vmem_to_hbm [thread:$0]  %s1836_s15, 128, %s3784_s3, [#allocation8]  }
 0x364   :  { %2138 = dma.done.wait [#allocation6], 128  }
 0x365   :  { %2139 = vsyncadd [#allocation6], 4294967168 }
 0x366   :  { %2140 = dma.done.wait [#allocation8], 128  }
 0x367   :  { %2141 = vsyncadd [#allocation8], 4294967168 }
 0x368   :  { %1845 = vsyncpa [#allocation6], 1 }
 0x369   :  { %1846 = vsyncpa [#allocation8], 1 }

</bundles_post_ra>
